<compile_context>
chip_gen: v5e
topology: v5e:2x2
jax: 0.10.0
libtpu: 0.0.40
codegen_flags: <defaults>
</compile_context>

<pallas_src>
import jax
import jax.numpy as jnp
import numpy as np
from jax.experimental import pallas as pl
from jax.experimental.pallas import tpu as pltpu

SEQ = 8          # seq_len
BATCH = 4
EMB = 32         # embedding_dim
HID = 2 * EMB    # hidden_dim = 2 * embedding_dim
NFEAT = 8        # n_features
LAYERS = 2       # rnn1 num_layers


# ---------------------------------------------------------------------------
# wrapper-side layout helpers
# ---------------------------------------------------------------------------
def _reorder_gates(w, hid):
    """Permute gate columns i|f|g|o (PyTorch) -> i|f|o|g (sigmoid gates contiguous)."""
    i = w[..., 0 * hid:1 * hid]
    f = w[..., 1 * hid:2 * hid]
    g = w[..., 2 * hid:3 * hid]
    o = w[..., 3 * hid:4 * hid]
    return jnp.concatenate([i, f, o, g], axis=-1)


# ---------------------------------------------------------------------------
# kernel
# ---------------------------------------------------------------------------
def _cell(gates, c, hid):
    """LSTM cell update from f32 pre-activations with gate columns ordered i|f|o|g.

    EUP passes run over the full gate vreg (sigmoid via tanh identity, then tanh);
    the 32/64-lane combines below are the remaining sub-128-lane slices.
    """
    sig = 0.5 * (jnp.tanh(0.5 * gates) + 1.0)      # sigmoid, pure EUP, full width
    tnh = jnp.tanh(gates)                          # tanh, pure EUP, full width
    i = sig[:, 0 * hid:1 * hid]
    f = sig[:, 1 * hid:2 * hid]
    o = sig[:, 2 * hid:3 * hid]
    g = tnh[:, 3 * hid:4 * hid]
    c_new = f * c + i * g
    h_new = o * jnp.tanh(c_new)
    return h_new, c_new


def decoder_kernel(xs_ref, w_ref, b_ref, y_ref, h2_hist_ref):
    f32 = jnp.float32
    bf16 = jnp.bfloat16

    # ---- per-call state (small; loop-carried in vregs) -----------------------------
    x  = xs_ref[:, 0 * EMB:1 * EMB]
    h0 = xs_ref[:, 1 * EMB:2 * EMB]
    c0 = xs_ref[:, 2 * EMB:3 * EMB]
    h1 = xs_ref[:, 3 * EMB:4 * EMB]
    c1 = xs_ref[:, 4 * EMB:5 * EMB]
    h2 = xs_ref[:, 5 * EMB:5 * EMB + HID]
    c2 = xs_ref[:, 5 * EMB + HID:5 * EMB + 2 * HID]

    # ---- biases (tiny, 128-lane aligned) --------------------------------------------
    b0   = b_ref[0:1, 0:4 * EMB]
    b1   = b_ref[0:1, 4 * EMB:8 * EMB]
    b2   = b_ref[0:1, 8 * EMB:8 * EMB + 4 * HID]
    bout = b_ref[0:1, 8 * EMB + 4 * HID:8 * EMB + 4 * HID + NFEAT]

    # Weight slab row layout (bf16, 256 lanes):
    #   [ 0:32 ]  wih0 | wih1      (lanes 0:128 | 128:256)
    #   [32:64 ]  whh0 | whh1
    #   [64:96 ]  wih2             (lanes 0:256)
    #   [96:160]  whh2
    #   [160:224] wout (lanes 0:NFEAT, rest zero)
    # Tiles are read from the ref at each dot site (no slab materialization).
    W01_I0 = (slice(0, EMB),            slice(0, 4 * EMB))
    W01_H0 = (slice(EMB, 2 * EMB),      slice(0, 4 * EMB))
    W01_I1 = (slice(0, EMB),            slice(4 * EMB, 8 * EMB))
    W01_H1 = (slice(EMB, 2 * EMB),      slice(4 * EMB, 8 * EMB))
    W2_I   = (slice(2 * EMB, 3 * EMB),  slice(None))
    W2_H   = (slice(3 * EMB, 3 * EMB + HID), slice(None))
    W_OUT  = (slice(3 * EMB + HID, 3 * EMB + 2 * HID), slice(0, NFEAT))

    # ---- hoisted loop-invariant input projection (x repeated over seq_len) ----------
    xw0 = jnp.dot(x.astype(bf16), w_ref[W01_I0], preferred_element_type=f32) + b0

    # ---- prime the off-chain recurrent contributions for step 0 ---------------------
    h0b = h0.astype(bf16)
    h1b = h1.astype(bf16)
    h2b = h2.astype(bf16)
    r0 = jnp.dot(h0b, w_ref[W01_H0], preferred_element_type=f32)
    r1 = jnp.dot(h1b, w_ref[W01_H1], preferred_element_type=f32) + b1
    r2 = jnp.dot(h2b, w_ref[W2_H],   preferred_element_type=f32) + b2

    # TODO(synk): inter-layer dropout (p=0.8) of rnn1 is a training-only op; not implemented.
    for t in range(SEQ):  # static trip count, fully unrolled; state lives in vregs
        # ---- rnn1 layer 0: only the r0 add + cell math are on the serial chain ------
        g0 = xw0 + r0
        h0, c0 = _cell(g0, c0, EMB)
        h0b = h0.astype(bf16)
        if t + 1 < SEQ:                      # off-chain recurrent dot for next step
            r0 = jnp.dot(h0b, w_ref[W01_H0], preferred_element_type=f32)

        # ---- rnn1 layer 1 ------------------------------------------------------------
        g1 = jnp.dot(h0b, w_ref[W01_I1], preferred_element_type=f32) + r1
        h1, c1 = _cell(g1, c1, EMB)
        h1b = h1.astype(bf16)
        if t + 1 < SEQ:
            r1 = jnp.dot(h1b, w_ref[W01_H1], preferred_element_type=f32) + b1

        # ---- rnn2 --------------------------------------------------------------------
        g2 = jnp.dot(h1b, w_ref[W2_I], preferred_element_type=f32) + r2
        h2, c2 = _cell(g2, c2, HID)
        if t + 1 < SEQ:
            h2b = h2.astype(bf16)
            r2 = jnp.dot(h2b, w_ref[W2_H], preferred_element_type=f32) + b2

        # ---- stash h2(t) in VMEM scratch (idle vst slot, off the critical path) -----
        h2_hist_ref[BATCH * t:BATCH * (t + 1), :] = h2

    # ---- output head: one dot + one dense store, off the recurrence -----------------
    h2_all = h2_hist_ref[...].astype(bf16)                       # (SEQ*BATCH, HID)
    y = jnp.dot(h2_all, w_ref[W_OUT], preferred_element_type=f32) + bout
    y_ref[...] = y.astype(y_ref.dtype)


# ---------------------------------------------------------------------------
# wrapper
# ---------------------------------------------------------------------------
@jax.jit
def decoder_forward(x, states, params):
    (h00, c00, h01, c01, h2s, c2s) = states
    (wih0, whh0, b0, wih1, whh1, b1, wih2, whh2, b2, wout, bout) = params

    # Layout-only transforms (gate reorder + operand packing + bf16 cast), traced once.
    wih0r, whh0r, b0r = (_reorder_gates(wih0, EMB), _reorder_gates(whh0, EMB),
                         _reorder_gates(b0, EMB))
    wih1r, whh1r, b1r = (_reorder_gates(wih1, EMB), _reorder_gates(whh1, EMB),
                         _reorder_gates(b1, EMB))
    wih2r, whh2r, b2r = (_reorder_gates(wih2, HID), _reorder_gates(whh2, HID),
                         _reorder_gates(b2, HID))

    xs = jnp.concatenate([x, h00, c00, h01, c01, h2s, c2s], axis=-1)            # (4, 288) f32

    w01 = jnp.concatenate([jnp.concatenate([wih0r, whh0r], axis=0),
                           jnp.concatenate([wih1r, whh1r], axis=0)], axis=-1)   # (64, 256)
    w2s = jnp.concatenate([wih2r, whh2r], axis=0)                               # (96, 256)
    wop = jnp.pad(wout, ((0, 0), (0, 4 * HID - NFEAT)))                         # (64, 256)
    wbig = jnp.concatenate([w01, w2s, wop], axis=0).astype(jnp.bfloat16)        # (224, 256) bf16

    bias = jnp.concatenate([b0r, b1r, b2r,
                            jnp.pad(bout, ((0, 0), (0, 4 * EMB - NFEAT)))],
                           axis=-1)                                             # (1, 640) f32

    vspec = pl.BlockSpec(memory_space=pltpu.MemorySpace.VMEM)
    y = pl.pallas_call(
        decoder_kernel,
        out_shape=jax.ShapeDtypeStruct((SEQ * BATCH, NFEAT), jnp.float32),
        in_specs=[vspec, vspec, vspec],
        out_specs=vspec,
        scratch_shapes=[pltpu.VMEM((SEQ * BATCH, HID), jnp.float32)],
    )(xs, wbig, bias)
    return y.reshape(SEQ, BATCH, NFEAT)


# ---------------------------------------------------------------------------
# pure-JAX reference (PyTorch gate order, un-fused, same bf16 dot-operand cast)
# ---------------------------------------------------------------------------
def _lstm_cell_ref(x, h, c, wih, whh, b, hid):
    bf16 = jnp.bfloat16
    gates = (jnp.dot(x.astype(bf16), wih.astype(bf16), preferred_element_type=jnp.float32)
             + jnp.dot(h.astype(bf16), whh.astype(bf16), preferred_element_type=jnp.float32)
             + b)
    i = jax.nn.sigmoid(gates[:, 0 * hid:1 * hid])
    f = jax.nn.sigmoid(gates[:, 1 * hid:2 * hid])
    g = jnp.tanh(gates[:, 2 * hid:3 * hid])
    o = jax.nn.sigmoid(gates[:, 3 * hid:4 * hid])
    c_new = f * c + i * g
    h_new = o * jnp.tanh(c_new)
    return h_new, c_new


def decoder_ref(x, states, params):
    (h0, c0, h1, c1, h2, c2) = states
    (wih0, whh0, b0, wih1, whh1, b1, wih2, whh2, b2, wout, bout) = params
    bf16 = jnp.bfloat16
    ys = []
    for _ in range(SEQ):
        h0, c0 = _lstm_cell_ref(x, h0, c0, wih0, whh0, b0, EMB)
        h1, c1 = _lstm_cell_ref(h0, h1, c1, wih1, whh1, b1, EMB)
        h2, c2 = _lstm_cell_ref(h1, h2, c2, wih2, whh2, b2, HID)
        ys.append(jnp.dot(h2.astype(bf16), wout.astype(bf16),
                          preferred_element_type=jnp.float32) + bout)
    return jnp.stack(ys, axis=0)


if __name__ == "__main__":
    key = jax.random.PRNGKey(0)
    ks = list(jax.random.split(key, 24))

    def u(k, shape, scale):
        return jax.random.uniform(k, shape, jnp.float32, -scale, scale)

    s_e = 1.0 / float(np.sqrt(EMB))
    s_h = 1.0 / float(np.sqrt(HID))

    # rnn1 layer 0: LSTM(emb -> emb)  (weights pre-transposed to (in, 4*hid), gate order i|f|g|o)
    wih0 = u(ks[0], (EMB, 4 * EMB), s_e)
    whh0 = u(ks[1], (EMB, 4 * EMB), s_e)
    b0 = u(ks[2], (1, 4 * EMB), s_e) + u(ks[3], (1, 4 * EMB), s_e)   # b_ih + b_hh
    # rnn1 layer 1: LSTM(emb -> emb)
    wih1 = u(ks[4], (EMB, 4 * EMB), s_e)
    whh1 = u(ks[5], (EMB, 4 * EMB), s_e)
    b1 = u(ks[6], (1, 4 * EMB), s_e) + u(ks[7], (1, 4 * EMB), s_e)
    # rnn2: LSTM(emb -> 2*emb)
    wih2 = u(ks[8], (EMB, 4 * HID), s_h)
    whh2 = u(ks[9], (HID, 4 * HID), s_h)
    b2 = u(ks[10], (1, 4 * HID), s_h) + u(ks[11], (1, 4 * HID), s_h)
    # output_layer: Linear(2*emb -> n_features)
    wout = u(ks[12], (HID, NFEAT), s_h)
    bout = u(ks[13], (1, NFEAT), s_h)
    params = (wih0, whh0, b0, wih1, whh1, b1, wih2, whh2, b2, wout, bout)

    # Decoder input x: (batch, embedding_dim) -- repeated over seq_len inside the kernel.
    x = jax.random.normal(ks[14], (BATCH, EMB), jnp.float32)

    # Forward-time random initial states (torch.randn in the PyTorch code), deterministic here.
    c0r = jax.random.normal(ks[15], (LAYERS, BATCH, EMB), jnp.float32)
    h0r = jax.random.normal(ks[16], (LAYERS, BATCH, EMB), jnp.float32)
    c1r = jax.random.normal(ks[17], (1, BATCH, HID), jnp.float32)
    h1r = jax.random.normal(ks[18], (1, BATCH, HID), jnp.float32)
    # PyTorch forward passes (c0, h0) / (c1, h1) as (h_init, c_init):
    states = (c0r[0], h0r[0], c0r[1], h0r[1], c1r[0], h1r[0])

    out = decoder_forward(x, states, params)
    jax.block_until_ready(out)

    ref = decoder_ref(x, states, params)
    assert out.shape == (SEQ, BATCH, NFEAT), out.shape
    # Reference uses the same bf16 dot-operand cast (f32 accumulate), so only the
    # sigmoid-via-tanh identity and addition re-association differ -> tight tolerance.
    np.testing.assert_allclose(np.asarray(out), np.asarray(ref), atol=5e-3, rtol=5e-3)

    print("KERNEL_OK")
</pallas_src>

<mosaic_0001>
module attributes {stable_mosaic.version = 11 : i64} {
  func.func @decoder_kernel(%arg0: memref<4x288xf32, #tpu.memory_space<vmem>>, %arg1: memref<224x256xbf16, #tpu.memory_space<vmem>>, %arg2: memref<1x640xf32, #tpu.memory_space<vmem>>, %arg3: memref<32x8xf32, #tpu.memory_space<vmem>>, %arg4: memref<32x64xf32, #tpu.memory_space<vmem>>) attributes {dimension_semantics = [], scalar_prefetch = 0 : i64, scratch_operands = 1 : i64, tpu.core_type = #tpu.core_type<tc>} {
    %c0 = arith.constant 0 : index
    %c0_0 = arith.constant 0 : index
    %0 = vector.load %arg0[%c0, %c0_0] : memref<4x288xf32, #tpu.memory_space<vmem>>, vector<4x32xf32>
    %c0_1 = arith.constant 0 : index
    %c32 = arith.constant 32 : index
    %1 = vector.load %arg0[%c0_1, %c32] : memref<4x288xf32, #tpu.memory_space<vmem>>, vector<4x32xf32>
    %c0_2 = arith.constant 0 : index
    %c64 = arith.constant 64 : index
    %2 = vector.load %arg0[%c0_2, %c64] : memref<4x288xf32, #tpu.memory_space<vmem>>, vector<4x32xf32>
    %c0_3 = arith.constant 0 : index
    %c96 = arith.constant 96 : index
    %3 = vector.load %arg0[%c0_3, %c96] : memref<4x288xf32, #tpu.memory_space<vmem>>, vector<4x32xf32>
    %c0_4 = arith.constant 0 : index
    %c128 = arith.constant 128 : index
    %4 = vector.load %arg0[%c0_4, %c128] : memref<4x288xf32, #tpu.memory_space<vmem>>, vector<4x32xf32>
    %c0_5 = arith.constant 0 : index
    %c160 = arith.constant 160 : index
    %5 = vector.load %arg0[%c0_5, %c160] : memref<4x288xf32, #tpu.memory_space<vmem>>, vector<4x64xf32>
    %c0_6 = arith.constant 0 : index
    %c224 = arith.constant 224 : index
    %6 = vector.load %arg0[%c0_6, %c224] : memref<4x288xf32, #tpu.memory_space<vmem>>, vector<4x64xf32>
    %c0_7 = arith.constant 0 : index
    %c0_8 = arith.constant 0 : index
    %7 = vector.load %arg2[%c0_7, %c0_8] : memref<1x640xf32, #tpu.memory_space<vmem>>, vector<1x128xf32>
    %c0_9 = arith.constant 0 : index
    %c128_10 = arith.constant 128 : index
    %8 = vector.load %arg2[%c0_9, %c128_10] : memref<1x640xf32, #tpu.memory_space<vmem>>, vector<1x128xf32>
    %c0_11 = arith.constant 0 : index
    %c256 = arith.constant 256 : index
    %9 = vector.load %arg2[%c0_11, %c256] : memref<1x640xf32, #tpu.memory_space<vmem>>, vector<1x256xf32>
    %c0_12 = arith.constant 0 : index
    %c512 = arith.constant 512 : index
    %10 = vector.load %arg2[%c0_12, %c512] : memref<1x640xf32, #tpu.memory_space<vmem>>, vector<1x8xf32>
    %11 = arith.truncf %0 : vector<4x32xf32> to vector<4x32xbf16>
    %c0_13 = arith.constant 0 : index
    %c0_14 = arith.constant 0 : index
    %12 = vector.load %arg1[%c0_13, %c0_14] : memref<224x256xbf16, #tpu.memory_space<vmem>>, vector<32x128xbf16>
    %cst = arith.constant dense<0.000000e+00> : vector<4x128xf32>
    %13 = tpu.matmul %11, %12, %cst {dimension_numbers = #tpu.dot_dimension_numbers<[1], [0], [0], [1], [0, 0, 1, 1], [], []>} : vector<4x32xbf16>, vector<32x128xbf16>, vector<4x128xf32> -> vector<4x128xf32>
    %14 = vector.broadcast %7 : vector<1x128xf32> to vector<4x128xf32>
    %15 = arith.addf %13, %14 : vector<4x128xf32>
    %16 = arith.truncf %1 : vector<4x32xf32> to vector<4x32xbf16>
    %17 = arith.truncf %3 : vector<4x32xf32> to vector<4x32xbf16>
    %18 = arith.truncf %5 : vector<4x64xf32> to vector<4x64xbf16>
    %c32_15 = arith.constant 32 : index
    %c0_16 = arith.constant 0 : index
    %19 = vector.load %arg1[%c32_15, %c0_16] : memref<224x256xbf16, #tpu.memory_space<vmem>>, vector<32x128xbf16>
    %cst_17 = arith.constant dense<0.000000e+00> : vector<4x128xf32>
    %20 = tpu.matmul %16, %19, %cst_17 {dimension_numbers = #tpu.dot_dimension_numbers<[1], [0], [0], [1], [0, 0, 1, 1], [], []>} : vector<4x32xbf16>, vector<32x128xbf16>, vector<4x128xf32> -> vector<4x128xf32>
    %c32_18 = arith.constant 32 : index
    %c128_19 = arith.constant 128 : index
    %21 = vector.load %arg1[%c32_18, %c128_19] : memref<224x256xbf16, #tpu.memory_space<vmem>>, vector<32x128xbf16>
    %cst_20 = arith.constant dense<0.000000e+00> : vector<4x128xf32>
    %22 = tpu.matmul %17, %21, %cst_20 {dimension_numbers = #tpu.dot_dimension_numbers<[1], [0], [0], [1], [0, 0, 1, 1], [], []>} : vector<4x32xbf16>, vector<32x128xbf16>, vector<4x128xf32> -> vector<4x128xf32>
    %23 = vector.broadcast %8 : vector<1x128xf32> to vector<4x128xf32>
    %24 = arith.addf %22, %23 : vector<4x128xf32>
    %c96_21 = arith.constant 96 : index
    %c0_22 = arith.constant 0 : index
    %25 = vector.load %arg1[%c96_21, %c0_22] : memref<224x256xbf16, #tpu.memory_space<vmem>>, vector<64x256xbf16>
    %cst_23 = arith.constant dense<0.000000e+00> : vector<4x256xf32>
    %26 = tpu.matmul %18, %25, %cst_23 {dimension_numbers = #tpu.dot_dimension_numbers<[1], [0], [0], [1], [0, 0, 1, 1], [], []>} : vector<4x64xbf16>, vector<64x256xbf16>, vector<4x256xf32> -> vector<4x256xf32>
    %27 = vector.broadcast %9 : vector<1x256xf32> to vector<4x256xf32>
    %28 = arith.addf %26, %27 : vector<4x256xf32>
    %29 = arith.addf %15, %20 : vector<4x128xf32>
    %cst_24 = arith.constant 5.000000e-01 : f32
    %30 = vector.broadcast %cst_24 : f32 to vector<4x128xf32>
    %31 = arith.mulf %30, %29 : vector<4x128xf32>
    %32 = math.tanh %31 : vector<4x128xf32>
    %cst_25 = arith.constant 1.000000e+00 : f32
    %33 = vector.broadcast %cst_25 : f32 to vector<4x128xf32>
    %34 = arith.addf %32, %33 : vector<4x128xf32>
    %cst_26 = arith.constant 5.000000e-01 : f32
    %35 = vector.broadcast %cst_26 : f32 to vector<4x128xf32>
    %36 = arith.mulf %35, %34 : vector<4x128xf32>
    %37 = math.tanh %29 : vector<4x128xf32>
    %38 = vector.extract_strided_slice %36 {offsets = [0, 0], sizes = [4, 32], strides = [1, 1]} : vector<4x128xf32> to vector<4x32xf32>
    %39 = vector.extract_strided_slice %36 {offsets = [0, 32], sizes = [4, 32], strides = [1, 1]} : vector<4x128xf32> to vector<4x32xf32>
    %40 = vector.extract_strided_slice %36 {offsets = [0, 64], sizes = [4, 32], strides = [1, 1]} : vector<4x128xf32> to vector<4x32xf32>
    %41 = vector.extract_strided_slice %37 {offsets = [0, 96], sizes = [4, 32], strides = [1, 1]} : vector<4x128xf32> to vector<4x32xf32>
    %42 = arith.mulf %39, %2 : vector<4x32xf32>
    %43 = arith.mulf %38, %41 : vector<4x32xf32>
    %44 = arith.addf %42, %43 : vector<4x32xf32>
    %45 = math.tanh %44 : vector<4x32xf32>
    %46 = arith.mulf %40, %45 : vector<4x32xf32>
    %47 = arith.truncf %46 : vector<4x32xf32> to vector<4x32xbf16>
    %c32_27 = arith.constant 32 : index
    %c0_28 = arith.constant 0 : index
    %48 = vector.load %arg1[%c32_27, %c0_28] : memref<224x256xbf16, #tpu.memory_space<vmem>>, vector<32x128xbf16>
    %cst_29 = arith.constant dense<0.000000e+00> : vector<4x128xf32>
    %49 = tpu.matmul %47, %48, %cst_29 {dimension_numbers = #tpu.dot_dimension_numbers<[1], [0], [0], [1], [0, 0, 1, 1], [], []>} : vector<4x32xbf16>, vector<32x128xbf16>, vector<4x128xf32> -> vector<4x128xf32>
    %c0_30 = arith.constant 0 : index
    %c128_31 = arith.constant 128 : index
    %50 = vector.load %arg1[%c0_30, %c128_31] : memref<224x256xbf16, #tpu.memory_space<vmem>>, vector<32x128xbf16>
    %cst_32 = arith.constant dense<0.000000e+00> : vector<4x128xf32>
    %51 = tpu.matmul %47, %50, %cst_32 {dimension_numbers = #tpu.dot_dimension_numbers<[1], [0], [0], [1], [0, 0, 1, 1], [], []>} : vector<4x32xbf16>, vector<32x128xbf16>, vector<4x128xf32> -> vector<4x128xf32>
    %52 = arith.addf %51, %24 : vector<4x128xf32>
    %cst_33 = arith.constant 5.000000e-01 : f32
    %53 = vector.broadcast %cst_33 : f32 to vector<4x128xf32>
    %54 = arith.mulf %53, %52 : vector<4x128xf32>
    %55 = math.tanh %54 : vector<4x128xf32>
    %cst_34 = arith.constant 1.000000e+00 : f32
    %56 = vector.broadcast %cst_34 : f32 to vector<4x128xf32>
    %57 = arith.addf %55, %56 : vector<4x128xf32>
    %cst_35 = arith.constant 5.000000e-01 : f32
    %58 = vector.broadcast %cst_35 : f32 to vector<4x128xf32>
    %59 = arith.mulf %58, %57 : vector<4x128xf32>
    %60 = math.tanh %52 : vector<4x128xf32>
    %61 = vector.extract_strided_slice %59 {offsets = [0, 0], sizes = [4, 32], strides = [1, 1]} : vector<4x128xf32> to vector<4x32xf32>
    %62 = vector.extract_strided_slice %59 {offsets = [0, 32], sizes = [4, 32], strides = [1, 1]} : vector<4x128xf32> to vector<4x32xf32>
    %63 = vector.extract_strided_slice %59 {offsets = [0, 64], sizes = [4, 32], strides = [1, 1]} : vector<4x128xf32> to vector<4x32xf32>
    %64 = vector.extract_strided_slice %60 {offsets = [0, 96], sizes = [4, 32], strides = [1, 1]} : vector<4x128xf32> to vector<4x32xf32>
    %65 = arith.mulf %62, %4 : vector<4x32xf32>
    %66 = arith.mulf %61, %64 : vector<4x32xf32>
    %67 = arith.addf %65, %66 : vector<4x32xf32>
    %68 = math.tanh %67 : vector<4x32xf32>
    %69 = arith.mulf %63, %68 : vector<4x32xf32>
    %70 = arith.truncf %69 : vector<4x32xf32> to vector<4x32xbf16>
    %c32_36 = arith.constant 32 : index
    %c128_37 = arith.constant 128 : index
    %71 = vector.load %arg1[%c32_36, %c128_37] : memref<224x256xbf16, #tpu.memory_space<vmem>>, vector<32x128xbf16>
    %cst_38 = arith.constant dense<0.000000e+00> : vector<4x128xf32>
    %72 = tpu.matmul %70, %71, %cst_38 {dimension_numbers = #tpu.dot_dimension_numbers<[1], [0], [0], [1], [0, 0, 1, 1], [], []>} : vector<4x32xbf16>, vector<32x128xbf16>, vector<4x128xf32> -> vector<4x128xf32>
    %73 = vector.broadcast %8 : vector<1x128xf32> to vector<4x128xf32>
    %74 = arith.addf %72, %73 : vector<4x128xf32>
    %c64_39 = arith.constant 64 : index
    %c0_40 = arith.constant 0 : index
    %75 = vector.load %arg1[%c64_39, %c0_40] : memref<224x256xbf16, #tpu.memory_space<vmem>>, vector<32x256xbf16>
    %cst_41 = arith.constant dense<0.000000e+00> : vector<4x256xf32>
    %76 = tpu.matmul %70, %75, %cst_41 {dimension_numbers = #tpu.dot_dimension_numbers<[1], [0], [0], [1], [0, 0, 1, 1], [], []>} : vector<4x32xbf16>, vector<32x256xbf16>, vector<4x256xf32> -> vector<4x256xf32>
    %77 = arith.addf %76, %28 : vector<4x256xf32>
    %cst_42 = arith.constant 5.000000e-01 : f32
    %78 = vector.broadcast %cst_42 : f32 to vector<4x256xf32>
    %79 = arith.mulf %78, %77 : vector<4x256xf32>
    %80 = math.tanh %79 : vector<4x256xf32>
    %cst_43 = arith.constant 1.000000e+00 : f32
    %81 = vector.broadcast %cst_43 : f32 to vector<4x256xf32>
    %82 = arith.addf %80, %81 : vector<4x256xf32>
    %cst_44 = arith.constant 5.000000e-01 : f32
    %83 = vector.broadcast %cst_44 : f32 to vector<4x256xf32>
    %84 = arith.mulf %83, %82 : vector<4x256xf32>
    %85 = math.tanh %77 : vector<4x256xf32>
    %86 = vector.extract_strided_slice %84 {offsets = [0, 0], sizes = [4, 64], strides = [1, 1]} : vector<4x256xf32> to vector<4x64xf32>
    %87 = vector.extract_strided_slice %84 {offsets = [0, 64], sizes = [4, 64], strides = [1, 1]} : vector<4x256xf32> to vector<4x64xf32>
    %88 = vector.extract_strided_slice %84 {offsets = [0, 128], sizes = [4, 64], strides = [1, 1]} : vector<4x256xf32> to vector<4x64xf32>
    %89 = vector.extract_strided_slice %85 {offsets = [0, 192], sizes = [4, 64], strides = [1, 1]} : vector<4x256xf32> to vector<4x64xf32>
    %90 = arith.mulf %87, %6 : vector<4x64xf32>
    %91 = arith.mulf %86, %89 : vector<4x64xf32>
    %92 = arith.addf %90, %91 : vector<4x64xf32>
    %93 = math.tanh %92 : vector<4x64xf32>
    %94 = arith.mulf %88, %93 : vector<4x64xf32>
    %95 = arith.truncf %94 : vector<4x64xf32> to vector<4x64xbf16>
    %c96_45 = arith.constant 96 : index
    %c0_46 = arith.constant 0 : index
    %96 = vector.load %arg1[%c96_45, %c0_46] : memref<224x256xbf16, #tpu.memory_space<vmem>>, vector<64x256xbf16>
    %cst_47 = arith.constant dense<0.000000e+00> : vector<4x256xf32>
    %97 = tpu.matmul %95, %96, %cst_47 {dimension_numbers = #tpu.dot_dimension_numbers<[1], [0], [0], [1], [0, 0, 1, 1], [], []>} : vector<4x64xbf16>, vector<64x256xbf16>, vector<4x256xf32> -> vector<4x256xf32>
    %98 = vector.broadcast %9 : vector<1x256xf32> to vector<4x256xf32>
    %99 = arith.addf %97, %98 : vector<4x256xf32>
    %c0_48 = arith.constant 0 : index
    %c0_49 = arith.constant 0 : index
    %100 = vector.load %arg4[%c0_48, %c0_49] : memref<32x64xf32, #tpu.memory_space<vmem>>, vector<4x64xf32>
    tpu.vector_store %arg4[%c0_48, %c0_49], %94 {strides = array<i32>} : memref<32x64xf32, #tpu.memory_space<vmem>>, vector<4x64xf32>,
    %101 = arith.addf %15, %49 : vector<4x128xf32>
    %cst_50 = arith.constant 5.000000e-01 : f32
    %102 = vector.broadcast %cst_50 : f32 to vector<4x128xf32>
    %103 = arith.mulf %102, %101 : vector<4x128xf32>
    %104 = math.tanh %103 : vector<4x128xf32>
    %cst_51 = arith.constant 1.000000e+00 : f32
    %105 = vector.broadcast %cst_51 : f32 to vector<4x128xf32>
    %106 = arith.addf %104, %105 : vector<4x128xf32>
    %cst_52 = arith.constant 5.000000e-01 : f32
    %107 = vector.broadcast %cst_52 : f32 to vector<4x128xf32>
    %108 = arith.mulf %107, %106 : vector<4x128xf32>
    %109 = math.tanh %101 : vector<4x128xf32>
    %110 = vector.extract_strided_slice %108 {offsets = [0, 0], sizes = [4, 32], strides = [1, 1]} : vector<4x128xf32> to vector<4x32xf32>
    %111 = vector.extract_strided_slice %108 {offsets = [0, 32], sizes = [4, 32], strides = [1, 1]} : vector<4x128xf32> to vector<4x32xf32>
    %112 = vector.extract_strided_slice %108 {offsets = [0, 64], sizes = [4, 32], strides = [1, 1]} : vector<4x128xf32> to vector<4x32xf32>
    %113 = vector.extract_strided_slice %109 {offsets = [0, 96], sizes = [4, 32], strides = [1, 1]} : vector<4x128xf32> to vector<4x32xf32>
    %114 = arith.mulf %111, %44 : vector<4x32xf32>
    %115 = arith.mulf %110, %113 : vector<4x32xf32>
    %116 = arith.addf %114, %115 : vector<4x32xf32>
    %117 = math.tanh %116 : vector<4x32xf32>
    %118 = arith.mulf %112, %117 : vector<4x32xf32>
    %119 = arith.truncf %118 : vector<4x32xf32> to vector<4x32xbf16>
    %c32_53 = arith.constant 32 : index
    %c0_54 = arith.constant 0 : index
    %120 = vector.load %arg1[%c32_53, %c0_54] : memref<224x256xbf16, #tpu.memory_space<vmem>>, vector<32x128xbf16>
    %cst_55 = arith.constant dense<0.000000e+00> : vector<4x128xf32>
    %121 = tpu.matmul %119, %120, %cst_55 {dimension_numbers = #tpu.dot_dimension_numbers<[1], [0], [0], [1], [0, 0, 1, 1], [], []>} : vector<4x32xbf16>, vector<32x128xbf16>, vector<4x128xf32> -> vector<4x128xf32>
    %c0_56 = arith.constant 0 : index
    %c128_57 = arith.constant 128 : index
    %122 = vector.load %arg1[%c0_56, %c128_57] : memref<224x256xbf16, #tpu.memory_space<vmem>>, vector<32x128xbf16>
    %cst_58 = arith.constant dense<0.000000e+00> : vector<4x128xf32>
    %123 = tpu.matmul %119, %122, %cst_58 {dimension_numbers = #tpu.dot_dimension_numbers<[1], [0], [0], [1], [0, 0, 1, 1], [], []>} : vector<4x32xbf16>, vector<32x128xbf16>, vector<4x128xf32> -> vector<4x128xf32>
    %124 = arith.addf %123, %74 : vector<4x128xf32>
    %cst_59 = arith.constant 5.000000e-01 : f32
    %125 = vector.broadcast %cst_59 : f32 to vector<4x128xf32>
    %126 = arith.mulf %125, %124 : vector<4x128xf32>
    %127 = math.tanh %126 : vector<4x128xf32>
    %cst_60 = arith.constant 1.000000e+00 : f32
    %128 = vector.broadcast %cst_60 : f32 to vector<4x128xf32>
    %129 = arith.addf %127, %128 : vector<4x128xf32>
    %cst_61 = arith.constant 5.000000e-01 : f32
    %130 = vector.broadcast %cst_61 : f32 to vector<4x128xf32>
    %131 = arith.mulf %130, %129 : vector<4x128xf32>
    %132 = math.tanh %124 : vector<4x128xf32>
    %133 = vector.extract_strided_slice %131 {offsets = [0, 0], sizes = [4, 32], strides = [1, 1]} : vector<4x128xf32> to vector<4x32xf32>
    %134 = vector.extract_strided_slice %131 {offsets = [0, 32], sizes = [4, 32], strides = [1, 1]} : vector<4x128xf32> to vector<4x32xf32>
    %135 = vector.extract_strided_slice %131 {offsets = [0, 64], sizes = [4, 32], strides = [1, 1]} : vector<4x128xf32> to vector<4x32xf32>
    %136 = vector.extract_strided_slice %132 {offsets = [0, 96], sizes = [4, 32], strides = [1, 1]} : vector<4x128xf32> to vector<4x32xf32>
    %137 = arith.mulf %134, %67 : vector<4x32xf32>
    %138 = arith.mulf %133, %136 : vector<4x32xf32>
    %139 = arith.addf %137, %138 : vector<4x32xf32>
    %140 = math.tanh %139 : vector<4x32xf32>
    %141 = arith.mulf %135, %140 : vector<4x32xf32>
    %142 = arith.truncf %141 : vector<4x32xf32> to vector<4x32xbf16>
    %c32_62 = arith.constant 32 : index
    %c128_63 = arith.constant 128 : index
    %143 = vector.load %arg1[%c32_62, %c128_63] : memref<224x256xbf16, #tpu.memory_space<vmem>>, vector<32x128xbf16>
    %cst_64 = arith.constant dense<0.000000e+00> : vector<4x128xf32>
    %144 = tpu.matmul %142, %143, %cst_64 {dimension_numbers = #tpu.dot_dimension_numbers<[1], [0], [0], [1], [0, 0, 1, 1], [], []>} : vector<4x32xbf16>, vector<32x128xbf16>, vector<4x128xf32> -> vector<4x128xf32>
    %145 = vector.broadcast %8 : vector<1x128xf32> to vector<4x128xf32>
    %146 = arith.addf %144, %145 : vector<4x128xf32>
    %c64_65 = arith.constant 64 : index
    %c0_66 = arith.constant 0 : index
    %147 = vector.load %arg1[%c64_65, %c0_66] : memref<224x256xbf16, #tpu.memory_space<vmem>>, vector<32x256xbf16>
    %cst_67 = arith.constant dense<0.000000e+00> : vector<4x256xf32>
    %148 = tpu.matmul %142, %147, %cst_67 {dimension_numbers = #tpu.dot_dimension_numbers<[1], [0], [0], [1], [0, 0, 1, 1], [], []>} : vector<4x32xbf16>, vector<32x256xbf16>, vector<4x256xf32> -> vector<4x256xf32>
    %149 = arith.addf %148, %99 : vector<4x256xf32>
    %cst_68 = arith.constant 5.000000e-01 : f32
    %150 = vector.broadcast %cst_68 : f32 to vector<4x256xf32>
    %151 = arith.mulf %150, %149 : vector<4x256xf32>
    %152 = math.tanh %151 : vector<4x256xf32>
    %cst_69 = arith.constant 1.000000e+00 : f32
    %153 = vector.broadcast %cst_69 : f32 to vector<4x256xf32>
    %154 = arith.addf %152, %153 : vector<4x256xf32>
    %cst_70 = arith.constant 5.000000e-01 : f32
    %155 = vector.broadcast %cst_70 : f32 to vector<4x256xf32>
    %156 = arith.mulf %155, %154 : vector<4x256xf32>
    %157 = math.tanh %149 : vector<4x256xf32>
    %158 = vector.extract_strided_slice %156 {offsets = [0, 0], sizes = [4, 64], strides = [1, 1]} : vector<4x256xf32> to vector<4x64xf32>
    %159 = vector.extract_strided_slice %156 {offsets = [0, 64], sizes = [4, 64], strides = [1, 1]} : vector<4x256xf32> to vector<4x64xf32>
    %160 = vector.extract_strided_slice %156 {offsets = [0, 128], sizes = [4, 64], strides = [1, 1]} : vector<4x256xf32> to vector<4x64xf32>
    %161 = vector.extract_strided_slice %157 {offsets = [0, 192], sizes = [4, 64], strides = [1, 1]} : vector<4x256xf32> to vector<4x64xf32>
    %162 = arith.mulf %159, %92 : vector<4x64xf32>
    %163 = arith.mulf %158, %161 : vector<4x64xf32>
    %164 = arith.addf %162, %163 : vector<4x64xf32>
    %165 = math.tanh %164 : vector<4x64xf32>
    %166 = arith.mulf %160, %165 : vector<4x64xf32>
    %167 = arith.truncf %166 : vector<4x64xf32> to vector<4x64xbf16>
    %c96_71 = arith.constant 96 : index
    %c0_72 = arith.constant 0 : index
    %168 = vector.load %arg1[%c96_71, %c0_72] : memref<224x256xbf16, #tpu.memory_space<vmem>>, vector<64x256xbf16>
    %cst_73 = arith.constant dense<0.000000e+00> : vector<4x256xf32>
    %169 = tpu.matmul %167, %168, %cst_73 {dimension_numbers = #tpu.dot_dimension_numbers<[1], [0], [0], [1], [0, 0, 1, 1], [], []>} : vector<4x64xbf16>, vector<64x256xbf16>, vector<4x256xf32> -> vector<4x256xf32>
    %170 = vector.broadcast %9 : vector<1x256xf32> to vector<4x256xf32>
    %171 = arith.addf %169, %170 : vector<4x256xf32>
    %c4 = arith.constant 4 : index
    %c0_74 = arith.constant 0 : index
    %172 = vector.load %arg4[%c4, %c0_74] : memref<32x64xf32, #tpu.memory_space<vmem>>, vector<4x64xf32>
    tpu.vector_store %arg4[%c4, %c0_74], %166 {strides = array<i32>} : memref<32x64xf32, #tpu.memory_space<vmem>>, vector<4x64xf32>,
    %173 = arith.addf %15, %121 : vector<4x128xf32>
    %cst_75 = arith.constant 5.000000e-01 : f32
    %174 = vector.broadcast %cst_75 : f32 to vector<4x128xf32>
    %175 = arith.mulf %174, %173 : vector<4x128xf32>
    %176 = math.tanh %175 : vector<4x128xf32>
    %cst_76 = arith.constant 1.000000e+00 : f32
    %177 = vector.broadcast %cst_76 : f32 to vector<4x128xf32>
    %178 = arith.addf %176, %177 : vector<4x128xf32>
    %cst_77 = arith.constant 5.000000e-01 : f32
    %179 = vector.broadcast %cst_77 : f32 to vector<4x128xf32>
    %180 = arith.mulf %179, %178 : vector<4x128xf32>
    %181 = math.tanh %173 : vector<4x128xf32>
    %182 = vector.extract_strided_slice %180 {offsets = [0, 0], sizes = [4, 32], strides = [1, 1]} : vector<4x128xf32> to vector<4x32xf32>
    %183 = vector.extract_strided_slice %180 {offsets = [0, 32], sizes = [4, 32], strides = [1, 1]} : vector<4x128xf32> to vector<4x32xf32>
    %184 = vector.extract_strided_slice %180 {offsets = [0, 64], sizes = [4, 32], strides = [1, 1]} : vector<4x128xf32> to vector<4x32xf32>
    %185 = vector.extract_strided_slice %181 {offsets = [0, 96], sizes = [4, 32], strides = [1, 1]} : vector<4x128xf32> to vector<4x32xf32>
    %186 = arith.mulf %183, %116 : vector<4x32xf32>
    %187 = arith.mulf %182, %185 : vector<4x32xf32>
    %188 = arith.addf %186, %187 : vector<4x32xf32>
    %189 = math.tanh %188 : vector<4x32xf32>
    %190 = arith.mulf %184, %189 : vector<4x32xf32>
    %191 = arith.truncf %190 : vector<4x32xf32> to vector<4x32xbf16>
    %c32_78 = arith.constant 32 : index
    %c0_79 = arith.constant 0 : index
    %192 = vector.load %arg1[%c32_78, %c0_79] : memref<224x256xbf16, #tpu.memory_space<vmem>>, vector<32x128xbf16>
    %cst_80 = arith.constant dense<0.000000e+00> : vector<4x128xf32>
    %193 = tpu.matmul %191, %192, %cst_80 {dimension_numbers = #tpu.dot_dimension_numbers<[1], [0], [0], [1], [0, 0, 1, 1], [], []>} : vector<4x32xbf16>, vector<32x128xbf16>, vector<4x128xf32> -> vector<4x128xf32>
    %c0_81 = arith.constant 0 : index
    %c128_82 = arith.constant 128 : index
    %194 = vector.load %arg1[%c0_81, %c128_82] : memref<224x256xbf16, #tpu.memory_space<vmem>>, vector<32x128xbf16>
    %cst_83 = arith.constant dense<0.000000e+00> : vector<4x128xf32>
    %195 = tpu.matmul %191, %194, %cst_83 {dimension_numbers = #tpu.dot_dimension_numbers<[1], [0], [0], [1], [0, 0, 1, 1], [], []>} : vector<4x32xbf16>, vector<32x128xbf16>, vector<4x128xf32> -> vector<4x128xf32>
    %196 = arith.addf %195, %146 : vector<4x128xf32>
    %cst_84 = arith.constant 5.000000e-01 : f32
    %197 = vector.broadcast %cst_84 : f32 to vector<4x128xf32>
    %198 = arith.mulf %197, %196 : vector<4x128xf32>
    %199 = math.tanh %198 : vector<4x128xf32>
    %cst_85 = arith.constant 1.000000e+00 : f32
    %200 = vector.broadcast %cst_85 : f32 to vector<4x128xf32>
    %201 = arith.addf %199, %200 : vector<4x128xf32>
    %cst_86 = arith.constant 5.000000e-01 : f32
    %202 = vector.broadcast %cst_86 : f32 to vector<4x128xf32>
    %203 = arith.mulf %202, %201 : vector<4x128xf32>
    %204 = math.tanh %196 : vector<4x128xf32>
    %205 = vector.extract_strided_slice %203 {offsets = [0, 0], sizes = [4, 32], strides = [1, 1]} : vector<4x128xf32> to vector<4x32xf32>
    %206 = vector.extract_strided_slice %203 {offsets = [0, 32], sizes = [4, 32], strides = [1, 1]} : vector<4x128xf32> to vector<4x32xf32>
    %207 = vector.extract_strided_slice %203 {offsets = [0, 64], sizes = [4, 32], strides = [1, 1]} : vector<4x128xf32> to vector<4x32xf32>
    %208 = vector.extract_strided_slice %204 {offsets = [0, 96], sizes = [4, 32], strides = [1, 1]} : vector<4x128xf32> to vector<4x32xf32>
    %209 = arith.mulf %206, %139 : vector<4x32xf32>
    %210 = arith.mulf %205, %208 : vector<4x32xf32>
    %211 = arith.addf %209, %210 : vector<4x32xf32>
    %212 = math.tanh %211 : vector<4x32xf32>
    %213 = arith.mulf %207, %212 : vector<4x32xf32>
    %214 = arith.truncf %213 : vector<4x32xf32> to vector<4x32xbf16>
    %c32_87 = arith.constant 32 : index
    %c128_88 = arith.constant 128 : index
    %215 = vector.load %arg1[%c32_87, %c128_88] : memref<224x256xbf16, #tpu.memory_space<vmem>>, vector<32x128xbf16>
    %cst_89 = arith.constant dense<0.000000e+00> : vector<4x128xf32>
    %216 = tpu.matmul %214, %215, %cst_89 {dimension_numbers = #tpu.dot_dimension_numbers<[1], [0], [0], [1], [0, 0, 1, 1], [], []>} : vector<4x32xbf16>, vector<32x128xbf16>, vector<4x128xf32> -> vector<4x128xf32>
    %217 = vector.broadcast %8 : vector<1x128xf32> to vector<4x128xf32>
    %218 = arith.addf %216, %217 : vector<4x128xf32>
    %c64_90 = arith.constant 64 : index
    %c0_91 = arith.constant 0 : index
    %219 = vector.load %arg1[%c64_90, %c0_91] : memref<224x256xbf16, #tpu.memory_space<vmem>>, vector<32x256xbf16>
    %cst_92 = arith.constant dense<0.000000e+00> : vector<4x256xf32>
    %220 = tpu.matmul %214, %219, %cst_92 {dimension_numbers = #tpu.dot_dimension_numbers<[1], [0], [0], [1], [0, 0, 1, 1], [], []>} : vector<4x32xbf16>, vector<32x256xbf16>, vector<4x256xf32> -> vector<4x256xf32>
    %221 = arith.addf %220, %171 : vector<4x256xf32>
    %cst_93 = arith.constant 5.000000e-01 : f32
    %222 = vector.broadcast %cst_93 : f32 to vector<4x256xf32>
    %223 = arith.mulf %222, %221 : vector<4x256xf32>
    %224 = math.tanh %223 : vector<4x256xf32>
    %cst_94 = arith.constant 1.000000e+00 : f32
    %225 = vector.broadcast %cst_94 : f32 to vector<4x256xf32>
    %226 = arith.addf %224, %225 : vector<4x256xf32>
    %cst_95 = arith.constant 5.000000e-01 : f32
    %227 = vector.broadcast %cst_95 : f32 to vector<4x256xf32>
    %228 = arith.mulf %227, %226 : vector<4x256xf32>
    %229 = math.tanh %221 : vector<4x256xf32>
    %230 = vector.extract_strided_slice %228 {offsets = [0, 0], sizes = [4, 64], strides = [1, 1]} : vector<4x256xf32> to vector<4x64xf32>
    %231 = vector.extract_strided_slice %228 {offsets = [0, 64], sizes = [4, 64], strides = [1, 1]} : vector<4x256xf32> to vector<4x64xf32>
    %232 = vector.extract_strided_slice %228 {offsets = [0, 128], sizes = [4, 64], strides = [1, 1]} : vector<4x256xf32> to vector<4x64xf32>
    %233 = vector.extract_strided_slice %229 {offsets = [0, 192], sizes = [4, 64], strides = [1, 1]} : vector<4x256xf32> to vector<4x64xf32>
    %234 = arith.mulf %231, %164 : vector<4x64xf32>
    %235 = arith.mulf %230, %233 : vector<4x64xf32>
    %236 = arith.addf %234, %235 : vector<4x64xf32>
    %237 = math.tanh %236 : vector<4x64xf32>
    %238 = arith.mulf %232, %237 : vector<4x64xf32>
    %239 = arith.truncf %238 : vector<4x64xf32> to vector<4x64xbf16>
    %c96_96 = arith.constant 96 : index
    %c0_97 = arith.constant 0 : index
    %240 = vector.load %arg1[%c96_96, %c0_97] : memref<224x256xbf16, #tpu.memory_space<vmem>>, vector<64x256xbf16>
    %cst_98 = arith.constant dense<0.000000e+00> : vector<4x256xf32>
    %241 = tpu.matmul %239, %240, %cst_98 {dimension_numbers = #tpu.dot_dimension_numbers<[1], [0], [0], [1], [0, 0, 1, 1], [], []>} : vector<4x64xbf16>, vector<64x256xbf16>, vector<4x256xf32> -> vector<4x256xf32>
    %242 = vector.broadcast %9 : vector<1x256xf32> to vector<4x256xf32>
    %243 = arith.addf %241, %242 : vector<4x256xf32>
    %c8 = arith.constant 8 : index
    %c0_99 = arith.constant 0 : index
    %244 = vector.load %arg4[%c8, %c0_99] : memref<32x64xf32, #tpu.memory_space<vmem>>, vector<4x64xf32>
    tpu.vector_store %arg4[%c8, %c0_99], %238 {strides = array<i32>} : memref<32x64xf32, #tpu.memory_space<vmem>>, vector<4x64xf32>,
    %245 = arith.addf %15, %193 : vector<4x128xf32>
    %cst_100 = arith.constant 5.000000e-01 : f32
    %246 = vector.broadcast %cst_100 : f32 to vector<4x128xf32>
    %247 = arith.mulf %246, %245 : vector<4x128xf32>
    %248 = math.tanh %247 : vector<4x128xf32>
    %cst_101 = arith.constant 1.000000e+00 : f32
    %249 = vector.broadcast %cst_101 : f32 to vector<4x128xf32>
    %250 = arith.addf %248, %249 : vector<4x128xf32>
    %cst_102 = arith.constant 5.000000e-01 : f32
    %251 = vector.broadcast %cst_102 : f32 to vector<4x128xf32>
    %252 = arith.mulf %251, %250 : vector<4x128xf32>
    %253 = math.tanh %245 : vector<4x128xf32>
    %254 = vector.extract_strided_slice %252 {offsets = [0, 0], sizes = [4, 32], strides = [1, 1]} : vector<4x128xf32> to vector<4x32xf32>
    %255 = vector.extract_strided_slice %252 {offsets = [0, 32], sizes = [4, 32], strides = [1, 1]} : vector<4x128xf32> to vector<4x32xf32>
    %256 = vector.extract_strided_slice %252 {offsets = [0, 64], sizes = [4, 32], strides = [1, 1]} : vector<4x128xf32> to vector<4x32xf32>
    %257 = vector.extract_strided_slice %253 {offsets = [0, 96], sizes = [4, 32], strides = [1, 1]} : vector<4x128xf32> to vector<4x32xf32>
    %258 = arith.mulf %255, %188 : vector<4x32xf32>
    %259 = arith.mulf %254, %257 : vector<4x32xf32>
    %260 = arith.addf %258, %259 : vector<4x32xf32>
    %261 = math.tanh %260 : vector<4x32xf32>
    %262 = arith.mulf %256, %261 : vector<4x32xf32>
    %263 = arith.truncf %262 : vector<4x32xf32> to vector<4x32xbf16>
    %c32_103 = arith.constant 32 : index
    %c0_104 = arith.constant 0 : index
    %264 = vector.load %arg1[%c32_103, %c0_104] : memref<224x256xbf16, #tpu.memory_space<vmem>>, vector<32x128xbf16>
    %cst_105 = arith.constant dense<0.000000e+00> : vector<4x128xf32>
    %265 = tpu.matmul %263, %264, %cst_105 {dimension_numbers = #tpu.dot_dimension_numbers<[1], [0], [0], [1], [0, 0, 1, 1], [], []>} : vector<4x32xbf16>, vector<32x128xbf16>, vector<4x128xf32> -> vector<4x128xf32>
    %c0_106 = arith.constant 0 : index
    %c128_107 = arith.constant 128 : index
    %266 = vector.load %arg1[%c0_106, %c128_107] : memref<224x256xbf16, #tpu.memory_space<vmem>>, vector<32x128xbf16>
    %cst_108 = arith.constant dense<0.000000e+00> : vector<4x128xf32>
    %267 = tpu.matmul %263, %266, %cst_108 {dimension_numbers = #tpu.dot_dimension_numbers<[1], [0], [0], [1], [0, 0, 1, 1], [], []>} : vector<4x32xbf16>, vector<32x128xbf16>, vector<4x128xf32> -> vector<4x128xf32>
    %268 = arith.addf %267, %218 : vector<4x128xf32>
    %cst_109 = arith.constant 5.000000e-01 : f32
    %269 = vector.broadcast %cst_109 : f32 to vector<4x128xf32>
    %270 = arith.mulf %269, %268 : vector<4x128xf32>
    %271 = math.tanh %270 : vector<4x128xf32>
    %cst_110 = arith.constant 1.000000e+00 : f32
    %272 = vector.broadcast %cst_110 : f32 to vector<4x128xf32>
    %273 = arith.addf %271, %272 : vector<4x128xf32>
    %cst_111 = arith.constant 5.000000e-01 : f32
    %274 = vector.broadcast %cst_111 : f32 to vector<4x128xf32>
    %275 = arith.mulf %274, %273 : vector<4x128xf32>
    %276 = math.tanh %268 : vector<4x128xf32>
    %277 = vector.extract_strided_slice %275 {offsets = [0, 0], sizes = [4, 32], strides = [1, 1]} : vector<4x128xf32> to vector<4x32xf32>
    %278 = vector.extract_strided_slice %275 {offsets = [0, 32], sizes = [4, 32], strides = [1, 1]} : vector<4x128xf32> to vector<4x32xf32>
    %279 = vector.extract_strided_slice %275 {offsets = [0, 64], sizes = [4, 32], strides = [1, 1]} : vector<4x128xf32> to vector<4x32xf32>
    %280 = vector.extract_strided_slice %276 {offsets = [0, 96], sizes = [4, 32], strides = [1, 1]} : vector<4x128xf32> to vector<4x32xf32>
    %281 = arith.mulf %278, %211 : vector<4x32xf32>
    %282 = arith.mulf %277, %280 : vector<4x32xf32>
    %283 = arith.addf %281, %282 : vector<4x32xf32>
    %284 = math.tanh %283 : vector<4x32xf32>
    %285 = arith.mulf %279, %284 : vector<4x32xf32>
    %286 = arith.truncf %285 : vector<4x32xf32> to vector<4x32xbf16>
    %c32_112 = arith.constant 32 : index
    %c128_113 = arith.constant 128 : index
    %287 = vector.load %arg1[%c32_112, %c128_113] : memref<224x256xbf16, #tpu.memory_space<vmem>>, vector<32x128xbf16>
    %cst_114 = arith.constant dense<0.000000e+00> : vector<4x128xf32>
    %288 = tpu.matmul %286, %287, %cst_114 {dimension_numbers = #tpu.dot_dimension_numbers<[1], [0], [0], [1], [0, 0, 1, 1], [], []>} : vector<4x32xbf16>, vector<32x128xbf16>, vector<4x128xf32> -> vector<4x128xf32>
    %289 = vector.broadcast %8 : vector<1x128xf32> to vector<4x128xf32>
    %290 = arith.addf %288, %289 : vector<4x128xf32>
    %c64_115 = arith.constant 64 : index
    %c0_116 = arith.constant 0 : index
    %291 = vector.load %arg1[%c64_115, %c0_116] : memref<224x256xbf16, #tpu.memory_space<vmem>>, vector<32x256xbf16>
    %cst_117 = arith.constant dense<0.000000e+00> : vector<4x256xf32>
    %292 = tpu.matmul %286, %291, %cst_117 {dimension_numbers = #tpu.dot_dimension_numbers<[1], [0], [0], [1], [0, 0, 1, 1], [], []>} : vector<4x32xbf16>, vector<32x256xbf16>, vector<4x256xf32> -> vector<4x256xf32>
    %293 = arith.addf %292, %243 : vector<4x256xf32>
    %cst_118 = arith.constant 5.000000e-01 : f32
    %294 = vector.broadcast %cst_118 : f32 to vector<4x256xf32>
    %295 = arith.mulf %294, %293 : vector<4x256xf32>
    %296 = math.tanh %295 : vector<4x256xf32>
    %cst_119 = arith.constant 1.000000e+00 : f32
    %297 = vector.broadcast %cst_119 : f32 to vector<4x256xf32>
    %298 = arith.addf %296, %297 : vector<4x256xf32>
    %cst_120 = arith.constant 5.000000e-01 : f32
    %299 = vector.broadcast %cst_120 : f32 to vector<4x256xf32>
    %300 = arith.mulf %299, %298 : vector<4x256xf32>
    %301 = math.tanh %293 : vector<4x256xf32>
    %302 = vector.extract_strided_slice %300 {offsets = [0, 0], sizes = [4, 64], strides = [1, 1]} : vector<4x256xf32> to vector<4x64xf32>
    %303 = vector.extract_strided_slice %300 {offsets = [0, 64], sizes = [4, 64], strides = [1, 1]} : vector<4x256xf32> to vector<4x64xf32>
    %304 = vector.extract_strided_slice %300 {offsets = [0, 128], sizes = [4, 64], strides = [1, 1]} : vector<4x256xf32> to vector<4x64xf32>
    %305 = vector.extract_strided_slice %301 {offsets = [0, 192], sizes = [4, 64], strides = [1, 1]} : vector<4x256xf32> to vector<4x64xf32>
    %306 = arith.mulf %303, %236 : vector<4x64xf32>
    %307 = arith.mulf %302, %305 : vector<4x64xf32>
    %308 = arith.addf %306, %307 : vector<4x64xf32>
    %309 = math.tanh %308 : vector<4x64xf32>
    %310 = arith.mulf %304, %309 : vector<4x64xf32>
    %311 = arith.truncf %310 : vector<4x64xf32> to vector<4x64xbf16>
    %c96_121 = arith.constant 96 : index
    %c0_122 = arith.constant 0 : index
    %312 = vector.load %arg1[%c96_121, %c0_122] : memref<224x256xbf16, #tpu.memory_space<vmem>>, vector<64x256xbf16>
    %cst_123 = arith.constant dense<0.000000e+00> : vector<4x256xf32>
    %313 = tpu.matmul %311, %312, %cst_123 {dimension_numbers = #tpu.dot_dimension_numbers<[1], [0], [0], [1], [0, 0, 1, 1], [], []>} : vector<4x64xbf16>, vector<64x256xbf16>, vector<4x256xf32> -> vector<4x256xf32>
    %314 = vector.broadcast %9 : vector<1x256xf32> to vector<4x256xf32>
    %315 = arith.addf %313, %314 : vector<4x256xf32>
    %c12 = arith.constant 12 : index
    %c0_124 = arith.constant 0 : index
    %316 = vector.load %arg4[%c12, %c0_124] : memref<32x64xf32, #tpu.memory_space<vmem>>, vector<4x64xf32>
    tpu.vector_store %arg4[%c12, %c0_124], %310 {strides = array<i32>} : memref<32x64xf32, #tpu.memory_space<vmem>>, vector<4x64xf32>,
    %317 = arith.addf %15, %265 : vector<4x128xf32>
    %cst_125 = arith.constant 5.000000e-01 : f32
    %318 = vector.broadcast %cst_125 : f32 to vector<4x128xf32>
    %319 = arith.mulf %318, %317 : vector<4x128xf32>
    %320 = math.tanh %319 : vector<4x128xf32>
    %cst_126 = arith.constant 1.000000e+00 : f32
    %321 = vector.broadcast %cst_126 : f32 to vector<4x128xf32>
    %322 = arith.addf %320, %321 : vector<4x128xf32>
    %cst_127 = arith.constant 5.000000e-01 : f32
    %323 = vector.broadcast %cst_127 : f32 to vector<4x128xf32>
    %324 = arith.mulf %323, %322 : vector<4x128xf32>
    %325 = math.tanh %317 : vector<4x128xf32>
    %326 = vector.extract_strided_slice %324 {offsets = [0, 0], sizes = [4, 32], strides = [1, 1]} : vector<4x128xf32> to vector<4x32xf32>
    %327 = vector.extract_strided_slice %324 {offsets = [0, 32], sizes = [4, 32], strides = [1, 1]} : vector<4x128xf32> to vector<4x32xf32>
    %328 = vector.extract_strided_slice %324 {offsets = [0, 64], sizes = [4, 32], strides = [1, 1]} : vector<4x128xf32> to vector<4x32xf32>
    %329 = vector.extract_strided_slice %325 {offsets = [0, 96], sizes = [4, 32], strides = [1, 1]} : vector<4x128xf32> to vector<4x32xf32>
    %330 = arith.mulf %327, %260 : vector<4x32xf32>
    %331 = arith.mulf %326, %329 : vector<4x32xf32>
    %332 = arith.addf %330, %331 : vector<4x32xf32>
    %333 = math.tanh %332 : vector<4x32xf32>
    %334 = arith.mulf %328, %333 : vector<4x32xf32>
    %335 = arith.truncf %334 : vector<4x32xf32> to vector<4x32xbf16>
    %c32_128 = arith.constant 32 : index
    %c0_129 = arith.constant 0 : index
    %336 = vector.load %arg1[%c32_128, %c0_129] : memref<224x256xbf16, #tpu.memory_space<vmem>>, vector<32x128xbf16>
    %cst_130 = arith.constant dense<0.000000e+00> : vector<4x128xf32>
    %337 = tpu.matmul %335, %336, %cst_130 {dimension_numbers = #tpu.dot_dimension_numbers<[1], [0], [0], [1], [0, 0, 1, 1], [], []>} : vector<4x32xbf16>, vector<32x128xbf16>, vector<4x128xf32> -> vector<4x128xf32>
    %c0_131 = arith.constant 0 : index
    %c128_132 = arith.constant 128 : index
    %338 = vector.load %arg1[%c0_131, %c128_132] : memref<224x256xbf16, #tpu.memory_space<vmem>>, vector<32x128xbf16>
    %cst_133 = arith.constant dense<0.000000e+00> : vector<4x128xf32>
    %339 = tpu.matmul %335, %338, %cst_133 {dimension_numbers = #tpu.dot_dimension_numbers<[1], [0], [0], [1], [0, 0, 1, 1], [], []>} : vector<4x32xbf16>, vector<32x128xbf16>, vector<4x128xf32> -> vector<4x128xf32>
    %340 = arith.addf %339, %290 : vector<4x128xf32>
    %cst_134 = arith.constant 5.000000e-01 : f32
    %341 = vector.broadcast %cst_134 : f32 to vector<4x128xf32>
    %342 = arith.mulf %341, %340 : vector<4x128xf32>
    %343 = math.tanh %342 : vector<4x128xf32>
    %cst_135 = arith.constant 1.000000e+00 : f32
    %344 = vector.broadcast %cst_135 : f32 to vector<4x128xf32>
    %345 = arith.addf %343, %344 : vector<4x128xf32>
    %cst_136 = arith.constant 5.000000e-01 : f32
    %346 = vector.broadcast %cst_136 : f32 to vector<4x128xf32>
    %347 = arith.mulf %346, %345 : vector<4x128xf32>
    %348 = math.tanh %340 : vector<4x128xf32>
    %349 = vector.extract_strided_slice %347 {offsets = [0, 0], sizes = [4, 32], strides = [1, 1]} : vector<4x128xf32> to vector<4x32xf32>
    %350 = vector.extract_strided_slice %347 {offsets = [0, 32], sizes = [4, 32], strides = [1, 1]} : vector<4x128xf32> to vector<4x32xf32>
    %351 = vector.extract_strided_slice %347 {offsets = [0, 64], sizes = [4, 32], strides = [1, 1]} : vector<4x128xf32> to vector<4x32xf32>
    %352 = vector.extract_strided_slice %348 {offsets = [0, 96], sizes = [4, 32], strides = [1, 1]} : vector<4x128xf32> to vector<4x32xf32>
    %353 = arith.mulf %350, %283 : vector<4x32xf32>
    %354 = arith.mulf %349, %352 : vector<4x32xf32>
    %355 = arith.addf %353, %354 : vector<4x32xf32>
    %356 = math.tanh %355 : vector<4x32xf32>
    %357 = arith.mulf %351, %356 : vector<4x32xf32>
    %358 = arith.truncf %357 : vector<4x32xf32> to vector<4x32xbf16>
    %c32_137 = arith.constant 32 : index
    %c128_138 = arith.constant 128 : index
    %359 = vector.load %arg1[%c32_137, %c128_138] : memref<224x256xbf16, #tpu.memory_space<vmem>>, vector<32x128xbf16>
    %cst_139 = arith.constant dense<0.000000e+00> : vector<4x128xf32>
    %360 = tpu.matmul %358, %359, %cst_139 {dimension_numbers = #tpu.dot_dimension_numbers<[1], [0], [0], [1], [0, 0, 1, 1], [], []>} : vector<4x32xbf16>, vector<32x128xbf16>, vector<4x128xf32> -> vector<4x128xf32>
    %361 = vector.broadcast %8 : vector<1x128xf32> to vector<4x128xf32>
    %362 = arith.addf %360, %361 : vector<4x128xf32>
    %c64_140 = arith.constant 64 : index
    %c0_141 = arith.constant 0 : index
    %363 = vector.load %arg1[%c64_140, %c0_141] : memref<224x256xbf16, #tpu.memory_space<vmem>>, vector<32x256xbf16>
    %cst_142 = arith.constant dense<0.000000e+00> : vector<4x256xf32>
    %364 = tpu.matmul %358, %363, %cst_142 {dimension_numbers = #tpu.dot_dimension_numbers<[1], [0], [0], [1], [0, 0, 1, 1], [], []>} : vector<4x32xbf16>, vector<32x256xbf16>, vector<4x256xf32> -> vector<4x256xf32>
    %365 = arith.addf %364, %315 : vector<4x256xf32>
    %cst_143 = arith.constant 5.000000e-01 : f32
    %366 = vector.broadcast %cst_143 : f32 to vector<4x256xf32>
    %367 = arith.mulf %366, %365 : vector<4x256xf32>
    %368 = math.tanh %367 : vector<4x256xf32>
    %cst_144 = arith.constant 1.000000e+00 : f32
    %369 = vector.broadcast %cst_144 : f32 to vector<4x256xf32>
    %370 = arith.addf %368, %369 : vector<4x256xf32>
    %cst_145 = arith.constant 5.000000e-01 : f32
    %371 = vector.broadcast %cst_145 : f32 to vector<4x256xf32>
    %372 = arith.mulf %371, %370 : vector<4x256xf32>
    %373 = math.tanh %365 : vector<4x256xf32>
    %374 = vector.extract_strided_slice %372 {offsets = [0, 0], sizes = [4, 64], strides = [1, 1]} : vector<4x256xf32> to vector<4x64xf32>
    %375 = vector.extract_strided_slice %372 {offsets = [0, 64], sizes = [4, 64], strides = [1, 1]} : vector<4x256xf32> to vector<4x64xf32>
    %376 = vector.extract_strided_slice %372 {offsets = [0, 128], sizes = [4, 64], strides = [1, 1]} : vector<4x256xf32> to vector<4x64xf32>
    %377 = vector.extract_strided_slice %373 {offsets = [0, 192], sizes = [4, 64], strides = [1, 1]} : vector<4x256xf32> to vector<4x64xf32>
    %378 = arith.mulf %375, %308 : vector<4x64xf32>
    %379 = arith.mulf %374, %377 : vector<4x64xf32>
    %380 = arith.addf %378, %379 : vector<4x64xf32>
    %381 = math.tanh %380 : vector<4x64xf32>
    %382 = arith.mulf %376, %381 : vector<4x64xf32>
    %383 = arith.truncf %382 : vector<4x64xf32> to vector<4x64xbf16>
    %c96_146 = arith.constant 96 : index
    %c0_147 = arith.constant 0 : index
    %384 = vector.load %arg1[%c96_146, %c0_147] : memref<224x256xbf16, #tpu.memory_space<vmem>>, vector<64x256xbf16>
    %cst_148 = arith.constant dense<0.000000e+00> : vector<4x256xf32>
    %385 = tpu.matmul %383, %384, %cst_148 {dimension_numbers = #tpu.dot_dimension_numbers<[1], [0], [0], [1], [0, 0, 1, 1], [], []>} : vector<4x64xbf16>, vector<64x256xbf16>, vector<4x256xf32> -> vector<4x256xf32>
    %386 = vector.broadcast %9 : vector<1x256xf32> to vector<4x256xf32>
    %387 = arith.addf %385, %386 : vector<4x256xf32>
    %c16 = arith.constant 16 : index
    %c0_149 = arith.constant 0 : index
    %388 = vector.load %arg4[%c16, %c0_149] : memref<32x64xf32, #tpu.memory_space<vmem>>, vector<4x64xf32>
    tpu.vector_store %arg4[%c16, %c0_149], %382 {strides = array<i32>} : memref<32x64xf32, #tpu.memory_space<vmem>>, vector<4x64xf32>,
    %389 = arith.addf %15, %337 : vector<4x128xf32>
    %cst_150 = arith.constant 5.000000e-01 : f32
    %390 = vector.broadcast %cst_150 : f32 to vector<4x128xf32>
    %391 = arith.mulf %390, %389 : vector<4x128xf32>
    %392 = math.tanh %391 : vector<4x128xf32>
    %cst_151 = arith.constant 1.000000e+00 : f32
    %393 = vector.broadcast %cst_151 : f32 to vector<4x128xf32>
    %394 = arith.addf %392, %393 : vector<4x128xf32>
    %cst_152 = arith.constant 5.000000e-01 : f32
    %395 = vector.broadcast %cst_152 : f32 to vector<4x128xf32>
    %396 = arith.mulf %395, %394 : vector<4x128xf32>
    %397 = math.tanh %389 : vector<4x128xf32>
    %398 = vector.extract_strided_slice %396 {offsets = [0, 0], sizes = [4, 32], strides = [1, 1]} : vector<4x128xf32> to vector<4x32xf32>
    %399 = vector.extract_strided_slice %396 {offsets = [0, 32], sizes = [4, 32], strides = [1, 1]} : vector<4x128xf32> to vector<4x32xf32>
    %400 = vector.extract_strided_slice %396 {offsets = [0, 64], sizes = [4, 32], strides = [1, 1]} : vector<4x128xf32> to vector<4x32xf32>
    %401 = vector.extract_strided_slice %397 {offsets = [0, 96], sizes = [4, 32], strides = [1, 1]} : vector<4x128xf32> to vector<4x32xf32>
    %402 = arith.mulf %399, %332 : vector<4x32xf32>
    %403 = arith.mulf %398, %401 : vector<4x32xf32>
    %404 = arith.addf %402, %403 : vector<4x32xf32>
    %405 = math.tanh %404 : vector<4x32xf32>
    %406 = arith.mulf %400, %405 : vector<4x32xf32>
    %407 = arith.truncf %406 : vector<4x32xf32> to vector<4x32xbf16>
    %c32_153 = arith.constant 32 : index
    %c0_154 = arith.constant 0 : index
    %408 = vector.load %arg1[%c32_153, %c0_154] : memref<224x256xbf16, #tpu.memory_space<vmem>>, vector<32x128xbf16>
    %cst_155 = arith.constant dense<0.000000e+00> : vector<4x128xf32>
    %409 = tpu.matmul %407, %408, %cst_155 {dimension_numbers = #tpu.dot_dimension_numbers<[1], [0], [0], [1], [0, 0, 1, 1], [], []>} : vector<4x32xbf16>, vector<32x128xbf16>, vector<4x128xf32> -> vector<4x128xf32>
    %c0_156 = arith.constant 0 : index
    %c128_157 = arith.constant 128 : index
    %410 = vector.load %arg1[%c0_156, %c128_157] : memref<224x256xbf16, #tpu.memory_space<vmem>>, vector<32x128xbf16>
    %cst_158 = arith.constant dense<0.000000e+00> : vector<4x128xf32>
    %411 = tpu.matmul %407, %410, %cst_158 {dimension_numbers = #tpu.dot_dimension_numbers<[1], [0], [0], [1], [0, 0, 1, 1], [], []>} : vector<4x32xbf16>, vector<32x128xbf16>, vector<4x128xf32> -> vector<4x128xf32>
    %412 = arith.addf %411, %362 : vector<4x128xf32>
    %cst_159 = arith.constant 5.000000e-01 : f32
    %413 = vector.broadcast %cst_159 : f32 to vector<4x128xf32>
    %414 = arith.mulf %413, %412 : vector<4x128xf32>
    %415 = math.tanh %414 : vector<4x128xf32>
    %cst_160 = arith.constant 1.000000e+00 : f32
    %416 = vector.broadcast %cst_160 : f32 to vector<4x128xf32>
    %417 = arith.addf %415, %416 : vector<4x128xf32>
    %cst_161 = arith.constant 5.000000e-01 : f32
    %418 = vector.broadcast %cst_161 : f32 to vector<4x128xf32>
    %419 = arith.mulf %418, %417 : vector<4x128xf32>
    %420 = math.tanh %412 : vector<4x128xf32>
    %421 = vector.extract_strided_slice %419 {offsets = [0, 0], sizes = [4, 32], strides = [1, 1]} : vector<4x128xf32> to vector<4x32xf32>
    %422 = vector.extract_strided_slice %419 {offsets = [0, 32], sizes = [4, 32], strides = [1, 1]} : vector<4x128xf32> to vector<4x32xf32>
    %423 = vector.extract_strided_slice %419 {offsets = [0, 64], sizes = [4, 32], strides = [1, 1]} : vector<4x128xf32> to vector<4x32xf32>
    %424 = vector.extract_strided_slice %420 {offsets = [0, 96], sizes = [4, 32], strides = [1, 1]} : vector<4x128xf32> to vector<4x32xf32>
    %425 = arith.mulf %422, %355 : vector<4x32xf32>
    %426 = arith.mulf %421, %424 : vector<4x32xf32>
    %427 = arith.addf %425, %426 : vector<4x32xf32>
    %428 = math.tanh %427 : vector<4x32xf32>
    %429 = arith.mulf %423, %428 : vector<4x32xf32>
    %430 = arith.truncf %429 : vector<4x32xf32> to vector<4x32xbf16>
    %c32_162 = arith.constant 32 : index
    %c128_163 = arith.constant 128 : index
    %431 = vector.load %arg1[%c32_162, %c128_163] : memref<224x256xbf16, #tpu.memory_space<vmem>>, vector<32x128xbf16>
    %cst_164 = arith.constant dense<0.000000e+00> : vector<4x128xf32>
    %432 = tpu.matmul %430, %431, %cst_164 {dimension_numbers = #tpu.dot_dimension_numbers<[1], [0], [0], [1], [0, 0, 1, 1], [], []>} : vector<4x32xbf16>, vector<32x128xbf16>, vector<4x128xf32> -> vector<4x128xf32>
    %433 = vector.broadcast %8 : vector<1x128xf32> to vector<4x128xf32>
    %434 = arith.addf %432, %433 : vector<4x128xf32>
    %c64_165 = arith.constant 64 : index
    %c0_166 = arith.constant 0 : index
    %435 = vector.load %arg1[%c64_165, %c0_166] : memref<224x256xbf16, #tpu.memory_space<vmem>>, vector<32x256xbf16>
    %cst_167 = arith.constant dense<0.000000e+00> : vector<4x256xf32>
    %436 = tpu.matmul %430, %435, %cst_167 {dimension_numbers = #tpu.dot_dimension_numbers<[1], [0], [0], [1], [0, 0, 1, 1], [], []>} : vector<4x32xbf16>, vector<32x256xbf16>, vector<4x256xf32> -> vector<4x256xf32>
    %437 = arith.addf %436, %387 : vector<4x256xf32>
    %cst_168 = arith.constant 5.000000e-01 : f32
    %438 = vector.broadcast %cst_168 : f32 to vector<4x256xf32>
    %439 = arith.mulf %438, %437 : vector<4x256xf32>
    %440 = math.tanh %439 : vector<4x256xf32>
    %cst_169 = arith.constant 1.000000e+00 : f32
    %441 = vector.broadcast %cst_169 : f32 to vector<4x256xf32>
    %442 = arith.addf %440, %441 : vector<4x256xf32>
    %cst_170 = arith.constant 5.000000e-01 : f32
    %443 = vector.broadcast %cst_170 : f32 to vector<4x256xf32>
    %444 = arith.mulf %443, %442 : vector<4x256xf32>
    %445 = math.tanh %437 : vector<4x256xf32>
    %446 = vector.extract_strided_slice %444 {offsets = [0, 0], sizes = [4, 64], strides = [1, 1]} : vector<4x256xf32> to vector<4x64xf32>
    %447 = vector.extract_strided_slice %444 {offsets = [0, 64], sizes = [4, 64], strides = [1, 1]} : vector<4x256xf32> to vector<4x64xf32>
    %448 = vector.extract_strided_slice %444 {offsets = [0, 128], sizes = [4, 64], strides = [1, 1]} : vector<4x256xf32> to vector<4x64xf32>
    %449 = vector.extract_strided_slice %445 {offsets = [0, 192], sizes = [4, 64], strides = [1, 1]} : vector<4x256xf32> to vector<4x64xf32>
    %450 = arith.mulf %447, %380 : vector<4x64xf32>
    %451 = arith.mulf %446, %449 : vector<4x64xf32>
    %452 = arith.addf %450, %451 : vector<4x64xf32>
    %453 = math.tanh %452 : vector<4x64xf32>
    %454 = arith.mulf %448, %453 : vector<4x64xf32>
    %455 = arith.truncf %454 : vector<4x64xf32> to vector<4x64xbf16>
    %c96_171 = arith.constant 96 : index
    %c0_172 = arith.constant 0 : index
    %456 = vector.load %arg1[%c96_171, %c0_172] : memref<224x256xbf16, #tpu.memory_space<vmem>>, vector<64x256xbf16>
    %cst_173 = arith.constant dense<0.000000e+00> : vector<4x256xf32>
    %457 = tpu.matmul %455, %456, %cst_173 {dimension_numbers = #tpu.dot_dimension_numbers<[1], [0], [0], [1], [0, 0, 1, 1], [], []>} : vector<4x64xbf16>, vector<64x256xbf16>, vector<4x256xf32> -> vector<4x256xf32>
    %458 = vector.broadcast %9 : vector<1x256xf32> to vector<4x256xf32>
    %459 = arith.addf %457, %458 : vector<4x256xf32>
    %c20 = arith.constant 20 : index
    %c0_174 = arith.constant 0 : index
    %460 = vector.load %arg4[%c20, %c0_174] : memref<32x64xf32, #tpu.memory_space<vmem>>, vector<4x64xf32>
    tpu.vector_store %arg4[%c20, %c0_174], %454 {strides = array<i32>} : memref<32x64xf32, #tpu.memory_space<vmem>>, vector<4x64xf32>,
    %461 = arith.addf %15, %409 : vector<4x128xf32>
    %cst_175 = arith.constant 5.000000e-01 : f32
    %462 = vector.broadcast %cst_175 : f32 to vector<4x128xf32>
    %463 = arith.mulf %462, %461 : vector<4x128xf32>
    %464 = math.tanh %463 : vector<4x128xf32>
    %cst_176 = arith.constant 1.000000e+00 : f32
    %465 = vector.broadcast %cst_176 : f32 to vector<4x128xf32>
    %466 = arith.addf %464, %465 : vector<4x128xf32>
    %cst_177 = arith.constant 5.000000e-01 : f32
    %467 = vector.broadcast %cst_177 : f32 to vector<4x128xf32>
    %468 = arith.mulf %467, %466 : vector<4x128xf32>
    %469 = math.tanh %461 : vector<4x128xf32>
    %470 = vector.extract_strided_slice %468 {offsets = [0, 0], sizes = [4, 32], strides = [1, 1]} : vector<4x128xf32> to vector<4x32xf32>
    %471 = vector.extract_strided_slice %468 {offsets = [0, 32], sizes = [4, 32], strides = [1, 1]} : vector<4x128xf32> to vector<4x32xf32>
    %472 = vector.extract_strided_slice %468 {offsets = [0, 64], sizes = [4, 32], strides = [1, 1]} : vector<4x128xf32> to vector<4x32xf32>
    %473 = vector.extract_strided_slice %469 {offsets = [0, 96], sizes = [4, 32], strides = [1, 1]} : vector<4x128xf32> to vector<4x32xf32>
    %474 = arith.mulf %471, %404 : vector<4x32xf32>
    %475 = arith.mulf %470, %473 : vector<4x32xf32>
    %476 = arith.addf %474, %475 : vector<4x32xf32>
    %477 = math.tanh %476 : vector<4x32xf32>
    %478 = arith.mulf %472, %477 : vector<4x32xf32>
    %479 = arith.truncf %478 : vector<4x32xf32> to vector<4x32xbf16>
    %c32_178 = arith.constant 32 : index
    %c0_179 = arith.constant 0 : index
    %480 = vector.load %arg1[%c32_178, %c0_179] : memref<224x256xbf16, #tpu.memory_space<vmem>>, vector<32x128xbf16>
    %cst_180 = arith.constant dense<0.000000e+00> : vector<4x128xf32>
    %481 = tpu.matmul %479, %480, %cst_180 {dimension_numbers = #tpu.dot_dimension_numbers<[1], [0], [0], [1], [0, 0, 1, 1], [], []>} : vector<4x32xbf16>, vector<32x128xbf16>, vector<4x128xf32> -> vector<4x128xf32>
    %c0_181 = arith.constant 0 : index
    %c128_182 = arith.constant 128 : index
    %482 = vector.load %arg1[%c0_181, %c128_182] : memref<224x256xbf16, #tpu.memory_space<vmem>>, vector<32x128xbf16>
    %cst_183 = arith.constant dense<0.000000e+00> : vector<4x128xf32>
    %483 = tpu.matmul %479, %482, %cst_183 {dimension_numbers = #tpu.dot_dimension_numbers<[1], [0], [0], [1], [0, 0, 1, 1], [], []>} : vector<4x32xbf16>, vector<32x128xbf16>, vector<4x128xf32> -> vector<4x128xf32>
    %484 = arith.addf %483, %434 : vector<4x128xf32>
    %cst_184 = arith.constant 5.000000e-01 : f32
    %485 = vector.broadcast %cst_184 : f32 to vector<4x128xf32>
    %486 = arith.mulf %485, %484 : vector<4x128xf32>
    %487 = math.tanh %486 : vector<4x128xf32>
    %cst_185 = arith.constant 1.000000e+00 : f32
    %488 = vector.broadcast %cst_185 : f32 to vector<4x128xf32>
    %489 = arith.addf %487, %488 : vector<4x128xf32>
    %cst_186 = arith.constant 5.000000e-01 : f32
    %490 = vector.broadcast %cst_186 : f32 to vector<4x128xf32>
    %491 = arith.mulf %490, %489 : vector<4x128xf32>
    %492 = math.tanh %484 : vector<4x128xf32>
    %493 = vector.extract_strided_slice %491 {offsets = [0, 0], sizes = [4, 32], strides = [1, 1]} : vector<4x128xf32> to vector<4x32xf32>
    %494 = vector.extract_strided_slice %491 {offsets = [0, 32], sizes = [4, 32], strides = [1, 1]} : vector<4x128xf32> to vector<4x32xf32>
    %495 = vector.extract_strided_slice %491 {offsets = [0, 64], sizes = [4, 32], strides = [1, 1]} : vector<4x128xf32> to vector<4x32xf32>
    %496 = vector.extract_strided_slice %492 {offsets = [0, 96], sizes = [4, 32], strides = [1, 1]} : vector<4x128xf32> to vector<4x32xf32>
    %497 = arith.mulf %494, %427 : vector<4x32xf32>
    %498 = arith.mulf %493, %496 : vector<4x32xf32>
    %499 = arith.addf %497, %498 : vector<4x32xf32>
    %500 = math.tanh %499 : vector<4x32xf32>
    %501 = arith.mulf %495, %500 : vector<4x32xf32>
    %502 = arith.truncf %501 : vector<4x32xf32> to vector<4x32xbf16>
    %c32_187 = arith.constant 32 : index
    %c128_188 = arith.constant 128 : index
    %503 = vector.load %arg1[%c32_187, %c128_188] : memref<224x256xbf16, #tpu.memory_space<vmem>>, vector<32x128xbf16>
    %cst_189 = arith.constant dense<0.000000e+00> : vector<4x128xf32>
    %504 = tpu.matmul %502, %503, %cst_189 {dimension_numbers = #tpu.dot_dimension_numbers<[1], [0], [0], [1], [0, 0, 1, 1], [], []>} : vector<4x32xbf16>, vector<32x128xbf16>, vector<4x128xf32> -> vector<4x128xf32>
    %505 = vector.broadcast %8 : vector<1x128xf32> to vector<4x128xf32>
    %506 = arith.addf %504, %505 : vector<4x128xf32>
    %c64_190 = arith.constant 64 : index
    %c0_191 = arith.constant 0 : index
    %507 = vector.load %arg1[%c64_190, %c0_191] : memref<224x256xbf16, #tpu.memory_space<vmem>>, vector<32x256xbf16>
    %cst_192 = arith.constant dense<0.000000e+00> : vector<4x256xf32>
    %508 = tpu.matmul %502, %507, %cst_192 {dimension_numbers = #tpu.dot_dimension_numbers<[1], [0], [0], [1], [0, 0, 1, 1], [], []>} : vector<4x32xbf16>, vector<32x256xbf16>, vector<4x256xf32> -> vector<4x256xf32>
    %509 = arith.addf %508, %459 : vector<4x256xf32>
    %cst_193 = arith.constant 5.000000e-01 : f32
    %510 = vector.broadcast %cst_193 : f32 to vector<4x256xf32>
    %511 = arith.mulf %510, %509 : vector<4x256xf32>
    %512 = math.tanh %511 : vector<4x256xf32>
    %cst_194 = arith.constant 1.000000e+00 : f32
    %513 = vector.broadcast %cst_194 : f32 to vector<4x256xf32>
    %514 = arith.addf %512, %513 : vector<4x256xf32>
    %cst_195 = arith.constant 5.000000e-01 : f32
    %515 = vector.broadcast %cst_195 : f32 to vector<4x256xf32>
    %516 = arith.mulf %515, %514 : vector<4x256xf32>
    %517 = math.tanh %509 : vector<4x256xf32>
    %518 = vector.extract_strided_slice %516 {offsets = [0, 0], sizes = [4, 64], strides = [1, 1]} : vector<4x256xf32> to vector<4x64xf32>
    %519 = vector.extract_strided_slice %516 {offsets = [0, 64], sizes = [4, 64], strides = [1, 1]} : vector<4x256xf32> to vector<4x64xf32>
    %520 = vector.extract_strided_slice %516 {offsets = [0, 128], sizes = [4, 64], strides = [1, 1]} : vector<4x256xf32> to vector<4x64xf32>
    %521 = vector.extract_strided_slice %517 {offsets = [0, 192], sizes = [4, 64], strides = [1, 1]} : vector<4x256xf32> to vector<4x64xf32>
    %522 = arith.mulf %519, %452 : vector<4x64xf32>
    %523 = arith.mulf %518, %521 : vector<4x64xf32>
    %524 = arith.addf %522, %523 : vector<4x64xf32>
    %525 = math.tanh %524 : vector<4x64xf32>
    %526 = arith.mulf %520, %525 : vector<4x64xf32>
    %527 = arith.truncf %526 : vector<4x64xf32> to vector<4x64xbf16>
    %c96_196 = arith.constant 96 : index
    %c0_197 = arith.constant 0 : index
    %528 = vector.load %arg1[%c96_196, %c0_197] : memref<224x256xbf16, #tpu.memory_space<vmem>>, vector<64x256xbf16>
    %cst_198 = arith.constant dense<0.000000e+00> : vector<4x256xf32>
    %529 = tpu.matmul %527, %528, %cst_198 {dimension_numbers = #tpu.dot_dimension_numbers<[1], [0], [0], [1], [0, 0, 1, 1], [], []>} : vector<4x64xbf16>, vector<64x256xbf16>, vector<4x256xf32> -> vector<4x256xf32>
    %530 = vector.broadcast %9 : vector<1x256xf32> to vector<4x256xf32>
    %531 = arith.addf %529, %530 : vector<4x256xf32>
    %c24 = arith.constant 24 : index
    %c0_199 = arith.constant 0 : index
    %532 = vector.load %arg4[%c24, %c0_199] : memref<32x64xf32, #tpu.memory_space<vmem>>, vector<4x64xf32>
    tpu.vector_store %arg4[%c24, %c0_199], %526 {strides = array<i32>} : memref<32x64xf32, #tpu.memory_space<vmem>>, vector<4x64xf32>,
    %533 = arith.addf %15, %481 : vector<4x128xf32>
    %cst_200 = arith.constant 5.000000e-01 : f32
    %534 = vector.broadcast %cst_200 : f32 to vector<4x128xf32>
    %535 = arith.mulf %534, %533 : vector<4x128xf32>
    %536 = math.tanh %535 : vector<4x128xf32>
    %cst_201 = arith.constant 1.000000e+00 : f32
    %537 = vector.broadcast %cst_201 : f32 to vector<4x128xf32>
    %538 = arith.addf %536, %537 : vector<4x128xf32>
    %cst_202 = arith.constant 5.000000e-01 : f32
    %539 = vector.broadcast %cst_202 : f32 to vector<4x128xf32>
    %540 = arith.mulf %539, %538 : vector<4x128xf32>
    %541 = math.tanh %533 : vector<4x128xf32>
    %542 = vector.extract_strided_slice %540 {offsets = [0, 0], sizes = [4, 32], strides = [1, 1]} : vector<4x128xf32> to vector<4x32xf32>
    %543 = vector.extract_strided_slice %540 {offsets = [0, 32], sizes = [4, 32], strides = [1, 1]} : vector<4x128xf32> to vector<4x32xf32>
    %544 = vector.extract_strided_slice %540 {offsets = [0, 64], sizes = [4, 32], strides = [1, 1]} : vector<4x128xf32> to vector<4x32xf32>
    %545 = vector.extract_strided_slice %541 {offsets = [0, 96], sizes = [4, 32], strides = [1, 1]} : vector<4x128xf32> to vector<4x32xf32>
    %546 = arith.mulf %543, %476 : vector<4x32xf32>
    %547 = arith.mulf %542, %545 : vector<4x32xf32>
    %548 = arith.addf %546, %547 : vector<4x32xf32>
    %549 = math.tanh %548 : vector<4x32xf32>
    %550 = arith.mulf %544, %549 : vector<4x32xf32>
    %551 = arith.truncf %550 : vector<4x32xf32> to vector<4x32xbf16>
    %c0_203 = arith.constant 0 : index
    %c128_204 = arith.constant 128 : index
    %552 = vector.load %arg1[%c0_203, %c128_204] : memref<224x256xbf16, #tpu.memory_space<vmem>>, vector<32x128xbf16>
    %cst_205 = arith.constant dense<0.000000e+00> : vector<4x128xf32>
    %553 = tpu.matmul %551, %552, %cst_205 {dimension_numbers = #tpu.dot_dimension_numbers<[1], [0], [0], [1], [0, 0, 1, 1], [], []>} : vector<4x32xbf16>, vector<32x128xbf16>, vector<4x128xf32> -> vector<4x128xf32>
    %554 = arith.addf %553, %506 : vector<4x128xf32>
    %cst_206 = arith.constant 5.000000e-01 : f32
    %555 = vector.broadcast %cst_206 : f32 to vector<4x128xf32>
    %556 = arith.mulf %555, %554 : vector<4x128xf32>
    %557 = math.tanh %556 : vector<4x128xf32>
    %cst_207 = arith.constant 1.000000e+00 : f32
    %558 = vector.broadcast %cst_207 : f32 to vector<4x128xf32>
    %559 = arith.addf %557, %558 : vector<4x128xf32>
    %cst_208 = arith.constant 5.000000e-01 : f32
    %560 = vector.broadcast %cst_208 : f32 to vector<4x128xf32>
    %561 = arith.mulf %560, %559 : vector<4x128xf32>
    %562 = math.tanh %554 : vector<4x128xf32>
    %563 = vector.extract_strided_slice %561 {offsets = [0, 0], sizes = [4, 32], strides = [1, 1]} : vector<4x128xf32> to vector<4x32xf32>
    %564 = vector.extract_strided_slice %561 {offsets = [0, 32], sizes = [4, 32], strides = [1, 1]} : vector<4x128xf32> to vector<4x32xf32>
    %565 = vector.extract_strided_slice %561 {offsets = [0, 64], sizes = [4, 32], strides = [1, 1]} : vector<4x128xf32> to vector<4x32xf32>
    %566 = vector.extract_strided_slice %562 {offsets = [0, 96], sizes = [4, 32], strides = [1, 1]} : vector<4x128xf32> to vector<4x32xf32>
    %567 = arith.mulf %564, %499 : vector<4x32xf32>
    %568 = arith.mulf %563, %566 : vector<4x32xf32>
    %569 = arith.addf %567, %568 : vector<4x32xf32>
    %570 = math.tanh %569 : vector<4x32xf32>
    %571 = arith.mulf %565, %570 : vector<4x32xf32>
    %572 = arith.truncf %571 : vector<4x32xf32> to vector<4x32xbf16>
    %c64_209 = arith.constant 64 : index
    %c0_210 = arith.constant 0 : index
    %573 = vector.load %arg1[%c64_209, %c0_210] : memref<224x256xbf16, #tpu.memory_space<vmem>>, vector<32x256xbf16>
    %cst_211 = arith.constant dense<0.000000e+00> : vector<4x256xf32>
    %574 = tpu.matmul %572, %573, %cst_211 {dimension_numbers = #tpu.dot_dimension_numbers<[1], [0], [0], [1], [0, 0, 1, 1], [], []>} : vector<4x32xbf16>, vector<32x256xbf16>, vector<4x256xf32> -> vector<4x256xf32>
    %575 = arith.addf %574, %531 : vector<4x256xf32>
    %cst_212 = arith.constant 5.000000e-01 : f32
    %576 = vector.broadcast %cst_212 : f32 to vector<4x256xf32>
    %577 = arith.mulf %576, %575 : vector<4x256xf32>
    %578 = math.tanh %577 : vector<4x256xf32>
    %cst_213 = arith.constant 1.000000e+00 : f32
    %579 = vector.broadcast %cst_213 : f32 to vector<4x256xf32>
    %580 = arith.addf %578, %579 : vector<4x256xf32>
    %cst_214 = arith.constant 5.000000e-01 : f32
    %581 = vector.broadcast %cst_214 : f32 to vector<4x256xf32>
    %582 = arith.mulf %581, %580 : vector<4x256xf32>
    %583 = math.tanh %575 : vector<4x256xf32>
    %584 = vector.extract_strided_slice %582 {offsets = [0, 0], sizes = [4, 64], strides = [1, 1]} : vector<4x256xf32> to vector<4x64xf32>
    %585 = vector.extract_strided_slice %582 {offsets = [0, 64], sizes = [4, 64], strides = [1, 1]} : vector<4x256xf32> to vector<4x64xf32>
    %586 = vector.extract_strided_slice %582 {offsets = [0, 128], sizes = [4, 64], strides = [1, 1]} : vector<4x256xf32> to vector<4x64xf32>
    %587 = vector.extract_strided_slice %583 {offsets = [0, 192], sizes = [4, 64], strides = [1, 1]} : vector<4x256xf32> to vector<4x64xf32>
    %588 = arith.mulf %585, %524 : vector<4x64xf32>
    %589 = arith.mulf %584, %587 : vector<4x64xf32>
    %590 = arith.addf %588, %589 : vector<4x64xf32>
    %591 = math.tanh %590 : vector<4x64xf32>
    %592 = arith.mulf %586, %591 : vector<4x64xf32>
    %c28 = arith.constant 28 : index
    %c0_215 = arith.constant 0 : index
    %593 = vector.load %arg4[%c28, %c0_215] : memref<32x64xf32, #tpu.memory_space<vmem>>, vector<4x64xf32>
    tpu.vector_store %arg4[%c28, %c0_215], %592 {strides = array<i32>} : memref<32x64xf32, #tpu.memory_space<vmem>>, vector<4x64xf32>,
    %c0_216 = arith.constant 0 : index
    %c0_217 = arith.constant 0 : index
    %594 = vector.load %arg4[%c0_216, %c0_217] : memref<32x64xf32, #tpu.memory_space<vmem>>, vector<32x64xf32>
    %595 = arith.truncf %594 : vector<32x64xf32> to vector<32x64xbf16>
    %c160_218 = arith.constant 160 : index
    %c0_219 = arith.constant 0 : index
    %596 = vector.load %arg1[%c160_218, %c0_219] : memref<224x256xbf16, #tpu.memory_space<vmem>>, vector<64x8xbf16>
    %cst_220 = arith.constant dense<0.000000e+00> : vector<32x8xf32>
    %597 = tpu.matmul %595, %596, %cst_220 {dimension_numbers = #tpu.dot_dimension_numbers<[1], [0], [0], [1], [0, 0, 1, 1], [], []>} : vector<32x64xbf16>, vector<64x8xbf16>, vector<32x8xf32> -> vector<32x8xf32>
    %598 = vector.broadcast %10 : vector<1x8xf32> to vector<32x8xf32>
    %599 = arith.addf %597, %598 : vector<32x8xf32>
    %c0_221 = arith.constant 0 : index
    %c0_222 = arith.constant 0 : index
    %600 = vector.load %arg3[%c0_221, %c0_222] : memref<32x8xf32, #tpu.memory_space<vmem>>, vector<32x8xf32>
    tpu.vector_store %arg3[%c0_221, %c0_222], %599 {strides = array<i32>} : memref<32x8xf32, #tpu.memory_space<vmem>>, vector<32x8xf32>,
    return
  }
}

</mosaic_0001>

<bundles_post_ra>
// kernel: decoder_forward.1
= control target key start
LH: loop header
LB: loop body
LE: loop exit
PB: predicated region body
PF: predicated region fallthrough
CT: control target
= control target key end

     0   :  { %s3469_s26 = smov 96   ;;  %s4733_s0 = inlined_call_operand.vmem [shape: f32[4,288], index: 0, kind: input, shape index: {}]   ;;  %s4734_s1 = inlined_call_operand.vmem [shape: bf16[224,256], index: 1, kind: input, shape index: {}]   ;;  %s4735_s2 = inlined_call_operand.vmem [shape: f32[1,640], index: 2, kind: input, shape index: {}]   ;;  %s4736_s3 = inlined_call_operand.hbm [shape: f32[32,8], index: 3, kind: output, shape index: {}]  }
   0x1   :  { %v16_v0 = vld [vmem:[%s4733_s0] sm:$0xf]  ;;  %v2530_v1 = vld [vmem:[%s4734_s1 + $0x10] sm:$0xf]  ;;  %v3136_v3 = vld [vmem:[%s4734_s1 + $0x14] sm:$0xf0] }
   0x2   :  { %v23_v2 = vpack.c.bf16 %v16_v0, %v16_v0  ;;  %226 = vst [vmem:[#allocation1] ss:$2 sm:$0xff] %v16_v0  ;;  %v2526_v4 = vld [vmem:[%s4734_s1] sm:$0xf]  ;;  %v2531_v5 = vor.u32 %v3136_v3, %v2530_v1  ;;  %v3135_v6 = vld [vmem:[%s4734_s1 + $0x4] sm:$0xf0] }
   0x3   :  { %v2539_v7 = vld [vmem:[%s4734_s1 + $0x30] sm:$0xf]  ;;  %v3138_v8 = vld [vmem:[%s4734_s1 + $0x34] sm:$0xf0]  ;;  %v2535_v10 = vld [vmem:[%s4734_s1 + $0x20] sm:$0xf]  ;;  %v2527_v12 = vor.u32 %v3135_v6, %v2526_v4 }
   0x4   :  { %66 = vrot.lane.b32.xlu0 %v23_v2, %s3469_s26  ;;  %v2540_v9 = vor.u32 %v3138_v8, %v2539_v7  ;;  %v3137_v11 = vld [vmem:[%s4734_s1 + $0x24] sm:$0xf0]  ;;  %53 = vmatpush.bf16.msra.mxu0 %v2531_v5 }
   0x5   :  { %8 = vsyncpa [#allocation4], 0  ;;  %v2536_v13 = vor.u32 %v3137_v11, %v2535_v10  ;;  %vm43_vm0 = vcmask 261120   ;;  %v3527_v14 = vld [vmem:[%s4733_s0 + $0x4] sm:$0xf]  ;;  %s3470_s8 = smov 32  }
   0x6   :  { %89 = vmatpush.bf16.msra.mxu2 %v2540_v9  ;;  %261 = vmatpush.bf16.msra.mxu1 %v2540_v9  ;;  %v3279_v19 = vld [vmem:[%s4735_s2] ss:$0 sm:$0xff]  ;;  %v2548_v36 = vld [vmem:[%s4734_s1 + $0x34] sm:$0xf]  ;;  %v3140_v37 = vld [vmem:[%s4734_s1 + $0x38] sm:$0xf0] }
   0x7   :  { %v2544_v38 = vld [vmem:[%s4734_s1 + $0x24] sm:$0xf]  ;;  %v3554_v39 = vor.u32 %v3140_v37, %v2548_v36  ;;  %v3139_v40 = vld [vmem:[%s4734_s1 + $0x28] sm:$0xf0]  ;;  %v2592_v42 = vld [vmem:[%s4734_s1 + $0x14] sm:$0xf] }
   0x8   :  { %54 = vmatpush.bf16.msra.mxu0 %v2527_v12  ;;  %v3560_v41 = vor.u32 %v3139_v40, %v2544_v38  ;;  %v3150_v43 = vld [vmem:[%s4734_s1 + $0x18] sm:$0xf0]  ;;  %v2588_v45 = vld [vmem:[%s4734_s1 + $0x4] sm:$0xf]  ;;  %v3149_v46 = vld [vmem:[%s4734_s1 + $0x8] sm:$0xf0] }
   0x9   :  { %v227_v15 = vld.sshfl [vmem:[#allocation1] sm:$0xff pattern:$0x75316420]  ;;  %v2593_v44 = vor.u32 %v3150_v43, %v2592_v42  ;;  %v2589_v47 = vor.u32 %v3149_v46, %v2588_v45  ;;  %s3471_s25 = smov 64   ;;  %v2579_v36 = vld [vmem:[%s4734_s1 + $0x98] sm:$0xf0] }
   0xa   :  { %90 = vmatpush.bf16.msra.mxu2 %v2536_v13  ;;  %262 = vmatpush.bf16.msra.mxu1 %v2536_v13  ;;  %303 = vst [vmem:[#allocation1] ss:$2 sm:$0xff] %v3527_v14  ;;  %v18_v52 = vld [vmem:[%s4733_s0 + $0x4] sm:$0xff]  ;;  %v3586_v58 = vld [vmem:[%s4735_s2 + $0x1] ss:$0 sm:$0xff]  ;;  %vm189_vm1 = vcmask 523264  }
   0xb   :  { %2532 = vmatmul.msk.bf16.vlgmr.msra.gmra.mxu0 %vm43_vm0, %v23_v2  ;;  %228 = vrot.lane.b32.xlu1 %v227_v15, %s3469_s26  ;;  %v2569_v37 = vld [vmem:[%s4734_s1 + $0x80] sm:$0xf]  ;;  %v3146_v38 = vld [vmem:[%s4734_s1 + $0x84] sm:$0xf0]  ;;  %v3145_v42 = vld [vmem:[%s4734_s1 + $0x84] sm:$0xf] }
   0xc   :  { %v2571_v43 = vld [vmem:[%s4734_s1 + $0x88] sm:$0xf0]  ;;  %v2561_v46 = vld [vmem:[%s4734_s1 + $0x70] sm:$0xf]  ;;  %vm412_vm2 = vcmask 785408   ;;  %vm462_vm3 = vcmask 519168  }
   0xd   :  { %v2574_v45 = vor.u32 %v3145_v42, %v2571_v43  ;;  %vm2501_vm4 = vcmask 64512   ;;  %s2512_s12 = sshll.u32 %s4736_s3, 4  ;;  %s3473_s13 = smov 128   ;;  %s2513_s12 = int_to_ptr.hbm [resolvable:$true] %s2512_s12 }
   0xe   :  { %126 = vmatpush.bf16.msrb.mxu2 %v3554_v39  ;;  %s3474_s14 = smov 8  }
  0x11   :  { %v304_v53 = vld.sshfl [vmem:[#allocation1] sm:$0xff pattern:$0x75316420] }
  0x12   :  { %127 = vmatpush.bf16.msrb.mxu2 %v3560_v41  ;;  %405 = vst [vmem:[#allocation1] ss:$2 sm:$0xff] %v18_v52  ;;  %v3151_v52 = vld [vmem:[%s4734_s1 + $0x44] sm:$0xf] }
  0x76   :  { %v67_v16 = vpop.permute.xlu0 %66 }
  0x77   :  { %2541 = vmatmul.msk.bf16.vlgmr.msra.gmra.mxu2 %vm43_vm0, %v67_v16 }
  0x78   :  { %290 = vmatpush.bf16.msra.mxu2 %v2593_v44  ;;  %v2570_v44 = vor.u32 %v3146_v38, %v2569_v37 }
  0x7c   :  { %291 = vmatpush.bf16.msra.mxu2 %v2589_v47  ;;  %v3144_v47 = vld [vmem:[%s4734_s1 + $0x74] sm:$0xf0] }
  0x7d   :  { %v229_v31 = vpop.permute.xlu1 %228 }
  0x88   :  { %v56_v17 = vpop.f32.mrf.mxu0 }
  0x89   :  { %v3535_v20 = vadd.f32 %v3279_v19, %v56_v17 }
  0x90   :  { %v58_v18 = vpop.f32.mrf.mxu0 }
  0xfa   :  { %v92_v21 = vpop.f32.mrf.mxu2 }
  0xfb   :  { %v219_v22 = vadd.f32 %v92_v21, %v3535_v20 }
  0xfd   :  { %3282 = vtanh.f32 %v219_v22  ;;  %v220_v25 = vmul.f32 0.5, %v219_v22 }
  0xff   :  { %3284 = vtanh.f32 %v220_v25 }
 0x102   :  { %v94_v23 = vpop.f32.mrf.mxu2 }
 0x103   :  { %v3283_v24 = vpop.eup %3282 }
 0x104   :  { %233 = vrot.lane.b32.xlu0 %v3283_v24, %s3470_s8 }
 0x105   :  { %v3285_v26 = vpop.eup %3284 }
 0x106   :  { %v222_v27 = vadd.f32 1.0, %v3285_v26 }
 0x108   :  { %v223_v28 = vmul.f32 0.5, %v222_v27 }
 0x10a   :  { %v231_v32 = vmul.f32 %v229_v31, %v223_v28 }
 0x176   :  { %v234_v29 = vpop.permute.xlu0 %233 }
 0x177   :  { %v236_v30 = vmul.f32 %v234_v29, %v223_v28  ;;  %v60_v29 = vpack.c.bf16 %v3527_v14, %v3527_v14 }
 0x179   :  { %238 = vrot.lane.b32.xlu1 %v236_v30, %s3470_s8 }
 0x1eb   :  { %v239_v33 = vpop.permute.xlu1 %238 }
 0x1ec   :  { %v3540_v34 = vadd.f32 %v239_v33, %v231_v32  ;;  %v2577_v33 = vld [vmem:[%s4734_s1 + $0x90] sm:$0xf] }
 0x1ee   :  { %3286 = vtanh.f32 %v3540_v34 }
 0x1f4   :  { %v3287_v35 = vpop.eup %3286 }
 0x1f5   :  { %244 = vrot.lane.b32.xlu2 %v3287_v35, %s3470_s8  ;;  %v3147_v35 = vld [vmem:[%s4734_s1 + $0x94] sm:$0xf] }
 0x1f6   :  { %v2582_v40 = vor.u32 %v3147_v35, %v2579_v36 }
 0x1f8   :  { %210 = vmatpush.bf16.msrb.mxu0 %v2582_v40 }
 0x1fc   :  { %211 = vmatpush.bf16.msrb.mxu0 %v2574_v45 }
 0x1fd   :  { %103 = vrot.lane.b32.xlu2 %v23_v2, %s3470_s8 }
 0x24f   :  { %v245_v48 = vpop.permute.xlu2 %244 }
 0x250   :  { %v247_v49 = vmul.f32 %v245_v48, %v223_v28  ;;  %v3143_v48 = vld [vmem:[%s4734_s1 + $0x74] sm:$0xf] }
 0x252   :  { %v248_v50 = vpack.c.bf16 %v247_v49, %v247_v49  ;;  %v2563_v49 = vld [vmem:[%s4734_s1 + $0x78] sm:$0xf0] }
 0x254   :  { %250 = vrot.lane.b32.xlu0 %v248_v50, %s3471_s25  ;;  %v3153_v50 = vld [vmem:[%s4734_s1 + $0x54] sm:$0xf] }
 0x257   :  { %v104_v51 = vpop.permute.xlu2 %103 }
 0x258   :  { %2550 = vmatmul.msk.bf16.vlgmr.msrb.gmra.mxu2 %vm43_vm0, %v104_v51  ;;  %v2608_v51 = vld [vmem:[%s4734_s1 + $0x58] sm:$0xf0] }
 0x25c   :  { %305 = vrot.lane.b32.xlu0 %v304_v53, %s3470_s8  ;;  %v2600_v53 = vld [vmem:[%s4734_s1 + $0x48] sm:$0xf0] }
 0x2c6   :  { %v251_v54 = vpop.permute.xlu0 %250 }
 0x2c7   :  { %2585 = vmatmul.msk.bf16.vlgmr.msra.gmra.mxu1 %vm43_vm0, %v251_v54  ;;  %2594 = vmatmul.msk.bf16.vlgmr.msra.gmra.mxu2 %vm43_vm0, %v251_v54  ;;  %v2562_v54 = vor.u32 %v3144_v47, %v2561_v46 }
 0x2ce   :  { %v306_v21 = vpop.permute.xlu0 %305 }
 0x2db   :  { %v129_v55 = vpop.f32.mrf.mxu2 }
 0x2dc   :  { %v130_v60 = vadd.f32 %v3586_v58, %v129_v55  ;;  %v2611_v55 = vor.u32 %v3153_v50, %v2608_v51 }
 0x2de   :  { %388 = vmatpush.bf16.msrb.mxu1 %v2611_v55 }
 0x2e3   :  { %v131_v56 = vpop.f32.mrf.mxu2 }
 0x2e4   :  { %v2566_v56 = vor.u32 %v3143_v48, %v2563_v49 }
 0x2e6   :  { %212 = vmatpush.bf16.msrb.mxu0 %v2566_v56 }
 0x344   :  { %v264_v57 = vpop.f32.mrf.mxu1 }
 0x345   :  { %v464_v59 = vadd.f32 %v264_v57, %v3535_v20  ;;  %v2553_v57 = vld [vmem:[%s4734_s1 + $0x60] sm:$0xf] }
 0x347   :  { %3288 = vtanh.f32 %v464_v59  ;;  %v465_v3 = vmul.f32 0.5, %v464_v59  ;;  %v3142_v59 = vld [vmem:[%s4734_s1 + $0x64] sm:$0xf0] }
 0x34a   :  { %v293_v61 = vpop.f32.mrf.mxu2 }
 0x34b   :  { %v294_v62 = vadd.f32 %v293_v61, %v130_v60  ;;  %v3141_v60 = vld [vmem:[%s4734_s1 + $0x64] sm:$0xf]  ;;  %v2555_v61 = vld [vmem:[%s4734_s1 + $0x68] sm:$0xf0] }
 0x34c   :  { %v266_v63 = vpop.f32.mrf.mxu1 }
 0x34d   :  { %v3289_v0 = vpop.eup %3288  ;;  %3290 = vtanh.f32 %v294_v62  ;;  %v297_v9 = vmul.f32 0.5, %v294_v62  ;;  %v2603_v62 = vor.u32 %v3151_v52, %v2600_v53  ;;  %v2606_v63 = vld [vmem:[%s4734_s1 + $0x50] sm:$0xf] }
 0x34e   :  { %472 = vrot.lane.b32.xlu2 %v3289_v0, %s3470_s8  ;;  %3292 = vtanh.f32 %v465_v3  ;;  %v3154_v0 = vld [vmem:[%s4734_s1 + $0x54] sm:$0xf0] }
 0x34f   :  { %3294 = vtanh.f32 %v297_v9  ;;  %389 = vmatpush.bf16.msrb.mxu1 %v2603_v62  ;;  %v2607_v3 = vor.u32 %v3154_v0, %v2606_v63 }
 0x352   :  { %v295_v1 = vpop.f32.mrf.mxu2 }
 0x353   :  { %v3291_v2 = vpop.eup %3290  ;;  %v2554_v1 = vor.u32 %v3142_v59, %v2553_v57 }
 0x354   :  { %310 = vrot.lane.b32.xlu1 %v3291_v2, %s3470_s8  ;;  %v3293_v4 = vpop.eup %3292  ;;  %v2558_v2 = vor.u32 %v3141_v60, %v2555_v61  ;;  %v407_v61 = vld.sshfl [vmem:[#allocation1 + $0x8] sm:$0xff pattern:$0x75316420] }
 0x355   :  { %v467_v5 = vadd.f32 1.0, %v3293_v4  ;;  %v3295_v10 = vpop.eup %3294  ;;  %v2598_v4 = vld [vmem:[%s4734_s1 + $0x40] sm:$0xf] }
 0x356   :  { %v299_v11 = vadd.f32 1.0, %v3295_v10  ;;  %213 = vmatpush.bf16.msrb.mxu0 %v2558_v2  ;;  %v3157_v10 = vld [vmem:[%s4734_s1 + $0x8] sm:$0xf0] }
 0x357   :  { %v468_v6 = vmul.f32 0.5, %v467_v5  ;;  %v3152_v5 = vld [vmem:[%s4734_s1 + $0x44] sm:$0xf0] }
 0x358   :  { %v300_v12 = vmul.f32 0.5, %v299_v11  ;;  %v2622_v11 = vld [vmem:[%s4734_s1 + $0x30] sm:$0xf] }
 0x359   :  { %v470_v16 = vmul.f32 %v468_v6, %v3540_v34  ;;  %v3148_v34 = vld [vmem:[%s4734_s1 + $0x94] sm:$0xf0] }
 0x35a   :  { %v308_v22 = vmul.f32 %v306_v21, %v300_v12  ;;  %v2578_v14 = vor.u32 %v3148_v34, %v2577_v33  ;;  %375 = vmatpush.bf16.msra.mxu0 %v2607_v3 }
 0x35c   :  { %197 = vmatpush.bf16.msra.mxu3 %v2578_v14  ;;  %440 = vmatpush.bf16.msrb.mxu2 %v2578_v14 }
 0x360   :  { %198 = vmatpush.bf16.msra.mxu3 %v2570_v44  ;;  %441 = vmatpush.bf16.msrb.mxu2 %v2570_v44 }
 0x364   :  { %199 = vmatpush.bf16.msra.mxu3 %v2562_v54  ;;  %442 = vmatpush.bf16.msrb.mxu2 %v2562_v54 }
 0x368   :  { %200 = vmatpush.bf16.msra.mxu3 %v2554_v1  ;;  %443 = vmatpush.bf16.msrb.mxu2 %v2554_v1 }
 0x36c   :  { %338 = vmatpush.bf16.msrb.mxu3 %v3554_v39  ;;  %v3158_v39 = vld [vmem:[%s4734_s1 + $0x18] sm:$0xf0] }
 0x370   :  { %339 = vmatpush.bf16.msrb.mxu3 %v3560_v41  ;;  %v2627_v41 = vld [vmem:[%s4734_s1 + $0x4] sm:$0xf] }
 0x3a8   :  { %v473_v7 = vpop.permute.xlu2 %472 }
 0x3a9   :  { %v475_v8 = vmul.f32 %v473_v7, %v468_v6 }
 0x3ab   :  { %477 = vrot.lane.b32.xlu2 %v475_v8, %s3470_s8  ;;  %v2631_v8 = vld [vmem:[%s4734_s1 + $0x14] sm:$0xf] }
 0x3ac   :  { %v2632_v9 = vor.u32 %v3158_v39, %v2631_v8 }
 0x3ae   :  { %545 = vmatpush.bf16.msra.mxu1 %v2632_v9 }
 0x3b3   :  { %147 = vrot.lane.b32.xlu2 %v60_v29, %s3469_s26 }
 0x3c6   :  { %v311_v13 = vpop.permute.xlu1 %310 }
 0x3c7   :  { %v313_v15 = vmul.f32 %v311_v13, %v300_v12 }
 0x3c9   :  { %315 = vrot.lane.b32.xlu1 %v313_v15, %s3470_s8  ;;  %v2618_v15 = vld [vmem:[%s4734_s1 + $0x20] sm:$0xf] }
 0x405   :  { %v478_v17 = vpop.permute.xlu2 %477 }
 0x406   :  { %v3595_v18 = vadd.f32 %v478_v17, %v470_v16  ;;  %v3155_v16 = vld [vmem:[%s4734_s1 + $0x24] sm:$0xf0]  ;;  %v2628_v17 = vor.u32 %v3157_v10, %v2627_v41 }
 0x408   :  { %3296 = vtanh.f32 %v3595_v18  ;;  %546 = vmatpush.bf16.msra.mxu1 %v2628_v17 }
 0x40d   :  { %v148_v7 = vpop.permute.xlu2 %147 }
 0x40e   :  { %v3297_v19 = vpop.eup %3296  ;;  %2583 = vmatmul.msk.bf16.vlgmr.msra.gmra.mxu3 %vm189_vm1, %v148_v7  ;;  %2584 = vmatmul.msk.bf16.vlgmr.msrb.gmra.mxu0 %vm189_vm1, %v148_v7 }
 0x40f   :  { %483 = vrot.lane.b32.xlu1 %v3297_v19, %s3470_s8  ;;  %453 = vmatpush.bf16.msra.mxu3 %v2582_v40  ;;  %v2619_v19 = vor.u32 %v3155_v16, %v2618_v15 }
 0x413   :  { %454 = vmatpush.bf16.msra.mxu3 %v2574_v45  ;;  %v406_v45 = vld.sshfl [vmem:[#allocation1] sm:$0xff pattern:$0x75316420] }
 0x417   :  { %455 = vmatpush.bf16.msra.mxu3 %v2566_v56 }
 0x41b   :  { %456 = vmatpush.bf16.msra.mxu3 %v2558_v2 }
 0x43b   :  { %v316_v23 = vpop.permute.xlu1 %315 }
 0x43c   :  { %v3599_v24 = vadd.f32 %v316_v23, %v308_v22 }
 0x43e   :  { %3298 = vtanh.f32 %v3599_v24 }
 0x444   :  { %v3299_v25 = vpop.eup %3298 }
 0x445   :  { %321 = vrot.lane.b32.xlu0 %v3299_v25, %s3470_s8 }
 0x481   :  { %v484_v26 = vpop.permute.xlu1 %483 }
 0x482   :  { %v486_v27 = vmul.f32 %v484_v26, %v468_v6  ;;  %v2599_v6 = vor.u32 %v3152_v5, %v2598_v4 }
 0x484   :  { %v487_v28 = vpack.c.bf16 %v486_v27, %v486_v27  ;;  %376 = vmatpush.bf16.msra.mxu0 %v2599_v6 }
 0x486   :  { %493 = vrot.lane.b32.xlu1 %v487_v28, %s3471_s25  ;;  %v21_v28 = vld [vmem:[%s4735_s2 + $0x2] sm:$0x3] }
 0x487   :  { %v3716_v29 = vperm.slane %v21_v28, 0 }
 0x48b   :  { %v215_v23 = vpop.f32.mrf.mxu0 }
 0x491   :  { %v202_v25 = vpop.f32.mrf.mxu3 }
 0x493   :  { %v217_v26 = vpop.f32.mrf.mxu0 }
 0x499   :  { %v204_v27 = vpop.f32.mrf.mxu3 }
 0x4b7   :  { %v322_v30 = vpop.permute.xlu0 %321 }
 0x4b8   :  { %v324_v31 = vmul.f32 %v322_v30, %v300_v12  ;;  %v3156_v12 = vld [vmem:[%s4734_s1 + $0x34] sm:$0xf0]  ;;  %v3718_v30 = vperm.slane %v21_v28, 1 }
 0x4b9   :  { %v2623_v13 = vor.u32 %v3156_v12, %v2622_v11 }
 0x4ba   :  { %v325_v32 = vpack.c.bf16 %v324_v31, %v324_v31  ;;  %v203_v31 = vadd.f32 %v202_v25, %v3716_v29 }
 0x4bb   :  { %516 = vmatpush.bf16.msrb.mxu0 %v2623_v13 }
 0x4bc   :  { %327 = vrot.lane.b32.xlu0 %v325_v32, %s3471_s25  ;;  %v216_v32 = vadd.f32 %v215_v23, %v3718_v30 }
 0x4bf   :  { %517 = vmatpush.bf16.msrb.mxu0 %v2619_v19 }
 0x4f8   :  { %v494_v22 = vpop.permute.xlu1 %493 }
 0x52e   :  { %v328_v21 = vpop.permute.xlu0 %327 }
 0x52f   :  { %2595 = vmatmul.msk.bf16.vlgmr.msrb.gmra.mxu3 %vm43_vm0, %v328_v21  ;;  %2612 = vmatmul.msk.bf16.vlgmr.msra.gmra.mxu0 %vm43_vm0, %v328_v21 }
 0x530   :  { %2613 = vmatmul.msk.bf16.vlgmr.msrb.gmra.mxu1 %vm43_vm0, %v328_v21 }
 0x53f   :  { %2624 = vmatmul.msk.bf16.vlgmr.msrb.gmra.mxu0 %vm43_vm0, %v494_v22 }
 0x540   :  { %2633 = vmatmul.msk.bf16.vlgmr.msra.gmra.mxu1 %vm43_vm0, %v494_v22 }
 0x5ac   :  { %v378_v33 = vpop.f32.mrf.mxu0 }
 0x5ad   :  { %v379_v34 = vadd.f32 %v378_v33, %v203_v31  ;;  %v391_v35 = vpop.f32.mrf.mxu1  ;;  %v2655_v33 = vld [vmem:[%s4734_s1 + $0x58] sm:$0xf0] }
 0x5ae   :  { %v3722_v14 = vadd.f32 %v391_v35, %v216_v32  ;;  %v3163_v32 = vld [vmem:[%s4734_s1 + $0x54] sm:$0xf] }
 0x5af   :  { %v395_v62 = vmul.f32 0.5, %v379_v34  ;;  %v2640_v34 = vld [vmem:[%s4734_s1 + $0x34] sm:$0xf]  ;;  %v2658_v35 = vor.u32 %v3163_v32, %v2655_v33 }
 0x5b0   :  { %3300 = vtanh.f32 %v3722_v14 }
 0x5b1   :  { %653 = vmatpush.bf16.msra.mxu0 %v2658_v35 }
 0x5b2   :  { %v341_v36 = vpop.f32.mrf.mxu3 }
 0x5b3   :  { %v342_v43 = vadd.f32 %v3586_v58, %v341_v36  ;;  %v3160_v36 = vld [vmem:[%s4734_s1 + $0x38] sm:$0xf0] }
 0x5b4   :  { %v380_v37 = vpop.f32.mrf.mxu0 }
 0x5b5   :  { %v393_v38 = vpop.f32.mrf.mxu1  ;;  %v3161_v37 = vld [vmem:[%s4734_s1 + $0x44] sm:$0xf] }
 0x5b6   :  { %v3301_v40 = vpop.eup %3300  ;;  %v2647_v38 = vld [vmem:[%s4734_s1 + $0x48] sm:$0xf0] }
 0x5b7   :  { %417 = vrot.lane.b32.xlu1 %v3301_v40, %s3471_s25  ;;  %v2641_v40 = vor.u32 %v3160_v36, %v2640_v34 }
 0x5b9   :  { %603 = vmatpush.bf16.msra.mxu2 %v2641_v40 }
 0x5ba   :  { %v343_v42 = vpop.f32.mrf.mxu3 }
 0x5bb   :  { %v2653_v42 = vld [vmem:[%s4734_s1 + $0x50] sm:$0xf] }
 0x5bc   :  { %v519_v44 = vpop.f32.mrf.mxu0 }
 0x5bd   :  { %v765_v46 = vadd.f32 %v519_v44, %v3535_v20  ;;  %v548_v47 = vpop.f32.mrf.mxu1  ;;  %v2636_v44 = vld [vmem:[%s4734_s1 + $0x24] sm:$0xf] }
 0x5be   :  { %v549_v48 = vadd.f32 %v548_v47, %v342_v43  ;;  %v3164_v43 = vld [vmem:[%s4734_s1 + $0x54] sm:$0xf0]  ;;  %v3159_v47 = vld [vmem:[%s4734_s1 + $0x28] sm:$0xf0] }
 0x5bf   :  { %3302 = vtanh.f32 %v765_v46  ;;  %408 = vrot.lane.b32.xlu1 %v406_v45, %s3469_s26  ;;  %v766_v60 = vmul.f32 0.5, %v765_v46  ;;  %v2650_v45 = vor.u32 %v3161_v37, %v2647_v38  ;;  %v2654_v46 = vor.u32 %v3164_v43, %v2653_v42 }
 0x5c0   :  { %3304 = vtanh.f32 %v549_v48  ;;  %v552_v53 = vmul.f32 0.5, %v549_v48  ;;  %v2645_v48 = vld [vmem:[%s4734_s1 + $0x40] sm:$0xf] }
 0x5c1   :  { %640 = vmatpush.bf16.msrb.mxu3 %v2654_v46  ;;  %654 = vmatpush.bf16.msra.mxu0 %v2650_v45 }
 0x5c2   :  { %3306 = vtanh.f32 %v552_v53 }
 0x5c3   :  { %3308 = vtanh.f32 %v766_v60  ;;  %v2710_v60 = vld [vmem:[%s4734_s1 + $0x14] sm:$0xf] }
 0x5c4   :  { %v521_v49 = vpop.f32.mrf.mxu0  ;;  %3310 = vtanh.f32 %v395_v62 }
 0x5c5   :  { %v3303_v50 = vpop.eup %3302  ;;  %v550_v51 = vpop.f32.mrf.mxu1  ;;  %v3162_v49 = vld [vmem:[%s4734_s1 + $0x44] sm:$0xf0] }
 0x5c6   :  { %v3305_v52 = vpop.eup %3304  ;;  %773 = vrot.lane.b32.xlu0 %v3303_v50, %s3470_s8  ;;  %v2637_v50 = vor.u32 %v3159_v47, %v2636_v44  ;;  %v2646_v51 = vor.u32 %v3162_v49, %v2645_v48 }
 0x5c7   :  { %559 = vrot.lane.b32.xlu2 %v3305_v52, %s3470_s8  ;;  %v396_v52 = vmul.f32 0.5, %v3722_v14  ;;  %v3176_v14 = vld [vmem:[%s4734_s1 + $0x18] sm:$0xf0] }
 0x5c8   :  { %v3307_v54 = vpop.eup %3306  ;;  %604 = vmatpush.bf16.msra.mxu2 %v2637_v50  ;;  %641 = vmatpush.bf16.msrb.mxu3 %v2646_v51  ;;  %v2711_v62 = vor.u32 %v3176_v14, %v2710_v60 }
 0x5c9   :  { %v554_v55 = vadd.f32 1.0, %v3307_v54  ;;  %v3309_v63 = vpop.eup %3308 }
 0x5ca   :  { %v768_v0 = vadd.f32 1.0, %v3309_v63  ;;  %v3311_v2 = vpop.eup %3310  ;;  %v3175_v63 = vld [vmem:[%s4734_s1 + $0x8] sm:$0xf0]  ;;  %846 = vmatpush.bf16.msrb.mxu0 %v2711_v62  ;;  %v2687_v62 = vld [vmem:[%s4734_s1 + $0x90] sm:$0xf] }
 0x5cb   :  { %v555_v56 = vmul.f32 0.5, %v554_v55  ;;  %v399_v5 = vadd.f32 1.0, %v3311_v2 }
 0x5cc   :  { %v769_v1 = vmul.f32 0.5, %v768_v0  ;;  %v2701_v0 = vld [vmem:[%s4734_s1 + $0x30] sm:$0xf] }
 0x5cd   :  { %v401_v7 = vmul.f32 0.5, %v399_v5  ;;  %v557_v39 = vmul.f32 %v555_v56, %v3599_v24 }
 0x5ce   :  { %v771_v11 = vmul.f32 %v769_v1, %v3595_v18 }
 0x621   :  { %v560_v57 = vpop.permute.xlu2 %559 }
 0x622   :  { %v562_v59 = vmul.f32 %v560_v57, %v555_v56 }
 0x624   :  { %564 = vrot.lane.b32.xlu2 %v562_v59, %s3470_s8 }
 0x629   :  { %v418_v6 = vpop.permute.xlu1 %417 }
 0x62a   :  { %v420_v8 = vmul.f32 %v418_v6, %v401_v7 }
 0x62c   :  { %410 = vrot.lane.b32.xlu2 %v407_v61, %s3469_s26  ;;  %v2706_v61 = vld [vmem:[%s4734_s1 + $0x4] sm:$0xf] }
 0x62d   :  { %v2707_v5 = vor.u32 %v3175_v63, %v2706_v61  ;;  %v3172_v63 = vld [vmem:[%s4734_s1 + $0x94] sm:$0xf0] }
 0x62f   :  { %847 = vmatpush.bf16.msrb.mxu0 %v2707_v5  ;;  %v3169_v5 = vld [vmem:[%s4734_s1 + $0x84] sm:$0xf] }
 0x631   :  { %v409_v13 = vpop.permute.xlu1 %408 }
 0x638   :  { %v774_v3 = vpop.permute.xlu0 %773 }
 0x639   :  { %v776_v4 = vmul.f32 %v774_v3, %v769_v1  ;;  %v2697_v3 = vld [vmem:[%s4734_s1 + $0x20] sm:$0xf] }
 0x63b   :  { %778 = vrot.lane.b32.xlu0 %v776_v4, %s3470_s8  ;;  %v3173_v4 = vld [vmem:[%s4734_s1 + $0x24] sm:$0xf0] }
 0x63c   :  { %v2698_v6 = vor.u32 %v3173_v4, %v2697_v3  ;;  %v3170_v3 = vld [vmem:[%s4734_s1 + $0x84] sm:$0xf0] }
 0x643   :  { %422 = vrot.lane.b32.xlu0 %v420_v8, %s3471_s25 }
 0x67e   :  { %v565_v41 = vpop.permute.xlu2 %564 }
 0x67f   :  { %v3736_v9 = vadd.f32 %v565_v41, %v557_v39 }
 0x681   :  { %3312 = vtanh.f32 %v3736_v9 }
 0x686   :  { %v411_v15 = vpop.permute.xlu2 %410 }
 0x687   :  { %v3313_v10 = vpop.eup %3312  ;;  %v413_v17 = vsel %vm412_vm2, %v409_v13, %v411_v15 }
 0x688   :  { %570 = vrot.lane.b32.xlu1 %v3313_v10, %s3470_s8  ;;  %v415_v24 = vmul.f32 %v413_v17, %v401_v7 }
 0x6ad   :  { %v779_v12 = vpop.permute.xlu0 %778 }
 0x6ae   :  { %v3741_v16 = vadd.f32 %v779_v12, %v771_v11 }
 0x6b0   :  { %3314 = vtanh.f32 %v3741_v16 }
 0x6b5   :  { %v423_v19 = vpop.permute.xlu0 %422 }
 0x6b6   :  { %v3315_v21 = vpop.eup %3314  ;;  %v3744_v22 = vadd.f32 %v423_v19, %v415_v24 }
 0x6b7   :  { %784 = vrot.lane.b32.xlu2 %v3315_v21, %s3470_s8 }
 0x6b8   :  { %3316 = vtanh.f32 %v3744_v22 }
 0x6b9   :  { %3318 = vtanh.f32 %v396_v52 }
 0x6be   :  { %v3317_v23 = vpop.eup %3316 }
 0x6bf   :  { %428 = vrot.lane.b32.xlu0 %v3317_v23, %s3471_s25  ;;  %v3319_v53 = vpop.eup %3318 }
 0x6c0   :  { %v400_v54 = vadd.f32 1.0, %v3319_v53 }
 0x6c2   :  { %v402_v55 = vmul.f32 0.5, %v400_v54 }
 0x6fa   :  { %v571_v18 = vpop.permute.xlu1 %570 }
 0x6fb   :  { %v573_v25 = vmul.f32 %v571_v18, %v555_v56 }
 0x6fd   :  { %v574_v26 = vpack.c.bf16 %v573_v25, %v573_v25 }
 0x6ff   :  { %580 = vrot.lane.b32.xlu1 %v574_v26, %s3471_s25 }
 0x711   :  { %v785_v27 = vpop.permute.xlu2 %784 }
 0x712   :  { %v787_v28 = vmul.f32 %v785_v27, %v769_v1  ;;  %v3174_v1 = vld [vmem:[%s4734_s1 + $0x34] sm:$0xf0] }
 0x713   :  { %v2702_v2 = vor.u32 %v3174_v1, %v2701_v0  ;;  %v2688_v0 = vor.u32 %v3172_v63, %v2687_v62  ;;  %v2689_v1 = vld [vmem:[%s4734_s1 + $0x98] sm:$0xf0]  ;;  %v3179_v62 = vld [vmem:[%s4734_s1 + $0x44] sm:$0xf]  ;;  %v2726_v63 = vld [vmem:[%s4734_s1 + $0x48] sm:$0xf0] }
 0x714   :  { %v788_v31 = vpack.c.bf16 %v787_v28, %v787_v28 }
 0x715   :  { %742 = vmatpush.bf16.msrb.mxu1 %v2688_v0  ;;  %v2729_v0 = vor.u32 %v3179_v62, %v2726_v63 }
 0x716   :  { %794 = vrot.lane.b32.xlu2 %v788_v31, %s3471_s25 }
 0x731   :  { %v429_v56 = vpop.permute.xlu0 %428 }
 0x732   :  { %v431_v57 = vmul.f32 %v429_v56, %v402_v55 }
 0x734   :  { %v432_v59 = vpack.c.bf16 %v431_v57, %v431_v57  ;;  %463 = vst.msk [vmem:[#allocation2] sm:$0xf] %vm462_vm3, %v431_v57 }
 0x736   :  { %2614 = vmatmul.msk.bf16.vlgmr.msrb.gmra.mxu2 %vm189_vm1, %v432_v59  ;;  %2615 = vmatmul.msk.bf16.vlgmr.msra.gmra.mxu3 %vm189_vm1, %v432_v59 }
 0x737   :  { %817 = vmatpush.bf16.msra.mxu3 %v2702_v2  ;;  %v2679_v2 = vld [vmem:[%s4734_s1 + $0x80] sm:$0xf] }
 0x73b   :  { %818 = vmatpush.bf16.msra.mxu3 %v2698_v6  ;;  %v2681_v6 = vld [vmem:[%s4734_s1 + $0x88] sm:$0xf0] }
 0x770   :  { %v795_v8 = vpop.permute.xlu2 %794 }
 0x771   :  { %v581_v7 = vpop.permute.xlu1 %580 }
 0x772   :  { %2642 = vmatmul.msk.bf16.vlgmr.msra.gmra.mxu2 %vm43_vm0, %v581_v7  ;;  %2659 = vmatmul.msk.bf16.vlgmr.msrb.gmra.mxu3 %vm43_vm0, %v581_v7 }
 0x773   :  { %2660 = vmatmul.msk.bf16.vlgmr.msra.gmra.mxu0 %vm43_vm0, %v581_v7  ;;  %v2680_v7 = vor.u32 %v3170_v3, %v2679_v2 }
 0x775   :  { %743 = vmatpush.bf16.msrb.mxu1 %v2680_v7 }
 0x782   :  { %2703 = vmatmul.msk.bf16.vlgmr.msra.gmra.mxu3 %vm43_vm0, %v795_v8 }
 0x783   :  { %2712 = vmatmul.msk.bf16.vlgmr.msrb.gmra.mxu0 %vm43_vm0, %v795_v8  ;;  %v2684_v8 = vor.u32 %v3169_v5, %v2681_v6  ;;  %v2780_v5 = vld [vmem:[%s4734_s1 + $0x30] sm:$0xf]  ;;  %v3192_v6 = vld [vmem:[%s4734_s1 + $0x34] sm:$0xf0] }
 0x784   :  { %v2781_v7 = vor.u32 %v3192_v6, %v2780_v5 }
 0x7b9   :  { %v445_v39 = vpop.f32.mrf.mxu2  ;;  %v458_v41 = vpop.f32.mrf.mxu3 }
 0x7ba   :  { %v459_v12 = vadd.f32 %v458_v41, %v3718_v30  ;;  %v446_v17 = vadd.f32 %v445_v39, %v3716_v29  ;;  %v2671_v39 = vld [vmem:[%s4734_s1 + $0x70] sm:$0xf]  ;;  %v3168_v41 = vld [vmem:[%s4734_s1 + $0x74] sm:$0xf0] }
 0x7c1   :  { %v447_v10 = vpop.f32.mrf.mxu2  ;;  %v460_v11 = vpop.f32.mrf.mxu3 }
 0x7c2   :  { %v3167_v10 = vld [vmem:[%s4734_s1 + $0x74] sm:$0xf]  ;;  %v2673_v11 = vld [vmem:[%s4734_s1 + $0x78] sm:$0xf0] }
 0x7f0   :  { %v656_v13 = vpop.f32.mrf.mxu0 }
 0x7f1   :  { %v3821_v15 = vadd.f32 %v656_v13, %v459_v12  ;;  %v2672_v12 = vor.u32 %v3168_v41, %v2671_v39  ;;  %v2676_v13 = vor.u32 %v3167_v10, %v2673_v11  ;;  %v3191_v39 = vld [vmem:[%s4734_s1 + $0x24] sm:$0xf0]  ;;  %v2789_v41 = vld [vmem:[%s4734_s1 + $0x14] sm:$0xf]  ;;  %v3194_v11 = vld [vmem:[%s4734_s1 + $0x18] sm:$0xf0] }
 0x7f3   :  { %3320 = vtanh.f32 %v3821_v15  ;;  %744 = vmatpush.bf16.msrb.mxu1 %v2672_v12  ;;  %v2785_v12 = vld [vmem:[%s4734_s1 + $0x4] sm:$0xf] }
 0x7f5   :  { %v606_v24 = vpop.f32.mrf.mxu2  ;;  %v643_v19 = vpop.f32.mrf.mxu3 }
 0x7f6   :  { %v644_v21 = vadd.f32 %v643_v19, %v446_v17  ;;  %v607_v27 = vadd.f32 %v3586_v58, %v606_v24 }
 0x7f8   :  { %v658_v23 = vpop.f32.mrf.mxu0  ;;  %v660_v38 = vmul.f32 0.5, %v644_v21  ;;  %v2663_v21 = vld [vmem:[%s4734_s1 + $0x60] sm:$0xf] }
 0x7f9   :  { %v3321_v18 = vpop.eup %3320  ;;  %v3166_v23 = vld [vmem:[%s4734_s1 + $0x64] sm:$0xf0] }
 0x7fa   :  { %671 = vrot.lane.b32.xlu2 %v3321_v18, %s3471_s25  ;;  %v3165_v18 = vld [vmem:[%s4734_s1 + $0x64] sm:$0xf] }
 0x7fd   :  { %v608_v25 = vpop.f32.mrf.mxu2  ;;  %v645_v26 = vpop.f32.mrf.mxu3 }
 0x7fe   :  { %v2664_v25 = vor.u32 %v3166_v23, %v2663_v21  ;;  %v2665_v26 = vld [vmem:[%s4734_s1 + $0x68] sm:$0xf0] }
 0x800   :  { %v849_v28 = vpop.f32.mrf.mxu0  ;;  %745 = vmatpush.bf16.msrb.mxu1 %v2664_v25 }
 0x801   :  { %v850_v31 = vadd.f32 %v849_v28, %v607_v27  ;;  %v2668_v28 = vor.u32 %v3165_v18, %v2665_v26 }
 0x803   :  { %3322 = vtanh.f32 %v850_v31  ;;  %v853_v46 = vmul.f32 0.5, %v850_v31 }
 0x805   :  { %v820_v32 = vpop.f32.mrf.mxu3 }
 0x806   :  { %v1066_v33 = vadd.f32 %v820_v32, %v3535_v20 }
 0x808   :  { %3324 = vtanh.f32 %v1066_v33  ;;  %v851_v34 = vpop.f32.mrf.mxu0  ;;  %v1067_v47 = vmul.f32 0.5, %v1066_v33 }
 0x809   :  { %v3323_v35 = vpop.eup %3322  ;;  %3326 = vtanh.f32 %v660_v38 }
 0x80a   :  { %860 = vrot.lane.b32.xlu0 %v3323_v35, %s3470_s8  ;;  %3328 = vtanh.f32 %v853_v46 }
 0x80b   :  { %3330 = vtanh.f32 %v1067_v47  ;;  %v2732_v47 = vld [vmem:[%s4734_s1 + $0x50] sm:$0xf] }
 0x80d   :  { %v822_v36 = vpop.f32.mrf.mxu3 }
 0x80e   :  { %v3325_v37 = vpop.eup %3324 }
 0x80f   :  { %1074 = vrot.lane.b32.xlu1 %v3325_v37, %s3470_s8  ;;  %v3327_v40 = vpop.eup %3326 }
 0x810   :  { %v664_v42 = vadd.f32 1.0, %v3327_v40  ;;  %v3329_v48 = vpop.eup %3328 }
 0x811   :  { %v855_v49 = vadd.f32 1.0, %v3329_v48  ;;  %v3331_v50 = vpop.eup %3330  ;;  %v3182_v48 = vld [vmem:[%s4734_s1 + $0x54] sm:$0xf0] }
 0x812   :  { %v666_v43 = vmul.f32 0.5, %v664_v42  ;;  %v1069_v52 = vadd.f32 1.0, %v3331_v50  ;;  %v2733_v50 = vor.u32 %v3182_v48, %v2732_v47 }
 0x813   :  { %v3831_v51 = vmul.f32 0.5, %v855_v49  ;;  %v2724_v49 = vld [vmem:[%s4734_s1 + $0x40] sm:$0xf] }
 0x814   :  { %v3835_v55 = vmul.f32 0.5, %v1069_v52  ;;  %v669_v59 = vmul.f32 %v666_v43, %v3744_v22  ;;  %v3171_v22 = vld [vmem:[%s4734_s1 + $0x94] sm:$0xf] }
 0x815   :  { %v2692_v4 = vor.u32 %v3171_v22, %v2689_v1  ;;  %v858_v17 = vmul.f32 %v3831_v51, %v3736_v9  ;;  %v2719_v52 = vld [vmem:[%s4734_s1 + $0x34] sm:$0xf] }
 0x816   :  { %v1072_v9 = vmul.f32 %v3835_v55, %v3741_v16  ;;  %v661_v16 = vmul.f32 0.5, %v3821_v15 }
 0x817   :  { %755 = vmatpush.bf16.msrb.mxu2 %v2692_v4 }
 0x81b   :  { %756 = vmatpush.bf16.msrb.mxu2 %v2684_v8  ;;  %v2776_v8 = vld [vmem:[%s4734_s1 + $0x20] sm:$0xf] }
 0x81c   :  { %v2777_v10 = vor.u32 %v3191_v39, %v2776_v8  ;;  %v2766_v39 = vld [vmem:[%s4734_s1 + $0x90] sm:$0xf] }
 0x81f   :  { %757 = vmatpush.bf16.msrb.mxu2 %v2676_v13  ;;  %v3193_v13 = vld [vmem:[%s4734_s1 + $0x8] sm:$0xf0] }
 0x823   :  { %758 = vmatpush.bf16.msrb.mxu2 %v2668_v28 }
 0x827   :  { %941 = vmatpush.bf16.msra.mxu2 %v2733_v50 }
 0x854   :  { %v672_v44 = vpop.permute.xlu2 %671 }
 0x855   :  { %v674_v45 = vmul.f32 %v672_v44, %v666_v43 }
 0x857   :  { %676 = vrot.lane.b32.xlu2 %v674_v45, %s3471_s25 }
 0x87c   :  { %v861_v53 = vpop.permute.xlu0 %860 }
 0x87d   :  { %v863_v54 = vmul.f32 %v861_v53, %v3831_v51  ;;  %v3178_v53 = vld [vmem:[%s4734_s1 + $0x38] sm:$0xf0] }
 0x87f   :  { %865 = vrot.lane.b32.xlu0 %v863_v54, %s3470_s8  ;;  %v2720_v54 = vor.u32 %v3178_v53, %v2719_v52 }
 0x881   :  { %v1075_v56 = vpop.permute.xlu1 %1074  ;;  %904 = vmatpush.bf16.msra.mxu1 %v2720_v54 }
 0x882   :  { %v1077_v57 = vmul.f32 %v1075_v56, %v3835_v55  ;;  %v2734_v56 = vld [vmem:[%s4734_s1 + $0x58] sm:$0xf0] }
 0x884   :  { %1079 = vrot.lane.b32.xlu1 %v1077_v57, %s3470_s8  ;;  %v2715_v57 = vld [vmem:[%s4734_s1 + $0x24] sm:$0xf] }
 0x8b1   :  { %v677_v60 = vpop.permute.xlu2 %676 }
 0x8b2   :  { %v3840_v14 = vadd.f32 %v677_v60, %v669_v59 }
 0x8b4   :  { %3332 = vtanh.f32 %v3840_v14 }
 0x8ba   :  { %v3333_v61 = vpop.eup %3332 }
 0x8bb   :  { %682 = vrot.lane.b32.xlu2 %v3333_v61, %s3471_s25  ;;  %v3177_v61 = vld [vmem:[%s4734_s1 + $0x28] sm:$0xf0] }
 0x8bc   :  { %v2716_v22 = vor.u32 %v3177_v61, %v2715_v57 }
 0x8be   :  { %905 = vmatpush.bf16.msra.mxu1 %v2716_v22 }
 0x8f1   :  { %v866_v24 = vpop.permute.xlu0 %865 }
 0x8f2   :  { %v3882_v19 = vadd.f32 %v866_v24, %v858_v17  ;;  %v2790_v17 = vor.u32 %v3194_v11, %v2789_v41  ;;  %v2786_v24 = vor.u32 %v3193_v13, %v2785_v12  ;;  %v3190_v41 = vld [vmem:[%s4734_s1 + $0x94] sm:$0xf0]  ;;  %v2768_v11 = vld [vmem:[%s4734_s1 + $0x98] sm:$0xf0]  ;;  %v2758_v12 = vld [vmem:[%s4734_s1 + $0x80] sm:$0xf] }
 0x8f3   :  { %v3188_v13 = vld [vmem:[%s4734_s1 + $0x84] sm:$0xf0] }
 0x8f4   :  { %3334 = vtanh.f32 %v3882_v19 }
 0x8f6   :  { %v1080_v27 = vpop.permute.xlu1 %1079 }
 0x8f7   :  { %v3899_v31 = vadd.f32 %v1080_v27, %v1072_v9 }
 0x8f9   :  { %3336 = vtanh.f32 %v3899_v31 }
 0x8fa   :  { %v3335_v32 = vpop.eup %3334  ;;  %3338 = vtanh.f32 %v661_v16 }
 0x8fb   :  { %871 = vrot.lane.b32.xlu0 %v3335_v32, %s3470_s8 }
 0x8ff   :  { %v3337_v33 = vpop.eup %3336 }
 0x900   :  { %1085 = vrot.lane.b32.xlu1 %v3337_v33, %s3470_s8  ;;  %v3339_v34 = vpop.eup %3338 }
 0x901   :  { %v665_v35 = vadd.f32 1.0, %v3339_v34 }
 0x903   :  { %v667_v36 = vmul.f32 0.5, %v665_v35 }
 0x915   :  { %v683_v37 = vpop.permute.xlu2 %682 }
 0x916   :  { %v685_v38 = vmul.f32 %v683_v37, %v667_v36 }
 0x918   :  { %v686_v40 = vpack.c.bf16 %v685_v38, %v685_v38  ;;  %764 = vst.msk [vmem:[#allocation2 + $0x4] sm:$0xf] %vm462_vm3, %v685_v38 }
 0x91a   :  { %2693 = vmatmul.msk.bf16.vlgmr.msrb.gmra.mxu1 %vm189_vm1, %v686_v40  ;;  %2694 = vmatmul.msk.bf16.vlgmr.msrb.gmra.mxu2 %vm189_vm1, %v686_v40 }
 0x96d   :  { %v872_v42 = vpop.permute.xlu0 %871 }
 0x96e   :  { %v874_v43 = vmul.f32 %v872_v42, %v3831_v51  ;;  %v3180_v51 = vld [vmem:[%s4734_s1 + $0x44] sm:$0xf0] }
 0x96f   :  { %v2725_v59 = vor.u32 %v3180_v51, %v2724_v49 }
 0x970   :  { %v875_v44 = vpack.c.bf16 %v874_v43, %v874_v43 }
 0x971   :  { %942 = vmatpush.bf16.msra.mxu2 %v2725_v59 }
 0x972   :  { %881 = vrot.lane.b32.xlu0 %v875_v44, %s3471_s25  ;;  %v1086_v15 = vpop.permute.xlu1 %1085 }
 0x973   :  { %v1088_v45 = vmul.f32 %v1086_v15, %v3835_v55  ;;  %v3181_v55 = vld [vmem:[%s4734_s1 + $0x54] sm:$0xf] }
 0x974   :  { %v2737_v60 = vor.u32 %v3181_v55, %v2734_v56 }
 0x975   :  { %v1089_v46 = vpack.c.bf16 %v1088_v45, %v1088_v45  ;;  %1118 = vmatpush.bf16.msrb.mxu2 %v2781_v7 }
 0x976   :  { %954 = vmatpush.bf16.msrb.mxu3 %v2737_v60 }
 0x977   :  { %1095 = vrot.lane.b32.xlu1 %v1089_v46, %s3471_s25 }
 0x979   :  { %1119 = vmatpush.bf16.msrb.mxu2 %v2777_v10  ;;  %v2767_v10 = vor.u32 %v3190_v41, %v2766_v39  ;;  %v2864_v39 = vld [vmem:[%s4734_s1 + $0x4] sm:$0xf] }
 0x97a   :  { %955 = vmatpush.bf16.msrb.mxu3 %v2729_v0 }
 0x97b   :  { %1043 = vmatpush.bf16.msra.mxu0 %v2767_v10  ;;  %v3210_v10 = vld [vmem:[%s4734_s1 + $0x34] sm:$0xf0] }
 0x97e   :  { %1147 = vmatpush.bf16.msra.mxu3 %v2790_v17 }
 0x982   :  { %1148 = vmatpush.bf16.msra.mxu3 %v2786_v24  ;;  %v3187_v24 = vld [vmem:[%s4734_s1 + $0x84] sm:$0xf] }
 0x997   :  { %v747_v1 = vpop.f32.mrf.mxu1 }
 0x998   :  { %v748_v9 = vadd.f32 %v747_v1, %v3716_v29 }
 0x99d   :  { %v760_v2 = vpop.f32.mrf.mxu2 }
 0x99e   :  { %v761_v38 = vadd.f32 %v760_v2, %v3718_v30 }
 0x99f   :  { %v749_v3 = vpop.f32.mrf.mxu1 }
 0x9a5   :  { %v762_v4 = vpop.f32.mrf.mxu2 }
 0x9e4   :  { %v882_v21 = vpop.permute.xlu0 %881 }
 0x9e5   :  { %2721 = vmatmul.msk.bf16.vlgmr.msra.gmra.mxu1 %vm43_vm0, %v882_v21  ;;  %2738 = vmatmul.msk.bf16.vlgmr.msra.gmra.mxu2 %vm43_vm0, %v882_v21 }
 0x9e6   :  { %2739 = vmatmul.msk.bf16.vlgmr.msrb.gmra.mxu3 %vm43_vm0, %v882_v21  ;;  %v2760_v21 = vld [vmem:[%s4734_s1 + $0x88] sm:$0xf0] }
 0x9e9   :  { %v1096_v23 = vpop.permute.xlu1 %1095 }
 0x9f5   :  { %2782 = vmatmul.msk.bf16.vlgmr.msrb.gmra.mxu2 %vm43_vm0, %v1096_v23 }
 0x9f6   :  { %2791 = vmatmul.msk.bf16.vlgmr.msra.gmra.mxu3 %vm43_vm0, %v1096_v23  ;;  %v2759_v23 = vor.u32 %v3188_v13, %v2758_v12 }
 0x9f8   :  { %1044 = vmatpush.bf16.msra.mxu0 %v2759_v23 }
 0xa62   :  { %v907_v18 = vpop.f32.mrf.mxu1 }
 0xa63   :  { %v908_v16 = vadd.f32 %v3586_v58, %v907_v18  ;;  %v2763_v18 = vor.u32 %v3187_v24, %v2760_v21  ;;  %v3209_v24 = vld [vmem:[%s4734_s1 + $0x24] sm:$0xf0] }
 0xa68   :  { %v944_v25 = vpop.f32.mrf.mxu2 }
 0xa69   :  { %v945_v26 = vadd.f32 %v944_v25, %v748_v9  ;;  %v957_v27 = vpop.f32.mrf.mxu3  ;;  %v2750_v9 = vld [vmem:[%s4734_s1 + $0x70] sm:$0xf]  ;;  %v3186_v25 = vld [vmem:[%s4734_s1 + $0x74] sm:$0xf0] }
 0xa6a   :  { %v909_v28 = vpop.f32.mrf.mxu1  ;;  %v3981_v40 = vadd.f32 %v957_v27, %v761_v38  ;;  %v2752_v27 = vld [vmem:[%s4734_s1 + $0x78] sm:$0xf0] }
 0xa6b   :  { %v961_v46 = vmul.f32 0.5, %v945_v26  ;;  %v3185_v26 = vld [vmem:[%s4734_s1 + $0x74] sm:$0xf]  ;;  %v2751_v28 = vor.u32 %v3186_v25, %v2750_v9 }
 0xa6d   :  { %1045 = vmatpush.bf16.msra.mxu0 %v2751_v28 }
 0xa70   :  { %v946_v32 = vpop.f32.mrf.mxu2 }
 0xa71   :  { %v959_v33 = vpop.f32.mrf.mxu3  ;;  %v2755_v32 = vor.u32 %v3185_v26, %v2752_v27 }
 0xa72   :  { %v2742_v33 = vld [vmem:[%s4734_s1 + $0x60] sm:$0xf] }
 0xa78   :  { %v1121_v34 = vpop.f32.mrf.mxu2 }
 0xa79   :  { %v1367_v35 = vadd.f32 %v1121_v34, %v3535_v20  ;;  %v1150_v36 = vpop.f32.mrf.mxu3  ;;  %v3183_v34 = vld [vmem:[%s4734_s1 + $0x64] sm:$0xf] }
 0xa7a   :  { %v1151_v37 = vadd.f32 %v1150_v36, %v908_v16  ;;  %v3184_v16 = vld [vmem:[%s4734_s1 + $0x64] sm:$0xf0] }
 0xa7b   :  { %3340 = vtanh.f32 %v1367_v35  ;;  %v1368_v54 = vmul.f32 0.5, %v1367_v35  ;;  %v2743_v36 = vor.u32 %v3184_v16, %v2742_v33 }
 0xa7c   :  { %3342 = vtanh.f32 %v1151_v37  ;;  %v1154_v45 = vmul.f32 0.5, %v1151_v37  ;;  %v2744_v37 = vld [vmem:[%s4734_s1 + $0x68] sm:$0xf0] }
 0xa7d   :  { %3344 = vtanh.f32 %v3981_v40  ;;  %1046 = vmatpush.bf16.msra.mxu0 %v2743_v36 }
 0xa7e   :  { %3346 = vtanh.f32 %v1154_v45  ;;  %v2811_v45 = vld [vmem:[%s4734_s1 + $0x50] sm:$0xf] }
 0xa7f   :  { %3348 = vtanh.f32 %v961_v46 }
 0xa80   :  { %v1123_v42 = vpop.f32.mrf.mxu2  ;;  %3350 = vtanh.f32 %v1368_v54 }
 0xa81   :  { %v3341_v43 = vpop.eup %3340  ;;  %v1152_v44 = vpop.f32.mrf.mxu3  ;;  %v2747_v42 = vor.u32 %v3183_v34, %v2744_v37 }
 0xa82   :  { %v3343_v15 = vpop.eup %3342  ;;  %1375 = vrot.lane.b32.xlu0 %v3341_v43, %s3470_s8  ;;  %v962_v44 = vmul.f32 0.5, %v3981_v40  ;;  %v3199_v40 = vld [vmem:[%s4734_s1 + $0x54] sm:$0xf] }
 0xa83   :  { %1161 = vrot.lane.b32.xlu2 %v3343_v15, %s3470_s8  ;;  %v3345_v58 = vpop.eup %3344  ;;  %v2798_v15 = vld [vmem:[%s4734_s1 + $0x34] sm:$0xf] }
 0xa84   :  { %v3347_v47 = vpop.eup %3346 }
 0xa85   :  { %v1156_v48 = vadd.f32 1.0, %v3347_v47  ;;  %v3349_v50 = vpop.eup %3348  ;;  %v3200_v47 = vld [vmem:[%s4734_s1 + $0x54] sm:$0xf0] }
 0xa86   :  { %v965_v53 = vadd.f32 1.0, %v3349_v50  ;;  %v3351_v59 = vpop.eup %3350 }
 0xa87   :  { %v3987_v49 = vmul.f32 0.5, %v1156_v48  ;;  %v1370_v60 = vadd.f32 1.0, %v3351_v59  ;;  %v2813_v48 = vld [vmem:[%s4734_s1 + $0x58] sm:$0xf0] }
 0xa88   :  { %v967_v55 = vmul.f32 0.5, %v965_v53  ;;  %v2816_v50 = vor.u32 %v3199_v40, %v2813_v48  ;;  %v2803_v53 = vld [vmem:[%s4734_s1 + $0x40] sm:$0xf] }
 0xa89   :  { %v3992_v61 = vmul.f32 0.5, %v1370_v60  ;;  %v1159_v22 = vmul.f32 %v3987_v49, %v3882_v19 }
 0xa8a   :  { %v970_v2 = vmul.f32 %v967_v55, %v3840_v14  ;;  %1255 = vmatpush.bf16.msra.mxu2 %v2816_v50 }
 0xa8b   :  { %972 = vrot.lane.b32.xlu2 %v3345_v58, %s3471_s25  ;;  %v1373_v19 = vmul.f32 %v3992_v61, %v3899_v31  ;;  %v3189_v31 = vld [vmem:[%s4734_s1 + $0x94] sm:$0xf]  ;;  %v3196_v58 = vld [vmem:[%s4734_s1 + $0x38] sm:$0xf0] }
 0xa8c   :  { %v2771_v17 = vor.u32 %v3189_v31, %v2768_v11  ;;  %v2799_v46 = vor.u32 %v3196_v58, %v2798_v15  ;;  %v2859_v31 = vld [vmem:[%s4734_s1 + $0x30] sm:$0xf]  ;;  %v4144_v15 = vld [vmem:[%s4735_s2 + $0x1] ss:$0 sm:$0xff] }
 0xa8d   :  { %v2860_v11 = vor.u32 %v3210_v10, %v2859_v31 }
 0xa8e   :  { %1056 = vmatpush.bf16.msrb.mxu1 %v2771_v17  ;;  %1205 = vmatpush.bf16.msrb.mxu0 %v2799_v46  ;;  %v2855_v17 = vld [vmem:[%s4734_s1 + $0x20] sm:$0xf] }
 0xa8f   :  { %v2856_v21 = vor.u32 %v3209_v24, %v2855_v17  ;;  %v2837_v17 = vld [vmem:[%s4734_s1 + $0x80] sm:$0xf]  ;;  %v3206_v24 = vld [vmem:[%s4734_s1 + $0x84] sm:$0xf0] }
 0xa92   :  { %1057 = vmatpush.bf16.msrb.mxu1 %v2763_v18 }
 0xa96   :  { %1058 = vmatpush.bf16.msrb.mxu1 %v2755_v32 }
 0xa9a   :  { %1059 = vmatpush.bf16.msrb.mxu1 %v2747_v42 }
 0xadd   :  { %v1162_v51 = vpop.permute.xlu2 %1161 }
 0xade   :  { %v1164_v52 = vmul.f32 %v1162_v51, %v3987_v49  ;;  %v2794_v51 = vld [vmem:[%s4734_s1 + $0x24] sm:$0xf] }
 0xae0   :  { %1166 = vrot.lane.b32.xlu1 %v1164_v52, %s3470_s8  ;;  %v3195_v52 = vld [vmem:[%s4734_s1 + $0x28] sm:$0xf0] }
 0xae1   :  { %v2795_v54 = vor.u32 %v3195_v52, %v2794_v51 }
 0xae3   :  { %1206 = vmatpush.bf16.msrb.mxu0 %v2795_v54 }
 0xae5   :  { %v973_v56 = vpop.permute.xlu2 %972 }
 0xae6   :  { %v975_v57 = vmul.f32 %v973_v56, %v967_v55  ;;  %v3198_v55 = vld [vmem:[%s4734_s1 + $0x44] sm:$0xf0]  ;;  %v3197_v56 = vld [vmem:[%s4734_s1 + $0x44] sm:$0xf] }
 0xae7   :  { %v2804_v60 = vor.u32 %v3198_v55, %v2803_v53 }
 0xae8   :  { %977 = vrot.lane.b32.xlu1 %v975_v57, %s3471_s25  ;;  %v2805_v57 = vld [vmem:[%s4734_s1 + $0x48] sm:$0xf0] }
 0xaf4   :  { %v1376_v62 = vpop.permute.xlu0 %1375 }
 0xaf5   :  { %v1378_v63 = vmul.f32 %v1376_v62, %v3992_v61  ;;  %v2808_v62 = vor.u32 %v3197_v56, %v2805_v57 }
 0xaf7   :  { %1380 = vrot.lane.b32.xlu0 %v1378_v63, %s3470_s8  ;;  %1256 = vmatpush.bf16.msra.mxu2 %v2808_v62 }
 0xb52   :  { %v1167_v0 = vpop.permute.xlu1 %1166 }
 0xb53   :  { %v3998_v1 = vadd.f32 %v1167_v0, %v1159_v22 }
 0xb55   :  { %3352 = vtanh.f32 %v3998_v1 }
 0xb5a   :  { %v978_v3 = vpop.permute.xlu1 %977 }
 0xb5b   :  { %v3353_v4 = vpop.eup %3352  ;;  %v4002_v5 = vadd.f32 %v978_v3, %v970_v2 }
 0xb5c   :  { %1172 = vrot.lane.b32.xlu2 %v3353_v4, %s3470_s8 }
 0xb5d   :  { %3354 = vtanh.f32 %v4002_v5 }
 0xb63   :  { %v3355_v6 = vpop.eup %3354 }
 0xb64   :  { %983 = vrot.lane.b32.xlu1 %v3355_v6, %s3471_s25 }
 0xb69   :  { %v1381_v7 = vpop.permute.xlu0 %1380 }
 0xb6a   :  { %v4009_v8 = vadd.f32 %v1381_v7, %v1373_v19  ;;  %v2868_v7 = vld [vmem:[%s4734_s1 + $0x14] sm:$0xf] }
 0xb6c   :  { %3356 = vtanh.f32 %v4009_v8 }
 0xb6d   :  { %3358 = vtanh.f32 %v962_v44 }
 0xb72   :  { %v3357_v14 = vpop.eup %3356 }
 0xb73   :  { %1386 = vrot.lane.b32.xlu0 %v3357_v14, %s3470_s8  ;;  %v3359_v59 = vpop.eup %3358  ;;  %v3212_v14 = vld [vmem:[%s4734_s1 + $0x18] sm:$0xf0] }
 0xb74   :  { %v966_v63 = vadd.f32 1.0, %v3359_v59  ;;  %v2869_v41 = vor.u32 %v3212_v14, %v2868_v7 }
 0xb76   :  { %v968_v22 = vmul.f32 0.5, %v966_v63  ;;  %1448 = vmatpush.bf16.msrb.mxu2 %v2869_v41 }
 0xbb6   :  { %v1173_v35 = vpop.permute.xlu2 %1172 }
 0xbb7   :  { %v1175_v38 = vmul.f32 %v1173_v35, %v3987_v49  ;;  %v2812_v49 = vor.u32 %v3200_v47, %v2811_v45 }
 0xbb9   :  { %v1176_v43 = vpack.c.bf16 %v1175_v38, %v1175_v38  ;;  %1242 = vmatpush.bf16.msra.mxu1 %v2812_v49 }
 0xbbb   :  { %1182 = vrot.lane.b32.xlu2 %v1176_v43, %s3471_s25 }
 0xbbd   :  { %1243 = vmatpush.bf16.msra.mxu1 %v2804_v60 }
 0xbd6   :  { %v984_v0 = vpop.permute.xlu1 %983 }
 0xbd7   :  { %v986_v2 = vmul.f32 %v984_v0, %v968_v22 }
 0xbd9   :  { %v987_v3 = vpack.c.bf16 %v986_v2, %v986_v2  ;;  %1065 = vst.msk [vmem:[#allocation2 + $0x8] sm:$0xf] %vm462_vm3, %v986_v2 }
 0xbdb   :  { %2772 = vmatmul.msk.bf16.vlgmr.msra.gmra.mxu0 %vm189_vm1, %v987_v3  ;;  %2773 = vmatmul.msk.bf16.vlgmr.msrb.gmra.mxu1 %vm189_vm1, %v987_v3 }
 0xbdc   :  { %1419 = vmatpush.bf16.msrb.mxu1 %v2860_v11  ;;  %v3208_v11 = vld [vmem:[%s4734_s1 + $0x94] sm:$0xf0] }
 0xbe0   :  { %1420 = vmatpush.bf16.msrb.mxu1 %v2856_v21 }
 0xbe5   :  { %v1387_v4 = vpop.permute.xlu0 %1386 }
 0xbe6   :  { %v1389_v6 = vmul.f32 %v1387_v4, %v3992_v61  ;;  %v3211_v61 = vld [vmem:[%s4734_s1 + $0x8] sm:$0xf0] }
 0xbe7   :  { %v2865_v12 = vor.u32 %v3211_v61, %v2864_v39 }
 0xbe8   :  { %v1390_v19 = vpack.c.bf16 %v1389_v6, %v1389_v6 }
 0xbe9   :  { %1449 = vmatpush.bf16.msrb.mxu2 %v2865_v12 }
 0xbea   :  { %1396 = vrot.lane.b32.xlu0 %v1390_v19, %s3471_s25 }
 0xc15   :  { %v1183_v13 = vpop.permute.xlu2 %1182 }
 0xc16   :  { %2800 = vmatmul.msk.bf16.vlgmr.msrb.gmra.mxu0 %vm43_vm0, %v1183_v13  ;;  %2817 = vmatmul.msk.bf16.vlgmr.msra.gmra.mxu1 %vm43_vm0, %v1183_v13 }
 0xc17   :  { %2818 = vmatmul.msk.bf16.vlgmr.msra.gmra.mxu2 %vm43_vm0, %v1183_v13  ;;  %v2847_v13 = vld [vmem:[%s4734_s1 + $0x98] sm:$0xf0] }
 0xc58   :  { %v1048_v23 = vpop.f32.mrf.mxu0  ;;  %v1061_v18 = vpop.f32.mrf.mxu1 }
 0xc59   :  { %v1049_v27 = vadd.f32 %v1048_v23, %v3716_v29  ;;  %v1062_v16 = vadd.f32 %v1061_v18, %v3718_v30  ;;  %v2838_v23 = vor.u32 %v3206_v24, %v2837_v17  ;;  %v2947_v17 = vld [vmem:[%s4734_s1 + $0x14] sm:$0xf]  ;;  %v3230_v24 = vld [vmem:[%s4734_s1 + $0x18] sm:$0xf0] }
 0xc5c   :  { %v1397_v9 = vpop.permute.xlu0 %1396 }
 0xc5d   :  { %2861 = vmatmul.msk.bf16.vlgmr.msrb.gmra.mxu1 %vm43_vm0, %v1397_v9  ;;  %2870 = vmatmul.msk.bf16.vlgmr.msrb.gmra.mxu2 %vm43_vm0, %v1397_v9 }
 0xc60   :  { %v1050_v25 = vpop.f32.mrf.mxu0  ;;  %v1063_v26 = vpop.f32.mrf.mxu1 }
 0xc93   :  { %v1208_v28 = vpop.f32.mrf.mxu0  ;;  %v1245_v32 = vpop.f32.mrf.mxu1 }
 0xc94   :  { %v1246_v33 = vadd.f32 %v1245_v32, %v1049_v27  ;;  %v1209_v58 = vadd.f32 %v4144_v15, %v1208_v28  ;;  %v3205_v27 = vld [vmem:[%s4734_s1 + $0x84] sm:$0xf]  ;;  %v2839_v28 = vld [vmem:[%s4734_s1 + $0x88] sm:$0xf0] }
 0xc95   :  { %v2842_v32 = vor.u32 %v3205_v27, %v2839_v28  ;;  %v2934_v28 = vld [vmem:[%s4734_s1 + $0x20] sm:$0xf] }
 0xc96   :  { %v1262_v50 = vmul.f32 0.5, %v1246_v33  ;;  %v3204_v33 = vld [vmem:[%s4734_s1 + $0x74] sm:$0xf0] }
 0xc9a   :  { %v1258_v34 = vpop.f32.mrf.mxu2 }
 0xc9b   :  { %v4136_v35 = vadd.f32 %v1258_v34, %v1062_v16  ;;  %v1210_v36 = vpop.f32.mrf.mxu0  ;;  %v1247_v37 = vpop.f32.mrf.mxu1  ;;  %v3203_v16 = vld [vmem:[%s4734_s1 + $0x74] sm:$0xf] }
 0xc9c   :  { %v2831_v36 = vld [vmem:[%s4734_s1 + $0x78] sm:$0xf0] }
 0xc9d   :  { %3360 = vtanh.f32 %v4136_v35  ;;  %v2834_v37 = vor.u32 %v3203_v16, %v2831_v36 }
 0xca2   :  { %v1260_v38 = vpop.f32.mrf.mxu2 }
 0xca3   :  { %v3361_v42 = vpop.eup %3360  ;;  %v2821_v38 = vld [vmem:[%s4734_s1 + $0x60] sm:$0xf] }
 0xca4   :  { %1273 = vrot.lane.b32.xlu0 %v3361_v42, %s3471_s25  ;;  %v3202_v42 = vld [vmem:[%s4734_s1 + $0x64] sm:$0xf0] }
 0xcda   :  { %v1422_v43 = vpop.f32.mrf.mxu1 }
 0xcdb   :  { %v1668_v44 = vadd.f32 %v1422_v43, %v3535_v20  ;;  %v3201_v43 = vld [vmem:[%s4734_s1 + $0x64] sm:$0xf] }
 0xcdd   :  { %3362 = vtanh.f32 %v1668_v44  ;;  %v1669_v56 = vmul.f32 0.5, %v1668_v44  ;;  %v2822_v44 = vor.u32 %v3202_v42, %v2821_v38 }
 0xce0   :  { %v1451_v45 = vpop.f32.mrf.mxu2 }
 0xce1   :  { %v1452_v46 = vadd.f32 %v1451_v45, %v1209_v58  ;;  %v2823_v58 = vld [vmem:[%s4734_s1 + $0x68] sm:$0xf0] }
 0xce2   :  { %v1424_v47 = vpop.f32.mrf.mxu1  ;;  %v2826_v45 = vor.u32 %v3201_v43, %v2823_v58 }
 0xce3   :  { %v3363_v40 = vpop.eup %3362  ;;  %3364 = vtanh.f32 %v1452_v46  ;;  %v1455_v22 = vmul.f32 0.5, %v1452_v46  ;;  %v1263_v46 = vmul.f32 0.5, %v4136_v35 }
 0xce4   :  { %1676 = vrot.lane.b32.xlu2 %v3363_v40, %s3470_s8  ;;  %3366 = vtanh.f32 %v1262_v50 }
 0xce5   :  { %3368 = vtanh.f32 %v1669_v56 }
 0xce6   :  { %3370 = vtanh.f32 %v1455_v22  ;;  %v3215_v22 = vld [vmem:[%s4734_s1 + $0x44] sm:$0xf] }
 0xce8   :  { %v1453_v48 = vpop.f32.mrf.mxu2 }
 0xce9   :  { %v3365_v49 = vpop.eup %3364 }
 0xcea   :  { %1462 = vrot.lane.b32.xlu1 %v3365_v49, %s3470_s8  ;;  %v3367_v51 = vpop.eup %3366 }
 0xceb   :  { %v1266_v52 = vadd.f32 1.0, %v3367_v51  ;;  %v3369_v57 = vpop.eup %3368 }
 0xcec   :  { %v1671_v59 = vadd.f32 1.0, %v3369_v57  ;;  %v3371_v0 = vpop.eup %3370  ;;  %v3217_v57 = vld [vmem:[%s4734_s1 + $0x54] sm:$0xf] }
 0xced   :  { %v1268_v53 = vmul.f32 0.5, %v1266_v52  ;;  %v1457_v2 = vadd.f32 1.0, %v3371_v0  ;;  %v2884_v0 = vld [vmem:[%s4734_s1 + $0x48] sm:$0xf0] }
 0xcee   :  { %v4150_v60 = vmul.f32 0.5, %v1671_v59  ;;  %v2892_v59 = vld [vmem:[%s4734_s1 + $0x58] sm:$0xf0] }
 0xcef   :  { %v4154_v3 = vmul.f32 0.5, %v1457_v2  ;;  %v1271_v19 = vmul.f32 %v1268_v53, %v4002_v5  ;;  %v2845_v5 = vld [vmem:[%s4734_s1 + $0x90] sm:$0xf] }
 0xcf0   :  { %v1674_v41 = vmul.f32 %v4150_v60, %v4009_v8  ;;  %v3207_v8 = vld [vmem:[%s4734_s1 + $0x94] sm:$0xf]  ;;  %v2846_v12 = vor.u32 %v3208_v11, %v2845_v5 }
 0xcf1   :  { %v2850_v21 = vor.u32 %v3207_v8, %v2847_v13  ;;  %v1460_v18 = vmul.f32 %v4154_v3, %v3998_v1  ;;  %v2829_v1 = vld [vmem:[%s4734_s1 + $0x70] sm:$0xf] }
 0xcf2   :  { %1344 = vmatpush.bf16.msrb.mxu3 %v2846_v12  ;;  %v2830_v34 = vor.u32 %v3204_v33, %v2829_v1 }
 0xcf3   :  { %1357 = vmatpush.bf16.msra.mxu0 %v2850_v21  ;;  %v2943_v21 = vld [vmem:[%s4734_s1 + $0x4] sm:$0xf] }
 0xcf6   :  { %1345 = vmatpush.bf16.msrb.mxu3 %v2838_v23  ;;  %v2948_v23 = vor.u32 %v3230_v24, %v2947_v17  ;;  %v3226_v17 = vld [vmem:[%s4734_s1 + $0x94] sm:$0xf0] }
 0xcf7   :  { %1358 = vmatpush.bf16.msra.mxu0 %v2842_v32  ;;  %v3227_v32 = vld [vmem:[%s4734_s1 + $0x24] sm:$0xf0] }
 0xcf8   :  { %v2935_v33 = vor.u32 %v3227_v32, %v2934_v28 }
 0xcfa   :  { %1346 = vmatpush.bf16.msrb.mxu3 %v2830_v34 }
 0xcfb   :  { %1359 = vmatpush.bf16.msra.mxu0 %v2834_v37 }
 0xcfe   :  { %1347 = vmatpush.bf16.msrb.mxu3 %v2822_v44 }
 0xcff   :  { %1360 = vmatpush.bf16.msra.mxu0 %v2826_v45 }
 0xd16   :  { %v1274_v54 = vpop.permute.xlu0 %1273 }
 0xd17   :  { %v1276_v55 = vmul.f32 %v1274_v54, %v1268_v53 }
 0xd19   :  { %1278 = vrot.lane.b32.xlu0 %v1276_v55, %s3471_s25 }
 0xd3e   :  { %v1677_v62 = vpop.permute.xlu2 %1676 }
 0xd3f   :  { %v1679_v63 = vmul.f32 %v1677_v62, %v4150_v60  ;;  %v2895_v62 = vor.u32 %v3217_v57, %v2892_v59 }
 0xd41   :  { %1681 = vrot.lane.b32.xlu2 %v1679_v63, %s3470_s8  ;;  %v3214_v63 = vld [vmem:[%s4734_s1 + $0x38] sm:$0xf0]  ;;  %1556 = vmatpush.bf16.msra.mxu1 %v2895_v62 }
 0xd5c   :  { %v1463_v4 = vpop.permute.xlu1 %1462 }
 0xd5d   :  { %v1465_v6 = vmul.f32 %v1463_v4, %v4154_v3  ;;  %v3218_v4 = vld [vmem:[%s4734_s1 + $0x54] sm:$0xf0] }
 0xd5f   :  { %1467 = vrot.lane.b32.xlu1 %v1465_v6, %s3470_s8  ;;  %v2873_v6 = vld [vmem:[%s4734_s1 + $0x24] sm:$0xf] }
 0xd8b   :  { %v1279_v7 = vpop.permute.xlu0 %1278 }
 0xd8c   :  { %v4159_v14 = vadd.f32 %v1279_v7, %v1271_v19  ;;  %v2887_v19 = vor.u32 %v3215_v22, %v2884_v0 }
 0xd8e   :  { %3372 = vtanh.f32 %v4159_v14  ;;  %1557 = vmatpush.bf16.msra.mxu1 %v2887_v19 }
 0xd92   :  { %1749 = vmatpush.bf16.msrb.mxu1 %v2948_v23  ;;  %v2916_v23 = vld [vmem:[%s4734_s1 + $0x80] sm:$0xf] }
 0xd94   :  { %v3373_v39 = vpop.eup %3372 }
 0xd95   :  { %1284 = vrot.lane.b32.xlu0 %v3373_v39, %s3471_s25  ;;  %v3213_v39 = vld [vmem:[%s4734_s1 + $0x28] sm:$0xf0] }
 0xd9b   :  { %v1682_v61 = vpop.permute.xlu2 %1681 }
 0xd9c   :  { %v4165_v31 = vadd.f32 %v1682_v61, %v1674_v41  ;;  %v2882_v41 = vld [vmem:[%s4734_s1 + $0x40] sm:$0xf]  ;;  %v3216_v61 = vld [vmem:[%s4734_s1 + $0x44] sm:$0xf0] }
 0xd9d   :  { %v2883_v5 = vor.u32 %v3216_v61, %v2882_v41 }
 0xd9e   :  { %3374 = vtanh.f32 %v4165_v31 }
 0xda4   :  { %v3375_v10 = vpop.eup %3374 }
 0xda5   :  { %1687 = vrot.lane.b32.xlu2 %v3375_v10, %s3470_s8  ;;  %v2874_v10 = vor.u32 %v3213_v39, %v2873_v6 }
 0xdd1   :  { %v1468_v9 = vpop.permute.xlu1 %1467 }
 0xdd2   :  { %v4189_v25 = vadd.f32 %v1468_v9, %v1460_v18  ;;  %v3229_v18 = vld [vmem:[%s4734_s1 + $0x8] sm:$0xf0]  ;;  %v2938_v9 = vld [vmem:[%s4734_s1 + $0x30] sm:$0xf] }
 0xdd3   :  { %v2944_v1 = vor.u32 %v3229_v18, %v2943_v21  ;;  %v2926_v21 = vld [vmem:[%s4734_s1 + $0x98] sm:$0xf0]  ;;  %v3224_v18 = vld [vmem:[%s4734_s1 + $0x84] sm:$0xf0] }
 0xdd4   :  { %3376 = vtanh.f32 %v4189_v25  ;;  %v2917_v28 = vor.u32 %v3224_v18, %v2916_v23 }
 0xdd5   :  { %3378 = vtanh.f32 %v1263_v46  ;;  %1750 = vmatpush.bf16.msrb.mxu1 %v2944_v1  ;;  %v2908_v1 = vld [vmem:[%s4734_s1 + $0x70] sm:$0xf] }
 0xdda   :  { %v3377_v26 = vpop.eup %3376 }
 0xddb   :  { %1473 = vrot.lane.b32.xlu1 %v3377_v26, %s3470_s8  ;;  %v3379_v47 = vpop.eup %3378  ;;  %v3228_v26 = vld [vmem:[%s4734_s1 + $0x34] sm:$0xf0] }
 0xddc   :  { %v1267_v50 = vadd.f32 1.0, %v3379_v47  ;;  %v2939_v27 = vor.u32 %v3228_v26, %v2938_v9  ;;  %v3223_v26 = vld [vmem:[%s4734_s1 + $0x84] sm:$0xf] }
 0xdde   :  { %v1269_v51 = vmul.f32 0.5, %v1267_v50 }
 0xdff   :  { %v1688_v40 = vpop.permute.xlu2 %1687 }
 0xe00   :  { %v1690_v48 = vmul.f32 %v1688_v40, %v4150_v60  ;;  %v2877_v60 = vld [vmem:[%s4734_s1 + $0x34] sm:$0xf] }
 0xe01   :  { %v2878_v2 = vor.u32 %v3214_v63, %v2877_v60 }
 0xe02   :  { %v1691_v49 = vpack.c.bf16 %v1690_v48, %v1690_v48 }
 0xe03   :  { %1506 = vmatpush.bf16.msra.mxu3 %v2878_v2 }
 0xe04   :  { %1697 = vrot.lane.b32.xlu2 %v1691_v49, %s3471_s25 }
 0xe07   :  { %v1285_v52 = vpop.permute.xlu0 %1284  ;;  %1507 = vmatpush.bf16.msra.mxu3 %v2874_v10 }
 0xe08   :  { %v1287_v53 = vmul.f32 %v1285_v52, %v1269_v51 }
 0xe0a   :  { %v1288_v54 = vpack.c.bf16 %v1287_v53, %v1287_v53  ;;  %1366 = vst.msk [vmem:[#allocation2 + $0xc] sm:$0xf] %vm462_vm3, %v1287_v53 }
 0xe0c   :  { %2851 = vmatmul.msk.bf16.vlgmr.msrb.gmra.mxu3 %vm189_vm1, %v1288_v54  ;;  %2852 = vmatmul.msk.bf16.vlgmr.msra.gmra.mxu0 %vm189_vm1, %v1288_v54 }
 0xe4d   :  { %v1474_v35 = vpop.permute.xlu1 %1473 }
 0xe4e   :  { %v1476_v55 = vmul.f32 %v1474_v35, %v4154_v3  ;;  %v2890_v3 = vld [vmem:[%s4734_s1 + $0x50] sm:$0xf] }
 0xe4f   :  { %v2891_v7 = vor.u32 %v3218_v4, %v2890_v3 }
 0xe50   :  { %v1477_v56 = vpack.c.bf16 %v1476_v55, %v1476_v55 }
 0xe51   :  { %1543 = vmatpush.bf16.msrb.mxu0 %v2891_v7 }
 0xe52   :  { %1483 = vrot.lane.b32.xlu1 %v1477_v56, %s3471_s25 }
 0xe55   :  { %1544 = vmatpush.bf16.msrb.mxu0 %v2883_v5 }
 0xe59   :  { %1720 = vmatpush.bf16.msra.mxu0 %v2939_v27  ;;  %v2918_v27 = vld [vmem:[%s4734_s1 + $0x88] sm:$0xf0] }
 0xe5a   :  { %v2921_v32 = vor.u32 %v3223_v26, %v2918_v27  ;;  %v3017_v26 = vld [vmem:[%s4734_s1 + $0x30] sm:$0xf]  ;;  %v3246_v27 = vld [vmem:[%s4734_s1 + $0x34] sm:$0xf0] }
 0xe5d   :  { %1721 = vmatpush.bf16.msra.mxu0 %v2935_v33  ;;  %v3222_v33 = vld [vmem:[%s4734_s1 + $0x74] sm:$0xf0] }
 0xe5e   :  { %v1698_v34 = vpop.permute.xlu2 %1697 }
 0xe89   :  { %v1362_v11 = vpop.f32.mrf.mxu0 }
 0xe8a   :  { %v1363_v37 = vadd.f32 %v1362_v11, %v3718_v30 }
 0xe8f   :  { %v1349_v8 = vpop.f32.mrf.mxu3 }
 0xe90   :  { %v1350_v36 = vadd.f32 %v1349_v8, %v3716_v29 }
 0xe91   :  { %v1364_v12 = vpop.f32.mrf.mxu0 }
 0xe97   :  { %v1351_v13 = vpop.f32.mrf.mxu3 }
 0xe98   :  { %v2924_v13 = vld [vmem:[%s4734_s1 + $0x90] sm:$0xf] }
 0xe99   :  { %v2925_v24 = vor.u32 %v3226_v17, %v2924_v13  ;;  %v3233_v13 = vld [vmem:[%s4734_s1 + $0x44] sm:$0xf]  ;;  %v2963_v17 = vld [vmem:[%s4734_s1 + $0x48] sm:$0xf0] }
 0xe9b   :  { %1645 = vmatpush.bf16.msra.mxu2 %v2925_v24  ;;  %v2966_v24 = vor.u32 %v3233_v13, %v2963_v17 }
 0xe9f   :  { %1646 = vmatpush.bf16.msra.mxu2 %v2917_v28  ;;  %v3013_v28 = vld [vmem:[%s4734_s1 + $0x20] sm:$0xf] }
 0xec4   :  { %v1484_v16 = vpop.permute.xlu1 %1483 }
 0xec5   :  { %2879 = vmatmul.msk.bf16.vlgmr.msra.gmra.mxu3 %vm43_vm0, %v1484_v16  ;;  %2896 = vmatmul.msk.bf16.vlgmr.msrb.gmra.mxu0 %vm43_vm0, %v1484_v16 }
 0xec6   :  { %2897 = vmatmul.msk.bf16.vlgmr.msra.gmra.mxu1 %vm43_vm0, %v1484_v16  ;;  %v3221_v16 = vld [vmem:[%s4734_s1 + $0x74] sm:$0xf] }
 0xed5   :  { %2940 = vmatmul.msk.bf16.vlgmr.msra.gmra.mxu0 %vm43_vm0, %v1698_v34 }
 0xed6   :  { %2949 = vmatmul.msk.bf16.vlgmr.msrb.gmra.mxu1 %vm43_vm0, %v1698_v34  ;;  %v2910_v34 = vld [vmem:[%s4734_s1 + $0x78] sm:$0xf0] }
 0xf42   :  { %v1546_v38 = vpop.f32.mrf.mxu0 }
 0xf43   :  { %v1547_v42 = vadd.f32 %v1546_v38, %v1350_v36  ;;  %v1559_v43 = vpop.f32.mrf.mxu1  ;;  %v2909_v36 = vor.u32 %v3222_v33, %v2908_v1  ;;  %v3245_v1 = vld [vmem:[%s4734_s1 + $0x24] sm:$0xf0]  ;;  %v3026_v33 = vld [vmem:[%s4734_s1 + $0x14] sm:$0xf] }
 0xf44   :  { %v4298_v44 = vadd.f32 %v1559_v43, %v1363_v37  ;;  %v2913_v37 = vor.u32 %v3221_v16, %v2910_v34  ;;  %v3248_v16 = vld [vmem:[%s4734_s1 + $0x18] sm:$0xf0] }
 0xf45   :  { %v1563_v56 = vmul.f32 0.5, %v1547_v42  ;;  %1647 = vmatpush.bf16.msra.mxu2 %v2909_v36  ;;  %v3027_v34 = vor.u32 %v3248_v16, %v3026_v33  ;;  %v3022_v36 = vld [vmem:[%s4734_s1 + $0x4] sm:$0xf]  ;;  %v3244_v33 = vld [vmem:[%s4734_s1 + $0x94] sm:$0xf0] }
 0xf46   :  { %3380 = vtanh.f32 %v4298_v44  ;;  %v3243_v16 = vld [vmem:[%s4734_s1 + $0x94] sm:$0xf] }
 0xf48   :  { %v1509_v58 = vpop.f32.mrf.mxu3 }
 0xf49   :  { %v1510_v48 = vadd.f32 %v4144_v15, %v1509_v58 }
 0xf4a   :  { %v1548_v45 = vpop.f32.mrf.mxu0 }
 0xf4b   :  { %v1561_v46 = vpop.f32.mrf.mxu1 }
 0xf4c   :  { %v3381_v47 = vpop.eup %3380 }
 0xf4d   :  { %1574 = vrot.lane.b32.xlu2 %v3381_v47, %s3471_s25  ;;  %v2900_v47 = vld [vmem:[%s4734_s1 + $0x60] sm:$0xf] }
 0xf50   :  { %v1511_v40 = vpop.f32.mrf.mxu3 }
 0xf52   :  { %v1723_v49 = vpop.f32.mrf.mxu0 }
 0xf53   :  { %v1969_v50 = vadd.f32 %v1723_v49, %v3535_v20  ;;  %v1752_v51 = vpop.f32.mrf.mxu1 }
 0xf54   :  { %v1753_v52 = vadd.f32 %v1752_v51, %v1510_v48  ;;  %v2902_v48 = vld [vmem:[%s4734_s1 + $0x68] sm:$0xf0] }
 0xf55   :  { %3382 = vtanh.f32 %v1969_v50  ;;  %v1970_v22 = vmul.f32 0.5, %v1969_v50 }
 0xf56   :  { %3384 = vtanh.f32 %v1753_v52  ;;  %v1756_v0 = vmul.f32 0.5, %v1753_v52  ;;  %v1564_v52 = vmul.f32 0.5, %v4298_v44 }
 0xf57   :  { %3386 = vtanh.f32 %v1563_v56 }
 0xf58   :  { %3388 = vtanh.f32 %v1970_v22 }
 0xf59   :  { %3390 = vtanh.f32 %v1756_v0  ;;  %v2969_v0 = vld [vmem:[%s4734_s1 + $0x50] sm:$0xf] }
 0xf5a   :  { %v1725_v53 = vpop.f32.mrf.mxu0 }
 0xf5b   :  { %v3383_v54 = vpop.eup %3382  ;;  %v1754_v35 = vpop.f32.mrf.mxu1 }
 0xf5c   :  { %v3385_v55 = vpop.eup %3384  ;;  %1977 = vrot.lane.b32.xlu1 %v3383_v54, %s3470_s8 }
 0xf5d   :  { %1763 = vrot.lane.b32.xlu0 %v3385_v55, %s3470_s8  ;;  %v3387_v57 = vpop.eup %3386 }
 0xf5e   :  { %v1567_v59 = vadd.f32 1.0, %v3387_v57  ;;  %v3389_v2 = vpop.eup %3388 }
 0xf5f   :  { %v3391_v3 = vpop.eup %3390  ;;  %v1972_v4 = vadd.f32 1.0, %v3389_v2  ;;  %v3236_v2 = vld [vmem:[%s4734_s1 + $0x54] sm:$0xf0] }
 0xf60   :  { %v1569_v60 = vmul.f32 0.5, %v1567_v59  ;;  %v1758_v6 = vadd.f32 1.0, %v3391_v3  ;;  %v2961_v3 = vld [vmem:[%s4734_s1 + $0x40] sm:$0xf] }
 0xf61   :  { %v4307_v19 = vmul.f32 0.5, %v1972_v4  ;;  %v2970_v4 = vor.u32 %v3236_v2, %v2969_v0 }
 0xf62   :  { %v4309_v39 = vmul.f32 0.5, %v1758_v6  ;;  %v1572_v5 = vmul.f32 %v1569_v60, %v4159_v14  ;;  %v3225_v14 = vld [vmem:[%s4734_s1 + $0x94] sm:$0xf]  ;;  %v3234_v6 = vld [vmem:[%s4734_s1 + $0x44] sm:$0xf0] }
 0xf63   :  { %v2929_v9 = vor.u32 %v3225_v14, %v2926_v21  ;;  %v1975_v38 = vmul.f32 %v4307_v19, %v4165_v31  ;;  %v3220_v31 = vld [vmem:[%s4734_s1 + $0x64] sm:$0xf0] }
 0xf64   :  { %v1761_v43 = vmul.f32 %v4309_v39, %v4189_v25  ;;  %v3219_v25 = vld [vmem:[%s4734_s1 + $0x64] sm:$0xf]  ;;  %v2901_v40 = vor.u32 %v3220_v31, %v2900_v47 }
 0xf65   :  { %1658 = vmatpush.bf16.msrb.mxu3 %v2929_v9  ;;  %v2905_v49 = vor.u32 %v3219_v25, %v2902_v48 }
 0xf66   :  { %1648 = vmatpush.bf16.msra.mxu2 %v2901_v40 }
 0xf69   :  { %1659 = vmatpush.bf16.msrb.mxu3 %v2921_v32  ;;  %v3018_v32 = vor.u32 %v3246_v27, %v3017_v26 }
 0xf6d   :  { %1660 = vmatpush.bf16.msrb.mxu3 %v2913_v37  ;;  %v3247_v37 = vld [vmem:[%s4734_s1 + $0x8] sm:$0xf0] }
 0xf71   :  { %1661 = vmatpush.bf16.msrb.mxu3 %v2905_v49 }
 0xf75   :  { %1844 = vmatpush.bf16.msra.mxu3 %v2970_v4 }
 0xfa7   :  { %v1575_v62 = vpop.permute.xlu2 %1574 }
 0xfa8   :  { %v1577_v63 = vmul.f32 %v1575_v62, %v1569_v60 }
 0xfaa   :  { %1579 = vrot.lane.b32.xlu2 %v1577_v63, %s3471_s25 }
 0xfce   :  { %v1978_v7 = vpop.permute.xlu1 %1977 }
 0xfcf   :  { %v1980_v41 = vmul.f32 %v1978_v7, %v4307_v19  ;;  %v1764_v61 = vpop.permute.xlu0 %1763  ;;  %v3232_v7 = vld [vmem:[%s4734_s1 + $0x38] sm:$0xf0] }
 0xfd0   :  { %v1766_v10 = vmul.f32 %v1764_v61, %v4309_v39  ;;  %v2971_v61 = vld [vmem:[%s4734_s1 + $0x58] sm:$0xf0] }
 0xfd1   :  { %1982 = vrot.lane.b32.xlu1 %v1980_v41, %s3470_s8  ;;  %v3235_v41 = vld [vmem:[%s4734_s1 + $0x54] sm:$0xf] }
 0xfd2   :  { %1768 = vrot.lane.b32.xlu0 %v1766_v10, %s3470_s8  ;;  %v2952_v10 = vld [vmem:[%s4734_s1 + $0x24] sm:$0xf] }
0x1004   :  { %v1580_v11 = vpop.permute.xlu2 %1579 }
0x1005   :  { %v4316_v8 = vadd.f32 %v1580_v11, %v1572_v5  ;;  %v2962_v5 = vor.u32 %v3234_v6, %v2961_v3  ;;  %v2974_v11 = vor.u32 %v3235_v41, %v2971_v61 }
0x1007   :  { %3392 = vtanh.f32 %v4316_v8  ;;  %1857 = vmatpush.bf16.msrb.mxu0 %v2974_v11  ;;  %1845 = vmatpush.bf16.msra.mxu3 %v2962_v5 }
0x100b   :  { %1858 = vmatpush.bf16.msrb.mxu0 %v2966_v24 }
0x100d   :  { %v3393_v12 = vpop.eup %3392 }
0x100e   :  { %1585 = vrot.lane.b32.xlu2 %v3393_v12, %s3471_s25  ;;  %v3231_v12 = vld [vmem:[%s4734_s1 + $0x28] sm:$0xf0] }
0x100f   :  { %v2953_v14 = vor.u32 %v3231_v12, %v2952_v10  ;;  %2050 = vmatpush.bf16.msra.mxu0 %v3027_v34 }
0x1043   :  { %v1983_v42 = vpop.permute.xlu1 %1982 }
0x1044   :  { %v4360_v58 = vadd.f32 %v1983_v42, %v1975_v38  ;;  %v1769_v45 = vpop.permute.xlu0 %1768  ;;  %v3014_v38 = vor.u32 %v3245_v1, %v3013_v28  ;;  %v3023_v42 = vor.u32 %v3247_v37, %v3022_v36  ;;  %v2995_v36 = vld [vmem:[%s4734_s1 + $0x80] sm:$0xf]  ;;  %v3242_v37 = vld [vmem:[%s4734_s1 + $0x84] sm:$0xf0] }
0x1045   :  { %v4362_v46 = vadd.f32 %v1769_v45, %v1761_v43 }
0x1046   :  { %3394 = vtanh.f32 %v4360_v58  ;;  %2051 = vmatpush.bf16.msra.mxu0 %v3023_v42  ;;  %v3241_v42 = vld [vmem:[%s4734_s1 + $0x84] sm:$0xf] }
0x1047   :  { %3396 = vtanh.f32 %v4362_v46 }
0x1048   :  { %3398 = vtanh.f32 %v1564_v52 }
0x104c   :  { %v3395_v50 = vpop.eup %3394 }
0x104d   :  { %v3397_v51 = vpop.eup %3396  ;;  %1988 = vrot.lane.b32.xlu1 %v3395_v50, %s3470_s8 }
0x104e   :  { %1774 = vrot.lane.b32.xlu0 %v3397_v51, %s3470_s8  ;;  %v3399_v53 = vpop.eup %3398 }
0x104f   :  { %v1568_v54 = vadd.f32 1.0, %v3399_v53 }
0x1051   :  { %v1570_v35 = vmul.f32 0.5, %v1568_v54 }
0x1068   :  { %v1586_v55 = vpop.permute.xlu2 %1585 }
0x1069   :  { %v1588_v56 = vmul.f32 %v1586_v55, %v1570_v35 }
0x106b   :  { %v1589_v57 = vpack.c.bf16 %v1588_v56, %v1588_v56  ;;  %1667 = vst.msk [vmem:[#allocation2 + $0x10] sm:$0xf] %vm462_vm3, %v1588_v56 }
0x106d   :  { %2930 = vmatmul.msk.bf16.vlgmr.msra.gmra.mxu2 %vm189_vm1, %v1589_v57  ;;  %2931 = vmatmul.msk.bf16.vlgmr.msrb.gmra.mxu3 %vm189_vm1, %v1589_v57 }
0x106e   :  { %2021 = vmatpush.bf16.msrb.mxu3 %v3018_v32 }
0x1072   :  { %2022 = vmatpush.bf16.msrb.mxu3 %v3014_v38 }
0x10bf   :  { %v1989_v59 = vpop.permute.xlu1 %1988 }
0x10c0   :  { %v1991_v60 = vmul.f32 %v1989_v59, %v4307_v19  ;;  %v1775_v62 = vpop.permute.xlu0 %1774  ;;  %v2956_v19 = vld [vmem:[%s4734_s1 + $0x34] sm:$0xf] }
0x10c1   :  { %v1777_v63 = vmul.f32 %v1775_v62, %v4309_v39  ;;  %v2957_v39 = vor.u32 %v3232_v7, %v2956_v19 }
0x10c2   :  { %v1992_v44 = vpack.c.bf16 %v1991_v60, %v1991_v60 }
0x10c3   :  { %v1778_v22 = vpack.c.bf16 %v1777_v63, %v1777_v63  ;;  %1807 = vmatpush.bf16.msrb.mxu2 %v2957_v39 }
0x10c4   :  { %1998 = vrot.lane.b32.xlu1 %v1992_v44, %s3471_s25 }
0x10c5   :  { %1784 = vrot.lane.b32.xlu0 %v1778_v22, %s3471_s25 }
0x10c7   :  { %1808 = vmatpush.bf16.msrb.mxu2 %v2953_v14 }
0x10f0   :  { %v1650_v21 = vpop.f32.mrf.mxu2  ;;  %v1663_v23 = vpop.f32.mrf.mxu3 }
0x10f1   :  { %v1664_v47 = vadd.f32 %v1663_v23, %v3718_v30  ;;  %v1651_v40 = vadd.f32 %v1650_v21, %v3716_v29 }
0x10f8   :  { %v1652_v18 = vpop.f32.mrf.mxu2  ;;  %v1665_v9 = vpop.f32.mrf.mxu3 }
0x1136   :  { %v1999_v45 = vpop.permute.xlu1 %1998 }
0x1137   :  { %v1785_v43 = vpop.permute.xlu0 %1784 }
0x1138   :  { %2958 = vmatmul.msk.bf16.vlgmr.msrb.gmra.mxu2 %vm43_vm0, %v1785_v43  ;;  %2975 = vmatmul.msk.bf16.vlgmr.msra.gmra.mxu3 %vm43_vm0, %v1785_v43 }
0x1139   :  { %2976 = vmatmul.msk.bf16.vlgmr.msrb.gmra.mxu0 %vm43_vm0, %v1785_v43  ;;  %v2997_v43 = vld [vmem:[%s4734_s1 + $0x88] sm:$0xf0] }
0x1148   :  { %3019 = vmatmul.msk.bf16.vlgmr.msrb.gmra.mxu3 %vm43_vm0, %v1999_v45 }
0x1149   :  { %3028 = vmatmul.msk.bf16.vlgmr.msra.gmra.mxu0 %vm43_vm0, %v1999_v45  ;;  %v2996_v45 = vor.u32 %v3242_v37, %v2995_v36 }
0x11b6   :  { %v1860_v31 = vpop.f32.mrf.mxu0 }
0x11b7   :  { %v4454_v25 = vadd.f32 %v1860_v31, %v1664_v47  ;;  %v3000_v47 = vor.u32 %v3241_v42, %v2997_v43  ;;  %v2987_v31 = vld [vmem:[%s4734_s1 + $0x70] sm:$0xf] }
0x11b9   :  { %3400 = vtanh.f32 %v4454_v25 }
0x11bb   :  { %v1810_v48 = vpop.f32.mrf.mxu2  ;;  %v1847_v49 = vpop.f32.mrf.mxu3 }
0x11bc   :  { %v1848_v50 = vadd.f32 %v1847_v49, %v1651_v40  ;;  %v1811_v35 = vadd.f32 %v4144_v15, %v1810_v48  ;;  %v3240_v40 = vld [vmem:[%s4734_s1 + $0x74] sm:$0xf0]  ;;  %v3239_v48 = vld [vmem:[%s4734_s1 + $0x74] sm:$0xf]  ;;  %v2989_v49 = vld [vmem:[%s4734_s1 + $0x78] sm:$0xf0] }
0x11be   :  { %v1862_v51 = vpop.f32.mrf.mxu0  ;;  %v1864_v0 = vmul.f32 0.5, %v1848_v50  ;;  %v2988_v50 = vor.u32 %v3240_v40, %v2987_v31 }
0x11bf   :  { %v3401_v52 = vpop.eup %3400  ;;  %v2992_v51 = vor.u32 %v3239_v48, %v2989_v49 }
0x11c0   :  { %1875 = vrot.lane.b32.xlu1 %v3401_v52, %s3471_s25 }
0x11c3   :  { %v1812_v53 = vpop.f32.mrf.mxu2  ;;  %v1849_v54 = vpop.f32.mrf.mxu3 }
0x11c6   :  { %v2053_v55 = vpop.f32.mrf.mxu0 }
0x11c7   :  { %v2054_v56 = vadd.f32 %v2053_v55, %v1811_v35  ;;  %v2979_v35 = vld [vmem:[%s4734_s1 + $0x60] sm:$0xf]  ;;  %v3238_v55 = vld [vmem:[%s4734_s1 + $0x64] sm:$0xf0] }
0x11c9   :  { %3402 = vtanh.f32 %v2054_v56  ;;  %v2057_v22 = vmul.f32 0.5, %v2054_v56  ;;  %v3237_v56 = vld [vmem:[%s4734_s1 + $0x64] sm:$0xf] }
0x11cb   :  { %v2024_v57 = vpop.f32.mrf.mxu3 }
0x11cc   :  { %v2270_v59 = vadd.f32 %v2024_v57, %v3535_v20  ;;  %v2980_v57 = vor.u32 %v3238_v55, %v2979_v35 }
0x11ce   :  { %3404 = vtanh.f32 %v2270_v59  ;;  %v2055_v60 = vpop.f32.mrf.mxu0  ;;  %v2271_v10 = vmul.f32 0.5, %v2270_v59  ;;  %v2981_v59 = vld [vmem:[%s4734_s1 + $0x68] sm:$0xf0] }
0x11cf   :  { %v3403_v62 = vpop.eup %3402  ;;  %3406 = vtanh.f32 %v2057_v22  ;;  %v2984_v60 = vor.u32 %v3237_v56, %v2981_v59  ;;  %v3035_v22 = vld [vmem:[%s4734_s1 + $0x34] sm:$0xf] }
0x11d0   :  { %2064 = vrot.lane.b32.xlu2 %v3403_v62, %s3470_s8  ;;  %3408 = vtanh.f32 %v1864_v0  ;;  %v1865_v62 = vmul.f32 0.5, %v4454_v25  ;;  %v3250_v0 = vld [vmem:[%s4734_s1 + $0x38] sm:$0xf0]  ;;  %v3254_v25 = vld [vmem:[%s4734_s1 + $0x54] sm:$0xf0] }
0x11d1   :  { %3410 = vtanh.f32 %v2271_v10  ;;  %v3252_v10 = vld [vmem:[%s4734_s1 + $0x44] sm:$0xf0] }
0x11d3   :  { %v2026_v63 = vpop.f32.mrf.mxu3 }
0x11d4   :  { %v3405_v44 = vpop.eup %3404 }
0x11d5   :  { %2278 = vrot.lane.b32.xlu0 %v3405_v44, %s3470_s8  ;;  %v3407_v2 = vpop.eup %3406 }
0x11d6   :  { %v2059_v3 = vadd.f32 1.0, %v3407_v2  ;;  %v3409_v6 = vpop.eup %3408  ;;  %v3048_v2 = vld [vmem:[%s4734_s1 + $0x50] sm:$0xf] }
0x11d7   :  { %v1868_v20 = vadd.f32 1.0, %v3409_v6  ;;  %v3411_v5 = vpop.eup %3410  ;;  %v3050_v6 = vld [vmem:[%s4734_s1 + $0x58] sm:$0xf0] }
0x11d8   :  { %v2060_v4 = vmul.f32 0.5, %v2059_v3  ;;  %v2273_v11 = vadd.f32 1.0, %v3411_v5  ;;  %v3036_v3 = vor.u32 %v3250_v0, %v3035_v22  ;;  %v3251_v5 = vld [vmem:[%s4734_s1 + $0x44] sm:$0xf] }
0x11d9   :  { %v1870_v39 = vmul.f32 0.5, %v1868_v20  ;;  %v3031_v20 = vld [vmem:[%s4734_s1 + $0x24] sm:$0xf] }
0x11da   :  { %v4465_v12 = vmul.f32 0.5, %v2273_v11  ;;  %v2062_v14 = vmul.f32 %v2060_v4, %v4362_v46  ;;  %v3042_v11 = vld [vmem:[%s4734_s1 + $0x48] sm:$0xf0] }
0x11db   :  { %v1873_v18 = vmul.f32 %v1870_v39, %v4316_v8  ;;  %v3003_v8 = vld [vmem:[%s4734_s1 + $0x90] sm:$0xf] }
0x11dc   :  { %v2276_v46 = vmul.f32 %v4465_v12, %v4360_v58  ;;  %v3004_v34 = vor.u32 %v3244_v33, %v3003_v8  ;;  %v3005_v58 = vld [vmem:[%s4734_s1 + $0x98] sm:$0xf0]  ;;  %v3092_v33 = vld [vmem:[%s4734_s1 + $0x4] sm:$0xf] }
0x11dd   :  { %v3008_v38 = vor.u32 %v3243_v16, %v3005_v58  ;;  %v3263_v16 = vld [vmem:[%s4734_s1 + $0x8] sm:$0xf0] }
0x11de   :  { %1946 = vmatpush.bf16.msra.mxu1 %v3004_v34  ;;  %v3093_v34 = vor.u32 %v3263_v16, %v3092_v33  ;;  %v3060_v16 = vld [vmem:[%s4734_s1 + $0x68] sm:$0xf0] }
0x11df   :  { %1959 = vmatpush.bf16.msra.mxu2 %v3008_v38 }
0x11e2   :  { %1947 = vmatpush.bf16.msra.mxu1 %v2996_v45 }
0x11e3   :  { %1960 = vmatpush.bf16.msra.mxu2 %v3000_v47 }
0x11e6   :  { %1948 = vmatpush.bf16.msra.mxu1 %v2988_v50 }
0x11e7   :  { %1961 = vmatpush.bf16.msra.mxu2 %v2992_v51 }
0x11ea   :  { %1949 = vmatpush.bf16.msra.mxu1 %v2980_v57 }
0x11eb   :  { %1962 = vmatpush.bf16.msra.mxu2 %v2984_v60 }
0x11ee   :  { %2108 = vmatpush.bf16.msrb.mxu1 %v3036_v3 }
0x122a   :  { %v2065_v19 = vpop.permute.xlu2 %2064 }
0x122b   :  { %v2067_v7 = vmul.f32 %v2065_v19, %v2060_v4  ;;  %v3049_v19 = vor.u32 %v3254_v25, %v3048_v2 }
0x122d   :  { %2069 = vrot.lane.b32.xlu2 %v2067_v7, %s3470_s8  ;;  %2145 = vmatpush.bf16.msrb.mxu2 %v3049_v19 }
0x1232   :  { %v1876_v41 = vpop.permute.xlu1 %1875 }
0x1233   :  { %v1878_v61 = vmul.f32 %v1876_v41, %v1870_v39  ;;  %v3249_v39 = vld [vmem:[%s4734_s1 + $0x28] sm:$0xf0]  ;;  %v3040_v41 = vld [vmem:[%s4734_s1 + $0x40] sm:$0xf] }
0x1235   :  { %1880 = vrot.lane.b32.xlu1 %v1878_v61, %s3471_s25  ;;  %v3032_v61 = vor.u32 %v3249_v39, %v3031_v20  ;;  %v3082_v20 = vld [vmem:[%s4734_s1 + $0x90] sm:$0xf]  ;;  %v3262_v39 = vld [vmem:[%s4734_s1 + $0x94] sm:$0xf0] }
0x1237   :  { %2109 = vmatpush.bf16.msrb.mxu1 %v3032_v61  ;;  %v3084_v61 = vld [vmem:[%s4734_s1 + $0x98] sm:$0xf0] }
0x1247   :  { %v2279_v13 = vpop.permute.xlu0 %2278 }
0x1248   :  { %v2281_v17 = vmul.f32 %v2279_v13, %v4465_v12  ;;  %v3041_v13 = vor.u32 %v3252_v10, %v3040_v41  ;;  %v3083_v41 = vor.u32 %v3262_v39, %v3082_v20  ;;  %v3074_v10 = vld [vmem:[%s4734_s1 + $0x80] sm:$0xf]  ;;  %v3266_v39 = vld [vmem:[%s4734_s1 + $0x44] sm:$0xf0] }
0x1249   :  { %v3101_v20 = vld [vmem:[%s4734_s1 + $0x40] sm:$0xf] }
0x124a   :  { %2283 = vrot.lane.b32.xlu0 %v2281_v17, %s3470_s8  ;;  %v3045_v17 = vor.u32 %v3251_v5, %v3042_v11  ;;  %2146 = vmatpush.bf16.msrb.mxu2 %v3041_v13  ;;  %v3260_v5 = vld [vmem:[%s4734_s1 + $0x84] sm:$0xf0]  ;;  %v3259_v13 = vld [vmem:[%s4734_s1 + $0x84] sm:$0xf] }
0x124b   :  { %2247 = vmatpush.bf16.msrb.mxu0 %v3083_v41  ;;  %v3102_v41 = vor.u32 %v3266_v39, %v3101_v20 }
0x1287   :  { %v2070_v24 = vpop.permute.xlu2 %2069 }
0x1288   :  { %v4470_v21 = vadd.f32 %v2070_v24, %v2062_v14 }
0x128a   :  { %3412 = vtanh.f32 %v4470_v21 }
0x1290   :  { %v3413_v23 = vpop.eup %3412 }
0x1291   :  { %2075 = vrot.lane.b32.xlu2 %v3413_v23, %s3470_s8 }
0x12a7   :  { %v1881_v9 = vpop.permute.xlu1 %1880 }
0x12a8   :  { %v4475_v26 = vadd.f32 %v1881_v9, %v1873_v18  ;;  %v3096_v9 = vld [vmem:[%s4734_s1 + $0x14] sm:$0xf] }
0x12aa   :  { %3414 = vtanh.f32 %v4475_v26 }
0x12b0   :  { %v3415_v27 = vpop.eup %3414 }
0x12b1   :  { %1886 = vrot.lane.b32.xlu1 %v3415_v27, %s3471_s25  ;;  %v3264_v27 = vld [vmem:[%s4734_s1 + $0x18] sm:$0xf0] }
0x12bc   :  { %v2284_v28 = vpop.permute.xlu0 %2283 }
0x12bd   :  { %v2286_v32 = vadd.f32 %v2284_v28, %v2276_v46  ;;  %v3097_v46 = vor.u32 %v3264_v27, %v3096_v9  ;;  %v3257_v9 = vld [vmem:[%s4734_s1 + $0x74] sm:$0xf] }
0x12bf   :  { %3416 = vtanh.f32 %v2286_v32 }
0x12c0   :  { %3418 = vtanh.f32 %v1865_v62 }
0x12c5   :  { %v3417_v1 = vpop.eup %3416 }
0x12c6   :  { %2289 = vrot.lane.b32.xlu0 %v3417_v1, %s3470_s8  ;;  %v3419_v63 = vpop.eup %3418 }
0x12c7   :  { %v1869_v44 = vadd.f32 1.0, %v3419_v63 }
0x12c9   :  { %v1871_v14 = vmul.f32 0.5, %v1869_v44 }
0x12eb   :  { %v2076_v52 = vpop.permute.xlu2 %2075 }
0x12ec   :  { %v2078_v53 = vmul.f32 %v2076_v52, %v2060_v4  ;;  %v3253_v4 = vld [vmem:[%s4734_s1 + $0x54] sm:$0xf] }
0x12ed   :  { %v3053_v7 = vor.u32 %v3253_v4, %v3050_v6 }
0x12ee   :  { %v2079_v54 = vpack.c.bf16 %v2078_v53, %v2078_v53 }
0x12ef   :  { %2158 = vmatpush.bf16.msra.mxu3 %v3053_v7 }
0x12f0   :  { %2085 = vrot.lane.b32.xlu2 %v2079_v54, %s3471_s25 }
0x12f3   :  { %2159 = vmatpush.bf16.msra.mxu3 %v3045_v17  ;;  %v3076_v17 = vld [vmem:[%s4734_s1 + $0x88] sm:$0xf0] }
0x1323   :  { %v1887_v24 = vpop.permute.xlu1 %1886 }
0x1324   :  { %v1889_v23 = vmul.f32 %v1887_v24, %v1871_v14  ;;  %v3075_v14 = vor.u32 %v3260_v5, %v3074_v10  ;;  %v3079_v24 = vor.u32 %v3259_v13, %v3076_v17  ;;  %v3281_v13 = vld [vmem:[%s4735_s2 + $0x4] ss:$0 sm:$0xff] }
0x1326   :  { %v1890_v18 = vpack.c.bf16 %v1889_v23, %v1889_v23  ;;  %1968 = vst.msk [vmem:[#allocation2 + $0x14] sm:$0xf] %vm462_vm3, %v1889_v23  ;;  %2248 = vmatpush.bf16.msrb.mxu0 %v3075_v14  ;;  %v3066_v23 = vld [vmem:[%s4734_s1 + $0x70] sm:$0xf] }
0x1328   :  { %3009 = vmatmul.msk.bf16.vlgmr.msra.gmra.mxu1 %vm189_vm1, %v1890_v18  ;;  %3010 = vmatmul.msk.bf16.vlgmr.msra.gmra.mxu2 %vm189_vm1, %v1890_v18  ;;  %v3258_v18 = vld [vmem:[%s4734_s1 + $0x74] sm:$0xf0] }
0x1329   :  { %2322 = vmatpush.bf16.msra.mxu2 %v3097_v46  ;;  %v3067_v27 = vor.u32 %v3258_v18, %v3066_v23  ;;  %v3068_v46 = vld [vmem:[%s4734_s1 + $0x78] sm:$0xf0] }
0x132b   :  { %2249 = vmatpush.bf16.msrb.mxu0 %v3067_v27 }
0x132d   :  { %2323 = vmatpush.bf16.msra.mxu2 %v3093_v34 }
0x1338   :  { %v2290_v28 = vpop.permute.xlu0 %2289 }
0x1339   :  { %v2292_v32 = vmul.f32 %v2290_v28, %v4465_v12  ;;  %v3071_v28 = vor.u32 %v3257_v9, %v3068_v46 }
0x133b   :  { %v2293_v1 = vpack.c.bf16 %v2292_v32, %v2292_v32  ;;  %v3058_v32 = vld [vmem:[%s4734_s1 + $0x60] sm:$0xf] }
0x133d   :  { %2299 = vrot.lane.b32.xlu0 %v2293_v1, %s3471_s25  ;;  %v3256_v1 = vld [vmem:[%s4734_s1 + $0x64] sm:$0xf0] }
0x133e   :  { %v3059_v33 = vor.u32 %v3256_v1, %v3058_v32 }
0x1340   :  { %2250 = vmatpush.bf16.msrb.mxu0 %v3059_v33 }
0x134a   :  { %v2086_v8 = vpop.permute.xlu2 %2085 }
0x134b   :  { %3037 = vmatmul.msk.bf16.vlgmr.msrb.gmra.mxu1 %vm43_vm0, %v2086_v8  ;;  %3054 = vmatmul.msk.bf16.vlgmr.msrb.gmra.mxu2 %vm43_vm0, %v2086_v8 }
0x134c   :  { %3055 = vmatmul.msk.bf16.vlgmr.msra.gmra.mxu3 %vm43_vm0, %v2086_v8  ;;  %v3255_v8 = vld [vmem:[%s4734_s1 + $0x64] sm:$0xf] }
0x134d   :  { %v3063_v34 = vor.u32 %v3255_v8, %v3060_v16 }
0x13a5   :  { %v1951_v12 = vpop.f32.mrf.mxu1 }
0x13a6   :  { %v1952_v43 = vadd.f32 %v1951_v12, %v3716_v29  ;;  %v3131_v12 = vld [vmem:[%s4734_s1 + $0xd0] sm:$0xf] }
0x13ab   :  { %v1964_v58 = vpop.f32.mrf.mxu2 }
0x13ac   :  { %v1965_v45 = vadd.f32 %v1964_v58, %v3718_v30  ;;  %v3272_v58 = vld [vmem:[%s4734_s1 + $0xd4] sm:$0xf0] }
0x13ad   :  { %v1953_v36 = vpop.f32.mrf.mxu1 }
0x13ae   :  { %v3127_v36 = vld [vmem:[%s4734_s1 + $0xc0] sm:$0xf] }
0x13af   :  { %v2300_v37 = vpop.permute.xlu0 %2299 }
0x13b0   :  { %3098 = vmatmul.msk.bf16.vlgmr.msra.gmra.mxu2 %vm43_vm0, %v2300_v37  ;;  %v3132_v37 = vor.u32 %v3272_v58, %v3131_v12 }
0x13b3   :  { %v1966_v38 = vpop.f32.mrf.mxu2 }
0x13b4   :  { %v3271_v38 = vld [vmem:[%s4734_s1 + $0xc4] sm:$0xf0] }
0x13c8   :  { %v2111_v42 = vpop.f32.mrf.mxu1 }
0x13c9   :  { %v2112_v54 = vadd.f32 %v4144_v15, %v2111_v42  ;;  %v3128_v42 = vor.u32 %v3271_v38, %v3127_v36 }
0x13ce   :  { %v2148_v47 = vpop.f32.mrf.mxu2 }
0x13cf   :  { %v2149_v31 = vadd.f32 %v2148_v47, %v1952_v43  ;;  %v2161_v40 = vpop.f32.mrf.mxu3  ;;  %v3123_v43 = vld [vmem:[%s4734_s1 + $0xb0] sm:$0xf] }
0x13d0   :  { %v4591_v48 = vadd.f32 %v2161_v40, %v1965_v45  ;;  %v2113_v49 = vpop.f32.mrf.mxu1  ;;  %v3270_v45 = vld [vmem:[%s4734_s1 + $0xb4] sm:$0xf0]  ;;  %v3269_v40 = vld [vmem:[%s4734_s1 + $0xa4] sm:$0xf0] }
0x13d1   :  { %v2165_v53 = vmul.f32 0.5, %v2149_v31  ;;  %v3124_v47 = vor.u32 %v3270_v45, %v3123_v43  ;;  %v3119_v31 = vld [vmem:[%s4734_s1 + $0xa0] sm:$0xf] }
0x13d2   :  { %3420 = vtanh.f32 %v4591_v48  ;;  %v2166_v49 = vmul.f32 0.5, %v4591_v48  ;;  %v2435_v48 = vld [vmem:[#allocation2] sm:$0xff] }
0x13d3   :  { %3422 = vtanh.f32 %v2165_v53 }
0x13d6   :  { %v2150_v50 = vpop.f32.mrf.mxu2 }
0x13d7   :  { %v2163_v51 = vpop.f32.mrf.mxu3 }
0x13d8   :  { %v3421_v52 = vpop.eup %3420  ;;  %v3120_v51 = vor.u32 %v3269_v40, %v3119_v31 }
0x13d9   :  { %2176 = vrot.lane.b32.xlu2 %v3421_v52, %s3471_s25  ;;  %v3423_v56 = vpop.eup %3422 }
0x13da   :  { %v2169_v60 = vadd.f32 1.0, %v3423_v56 }
0x13dc   :  { %v2171_v63 = vmul.f32 0.5, %v2169_v60 }
0x13de   :  { %v2174_v4 = vmul.f32 %v2171_v63, %v4475_v26  ;;  %v3261_v26 = vld [vmem:[%s4734_s1 + $0x94] sm:$0xf] }
0x13df   :  { %v3087_v11 = vor.u32 %v3261_v26, %v3084_v61 }
0x13e1   :  { %2260 = vmatpush.bf16.msra.mxu1 %v3087_v11 }
0x13e5   :  { %2261 = vmatpush.bf16.msra.mxu1 %v3079_v24 }
0x13e9   :  { %2262 = vmatpush.bf16.msra.mxu1 %v3071_v28 }
0x13ed   :  { %2263 = vmatpush.bf16.msra.mxu1 %v3063_v34 }
0x13f1   :  { %2486 = vmatpush.bf16.msrb.mxu1 %v3132_v37 }
0x13f5   :  { %2487 = vmatpush.bf16.msrb.mxu1 %v3128_v42 }
0x13f9   :  { %2488 = vmatpush.bf16.msrb.mxu1 %v3124_v47 }
0x13fd   :  { %2489 = vmatpush.bf16.msrb.mxu1 %v3120_v51  ;;  %v2437_v51 = vld [vmem:[#allocation2 + $0x10] sm:$0xff] }
0x1433   :  { %v2325_v35 = vpop.f32.mrf.mxu2  ;;  %v2177_v62 = vpop.permute.xlu2 %2176 }
0x1434   :  { %v2326_v55 = vadd.f32 %v2325_v35, %v2112_v54  ;;  %v2179_v44 = vmul.f32 %v2177_v62, %v2171_v63 }
0x1436   :  { %3424 = vtanh.f32 %v2326_v55  ;;  %v2329_v22 = vmul.f32 0.5, %v2326_v55 }
0x1438   :  { %3426 = vtanh.f32 %v2329_v22 }
0x143b   :  { %v2327_v57 = vpop.f32.mrf.mxu2 }
0x143c   :  { %v3425_v59 = vpop.eup %3424 }
0x143d   :  { %2336 = vrot.lane.b32.xlu1 %v3425_v59, %s3470_s8 }
0x143e   :  { %v3427_v0 = vpop.eup %3426 }
0x143f   :  { %v2331_v2 = vadd.f32 1.0, %v3427_v0  ;;  %v3267_v0 = vld [vmem:[%s4734_s1 + $0x54] sm:$0xf] }
0x1441   :  { %v4598_v15 = vmul.f32 0.5, %v2331_v2  ;;  %v3111_v2 = vld [vmem:[%s4734_s1 + $0x58] sm:$0xf0] }
0x1443   :  { %v2334_v50 = vmul.f32 %v4598_v15, %v4470_v21  ;;  %v2436_v21 = vld [vmem:[#allocation2 + $0x8] sm:$0xff] }
0x1444   :  { %v2439_v62 = vpack.c.bf16 %v2436_v21, %v2435_v48 }
0x1445   :  { %2181 = vrot.lane.b32.xlu1 %v2179_v44, %s3471_s25 }
0x14af   :  { %v2337_v3 = vpop.permute.xlu1 %2336 }
0x14b0   :  { %v2339_v25 = vmul.f32 %v2337_v3, %v4598_v15  ;;  %v3265_v3 = vld [vmem:[%s4734_s1 + $0x44] sm:$0xf] }
0x14b2   :  { %2341 = vrot.lane.b32.xlu0 %v2339_v25, %s3470_s8  ;;  %v3114_v25 = vor.u32 %v3267_v0, %v3111_v2 }
0x14b4   :  { %2401 = vmatpush.bf16.msra.mxu0 %v3114_v25 }
0x14b7   :  { %v2182_v6 = vpop.permute.xlu1 %2181 }
0x14b8   :  { %v4603_v19 = vadd.f32 %v2182_v6, %v2174_v4  ;;  %v3109_v4 = vld [vmem:[%s4734_s1 + $0x50] sm:$0xf]  ;;  %v3268_v6 = vld [vmem:[%s4734_s1 + $0x54] sm:$0xf0] }
0x14ba   :  { %3428 = vtanh.f32 %v4603_v19 }
0x14bb   :  { %3430 = vtanh.f32 %v2166_v49 }
0x14c0   :  { %v3429_v7 = vpop.eup %3428 }
0x14c1   :  { %2187 = vrot.lane.b32.xlu0 %v3429_v7, %s3471_s25  ;;  %v3431_v54 = vpop.eup %3430  ;;  %v3110_v7 = vor.u32 %v3268_v6, %v3109_v4 }
0x14c2   :  { %v2170_v55 = vadd.f32 1.0, %v3431_v54 }
0x14c3   :  { %2388 = vmatpush.bf16.msrb.mxu3 %v3110_v7 }
0x14c4   :  { %v2172_v56 = vmul.f32 0.5, %v2170_v55 }
0x14c7   :  { %2389 = vmatpush.bf16.msrb.mxu3 %v3102_v41 }
0x1524   :  { %v2342_v52 = vpop.permute.xlu0 %2341 }
0x1525   :  { %v2344_v53 = vadd.f32 %v2342_v52, %v2334_v50 }
0x1527   :  { %3432 = vtanh.f32 %v2344_v53 }
0x152d   :  { %v3433_v35 = vpop.eup %3432 }
0x152e   :  { %2347 = vrot.lane.b32.xlu2 %v3433_v35, %s3470_s8 }
0x1533   :  { %v2188_v57 = vpop.permute.xlu0 %2187 }
0x1534   :  { %v2190_v59 = vmul.f32 %v2188_v57, %v2172_v56 }
0x1536   :  { %v2191_v60 = vpack.c.bf16 %v2190_v59, %v2190_v59  ;;  %2269 = vst.msk [vmem:[#allocation2 + $0x18] sm:$0xf] %vm462_vm3, %v2190_v59 }
0x1538   :  { %3088 = vmatmul.msk.bf16.vlgmr.msrb.gmra.mxu0 %vm189_vm1, %v2191_v60  ;;  %3089 = vmatmul.msk.bf16.vlgmr.msra.gmra.mxu1 %vm189_vm1, %v2191_v60 }
0x1548   :  { %3133 = vmatmul.msk.bf16.vlgmr.msrb.gmra.mxu1 %vm189_vm1, %v2439_v62 }
0x1588   :  { %v2348_v63 = vpop.permute.xlu2 %2347 }
0x1589   :  { %v2350_v44 = vmul.f32 %v2348_v63, %v4598_v15  ;;  %v3103_v15 = vld [vmem:[%s4734_s1 + $0x48] sm:$0xf0]  ;;  %s3472_s1 = smov [#allocation3]  }
0x158a   :  { %v3106_v26 = vor.u32 %v3265_v3, %v3103_v15  ;;  %s2510_s2 = sshll.u32 %s3472_s1, 4  ;;  %s2511_s2 = int_to_ptr.vmem [resolvable:$true] %s2510_s2 }
0x158b   :  { %v2351_v22 = vpack.c.bf16 %v2350_v44, %v2350_v44 }
0x158c   :  { %2402 = vmatpush.bf16.msra.mxu0 %v3106_v26 }
0x158d   :  { %2357 = vrot.lane.b32.xlu1 %v2351_v22, %s3471_s25 }
0x15b5   :  { %v2252_v61 = vpop.f32.mrf.mxu0  ;;  %v2265_v10 = vpop.f32.mrf.mxu1 }
0x15b6   :  { %v2266_v9 = vadd.f32 %v2265_v10, %v3718_v30  ;;  %v2253_v28 = vadd.f32 %v2252_v61, %v3716_v29 }
0x15bd   :  { %v2254_v5 = vpop.f32.mrf.mxu0  ;;  %v2267_v11 = vpop.f32.mrf.mxu1 }
0x15c5   :  { %v2491_v17 = vpop.f32.mrf.mxu1 }
0x15c6   :  { %v2492_v14 = vadd.f32 %v3281_v13, %v2491_v17 }
0x15c8   :  { %2502 = vst.msk [vmem:[#allocation3] sm:$0xff] %vm2501_vm4, %v2492_v14 }
0x15cd   :  { %v2493_v24 = vpop.f32.mrf.mxu1 }
0x15ce   :  { %v2494_v23 = vadd.f32 %v3281_v13, %v2493_v24 }
0x15d0   :  { %2503 = vst.msk [vmem:[#allocation3 + $0x8] sm:$0xff] %vm2501_vm4, %v2494_v23 }
0x15ff   :  { %v2358_v18 = vpop.permute.xlu1 %2357 }
0x1600   :  { %3115 = vmatmul.msk.bf16.vlgmr.msrb.gmra.mxu3 %vm43_vm0, %v2358_v18  ;;  %3116 = vmatmul.msk.bf16.vlgmr.msra.gmra.mxu0 %vm43_vm0, %v2358_v18 }
0x167d   :  { %v2404_v27 = vpop.f32.mrf.mxu0 }
0x167e   :  { %v2405_v46 = vadd.f32 %v2404_v27, %v2266_v9 }
0x1680   :  { %3434 = vtanh.f32 %v2405_v46  ;;  %v2409_v45 = vmul.f32 0.5, %v2405_v46 }
0x1683   :  { %v2391_v32 = vpop.f32.mrf.mxu3 }
0x1684   :  { %v2392_v1 = vadd.f32 %v2391_v32, %v2253_v28 }
0x1685   :  { %v2406_v8 = vpop.f32.mrf.mxu0 }
0x1686   :  { %v3435_v33 = vpop.eup %3434  ;;  %v2408_v34 = vmul.f32 0.5, %v2392_v1 }
0x1687   :  { %2419 = vrot.lane.b32.xlu2 %v3435_v33, %s3471_s25 }
0x1688   :  { %3436 = vtanh.f32 %v2408_v34 }
0x168b   :  { %v2393_v16 = vpop.f32.mrf.mxu3 }
0x168e   :  { %v3437_v12 = vpop.eup %3436 }
0x168f   :  { %v2412_v58 = vadd.f32 1.0, %v3437_v12 }
0x1691   :  { %v2414_v36 = vmul.f32 0.5, %v2412_v58 }
0x1693   :  { %v2417_v30 = vmul.f32 %v2414_v36, %v4603_v19 }
0x16e1   :  { %v2420_v37 = vpop.permute.xlu2 %2419 }
0x16e2   :  { %v2422_v38 = vmul.f32 %v2420_v37, %v2414_v36 }
0x16e4   :  { %2424 = vrot.lane.b32.xlu0 %v2422_v38, %s3471_s25 }
0x1756   :  { %v2425_v42 = vpop.permute.xlu0 %2424 }
0x1757   :  { %v2427_v29 = vadd.f32 %v2425_v42, %v2417_v30 }
0x1759   :  { %3438 = vtanh.f32 %v2427_v29 }
0x175a   :  { %3440 = vtanh.f32 %v2409_v45 }
0x175f   :  { %v3439_v43 = vpop.eup %3438 }
0x1760   :  { %2430 = vrot.lane.b32.xlu1 %v3439_v43, %s3471_s25  ;;  %v3441_v47 = vpop.eup %3440 }
0x1761   :  { %v2413_v31 = vadd.f32 1.0, %v3441_v47 }
0x1763   :  { %v2415_v40 = vmul.f32 0.5, %v2413_v31 }
0x17d2   :  { %v2431_v49 = vpop.permute.xlu1 %2430 }
0x17d3   :  { %v2433_v50 = vmul.f32 %v2431_v49, %v2415_v40 }
0x17d5   :  { %2434 = vst.msk [vmem:[#allocation2 + $0x1c] sm:$0xf] %vm462_vm3, %v2433_v50 }
0x17dc   :  { %v2438_v52 = vld [vmem:[#allocation2 + $0x18] sm:$0xff] }
0x17dd   :  { %v2440_v53 = vpack.c.bf16 %v2438_v52, %v2437_v51 }
0x17df   :  { %3134 = vmatmul.msk.bf16.gmra.mxu1 %vm189_vm1, %v2440_v53 }
0x185c   :  { %v2496_v19 = vpop.f32.mrf.mxu1 }
0x185d   :  { %v2497_v54 = vadd.f32 %v3281_v13, %v2496_v19 }
0x185f   :  { %2504 = vst.msk [vmem:[#allocation3 + $0x10] sm:$0xff] %vm2501_vm4, %v2497_v54 }
0x1864   :  { %v2498_v35 = vpop.f32.mrf.mxu1 }
0x1865   :  { %v2499_v55 = vadd.f32 %v3281_v13, %v2498_v35 }
0x1867   :  { %2505 = vst.msk [vmem:[#allocation3 + $0x18] sm:$0xff] %vm2501_vm4, %v2499_v55 }
0x1868   :  { %2518 = dma.vmem_to_hbm [thread:$0]  %s2511_s2, 512, %s2513_s12, [#allocation4], %s3473_s13, %s3473_s13, %s3474_s14  }
0x1869   :  { %3467 = dma.done.wait [#allocation4], 512  }
0x186a   :  { %3468 = vsyncadd [#allocation4], 4294966784 }
0x186b   :  { %2523 = vsyncpa [#allocation4], 1 }

</bundles_post_ra>
